<compile_context>
chip_gen: v5e
topology: v5e:2x2
jax: 0.10.0
libtpu: 0.0.40
codegen_flags: <defaults>
</compile_context>

<pallas_src>
import functools

import jax
import jax.numpy as jnp
from jax.experimental import pallas as pl
from jax.experimental.pallas import tpu as pltpu


def _hyper_mlp_kernel(*refs, layer_dims, n_layers):
    """refs = (x_ref, w_ref_0..w_ref_{L-1}, o_ref, scratch_0..scratch_{L-2}).

    All operands have batch on the last (lane) axis:
      x_ref:        (decoder_dim, TB)
      w_ref_i:      (din_i + 1, dout_i, TB)   (last leading row = bias)
      o_ref:        (dout_last, TB)
      scratch_i:    (dout_i, TB) f32          (intermediate activations)
    """
    x_ref = refs[0]
    w_refs = refs[1:1 + n_layers]
    o_ref = refs[1 + n_layers]
    scratch_refs = refs[2 + n_layers:]

    cur = x_ref                                   # current-layer input ref
    for li, (din, dout, act) in enumerate(layer_dims):
        w_ref = w_refs[li]                        # (din + 1, dout, TB)
        # bias row (last leading index) initializes the f32 accumulator
        acc = w_ref[din].astype(jnp.float32)      # (dout, TB)
        # din broadcast-FMA passes on the VPU; static unroll (din is small).
        for d in range(din):
            acc = acc + (cur[pl.ds(d, 1), :].astype(jnp.float32)
                         * w_ref[d].astype(jnp.float32))
        if act:
            acc = acc * jax.nn.sigmoid(acc)       # swish (sigmoid -> EUP slot)
        if li == n_layers - 1:
            o_ref[...] = acc.astype(o_ref.dtype)  # lane-dense store
        else:
            scratch_refs[li][...] = acc
            cur = scratch_refs[li]


def pose_regressor_hyper(x, weights, *, decoder_dim, hidden_dim, output_dim,
                         hidden_scale=1.0, block_b=128):
    """Pallas implementation of PoseRegressorHyper.forward.

    x:        (B, decoder_dim)
    weights:  dict of flat per-sample weight+bias tensors, e.g.
              {'w_h1': (B, (decoder_dim+1)*hidden_dim),
               'w_h2': (B, (hidden_dim+1)*hs), ..., 'w_o': (B, (hs+1)*output_dim)}
    """
    B, D = x.shape
    assert D == decoder_dim, (D, decoder_dim)
    hs = int(hidden_dim * hidden_scale)
    out_dtype = x.dtype

    # ---- ordered layer plan, mirroring the PyTorch forward -----------------
    layer_plan = []  # (key, din, dout, activation)
    if 'w_h1' in weights:
        layer_plan.append(('w_h1', decoder_dim, hidden_dim, True))
    for index in range(len(weights) - 2):
        key = f'w_h{index + 2}'
        if key in weights:
            layer_plan.append((key, hidden_dim, hs, True))
    if 'w_o' in weights:
        layer_plan.append(('w_o', hs, output_dim, False))
    n_layers = len(layer_plan)
    assert n_layers >= 1, "weights dict produced no layers"
    out_dim_last = layer_plan[-1][2]

    # ---- batch tile size (batch maps onto the 128-lane axis) ---------------
    if B >= block_b:
        tb = block_b
        b_pad = pl.cdiv(B, tb) * tb
    else:
        tb = B
        b_pad = B
    pad = b_pad - B

    # ---- layout plumbing: batch -> last axis, pad batch to a tile multiple --
    xt = x.T                                            # (D, B)
    if pad:
        xt = jnp.pad(xt, ((0, 0), (0, pad)))
    w_ops = []
    for key, din, dout, _ in layer_plan:
        w = weights[key].reshape(B, din + 1, dout)
        wt = jnp.transpose(w, (1, 2, 0))                # (din+1, dout, B)
        if pad:
            wt = jnp.pad(wt, ((0, 0), (0, 0), (0, pad)))
        w_ops.append(wt)

    kernel = functools.partial(
        _hyper_mlp_kernel,
        layer_dims=tuple((din, dout, act) for _, din, dout, act in layer_plan),
        n_layers=n_layers)

    in_specs = [pl.BlockSpec((decoder_dim, tb), lambda b: (0, b))]
    for _, din, dout, _a in layer_plan:
        in_specs.append(pl.BlockSpec((din + 1, dout, tb), lambda b: (0, 0, b)))
    out_specs = pl.BlockSpec((out_dim_last, tb), lambda b: (0, b))
    scratch_shapes = [pltpu.VMEM((dout, tb), jnp.float32)
                      for _, _din, dout, _a in layer_plan[:-1]]

    itemsize = jnp.dtype(out_dtype).itemsize
    flops = 2 * B * sum((din + 1) * dout for _, din, dout, _a in layer_plan)
    transcendentals = B * sum(dout for _, _d, dout, act in layer_plan if act)
    bytes_accessed = itemsize * (xt.size + sum(w.size for w in w_ops)
                                 + b_pad * out_dim_last)

    out = pl.pallas_call(
        kernel,
        out_shape=jax.ShapeDtypeStruct((out_dim_last, b_pad), out_dtype),
        grid_spec=pltpu.PrefetchScalarGridSpec(
            num_scalar_prefetch=0,
            grid=(b_pad // tb,),
            in_specs=in_specs,
            out_specs=out_specs,
            scratch_shapes=scratch_shapes),
        compiler_params=pltpu.CompilerParams(
            dimension_semantics=("parallel",)),
        cost_estimate=pl.CostEstimate(
            flops=flops,
            transcendentals=transcendentals,
            bytes_accessed=bytes_accessed),
    )(xt, *w_ops)

    return out.T[:B]                                    # (B, output_dim)


# ----------------------------- pure-JAX reference ----------------------------
def _batched_linear_ref(x, wb):
    one = jnp.ones(x.shape[:-1] + (1,), dtype=x.dtype)
    return jnp.einsum("bd,bdh->bh", jnp.concatenate([x, one], axis=-1), wb)


def pose_regressor_hyper_ref(x, weights, *, decoder_dim, hidden_dim,
                             output_dim, hidden_scale=1.0):
    B = x.shape[0]
    hs = int(hidden_dim * hidden_scale)
    h = _batched_linear_ref(x, weights["w_h1"].reshape(B, decoder_dim + 1, hidden_dim))
    h = h * jax.nn.sigmoid(h)
    h = _batched_linear_ref(h, weights["w_h2"].reshape(B, hidden_dim + 1, hs))
    h = h * jax.nn.sigmoid(h)
    return _batched_linear_ref(h, weights["w_o"].reshape(B, hs + 1, output_dim))


def _make_inputs(key, B, decoder_dim, hidden_dim, output_dim, hidden_scale):
    hs = int(hidden_dim * hidden_scale)
    kx, k1, k2, k3 = jax.random.split(key, 4)
    x = jax.random.normal(kx, (B, decoder_dim), dtype=jnp.float32)
    weights = {
        "w_h1": 0.1 * jax.random.normal(k1, (B, (decoder_dim + 1) * hidden_dim), jnp.float32),
        "w_h2": 0.1 * jax.random.normal(k2, (B, (hidden_dim + 1) * hs), jnp.float32),
        "w_o":  0.1 * jax.random.normal(k3, (B, (hs + 1) * output_dim), jnp.float32),
    }
    return x, weights


if __name__ == "__main__":
    decoder_dim = 32
    hidden_dim = 32
    output_dim = 7          # e.g. 3D translation + 4D quaternion
    hidden_scale = 1.0

    key = jax.random.PRNGKey(0)
    k_small, k_big = jax.random.split(key)

    # --- small case (single block, TB == B) ---------------------------------
    B = 2
    x, weights = _make_inputs(k_small, B, decoder_dim, hidden_dim,
                              output_dim, hidden_scale)
    out = pose_regressor_hyper(
        x, weights, decoder_dim=decoder_dim, hidden_dim=hidden_dim,
        output_dim=output_dim, hidden_scale=hidden_scale)
    out = jax.block_until_ready(out)
    ref = pose_regressor_hyper_ref(
        x, weights, decoder_dim=decoder_dim, hidden_dim=hidden_dim,
        output_dim=output_dim, hidden_scale=hidden_scale)
    assert out.shape == (B, output_dim), out.shape
    assert jnp.allclose(out, ref, atol=1e-5, rtol=1e-5), (out, ref)

    # --- larger case (multi-block grid + batch padding path) ----------------
    B2 = 200                # non-multiple of 128 -> exercises padding + grid=2
    x2, weights2 = _make_inputs(k_big, B2, decoder_dim, hidden_dim,
                                output_dim, hidden_scale)
    out2 = pose_regressor_hyper(
        x2, weights2, decoder_dim=decoder_dim, hidden_dim=hidden_dim,
        output_dim=output_dim, hidden_scale=hidden_scale, block_b=128)
    out2 = jax.block_until_ready(out2)
    ref2 = pose_regressor_hyper_ref(
        x2, weights2, decoder_dim=decoder_dim, hidden_dim=hidden_dim,
        output_dim=output_dim, hidden_scale=hidden_scale)
    assert out2.shape == (B2, output_dim), out2.shape
    assert jnp.allclose(out2, ref2, atol=1e-5, rtol=1e-5)

    print("KERNEL_OK")
</pallas_src>

<mosaic_0001>
module attributes {stable_mosaic.version = 11 : i64} {
  func.func @_hyper_mlp_kernel(%arg0: i32, %arg1: memref<32x2xf32, #tpu.memory_space<vmem>>, %arg2: memref<33x32x2xf32, #tpu.memory_space<vmem>>, %arg3: memref<33x32x2xf32, #tpu.memory_space<vmem>>, %arg4: memref<33x7x2xf32, #tpu.memory_space<vmem>>, %arg5: memref<7x2xf32, #tpu.memory_space<vmem>>, %arg6: memref<32x2xf32, #tpu.memory_space<vmem>>, %arg7: memref<32x2xf32, #tpu.memory_space<vmem>>) attributes {dimension_semantics = [#tpu.dimension_semantics<parallel>], iteration_bounds = array<i64: 1>, scalar_prefetch = 0 : i64, scratch_operands = 2 : i64, tpu.core_type = #tpu.core_type<tc>, window_params = [{transform_indices = @transform_0, window_bounds = array<i64: 32, 2>}, {transform_indices = @transform_1, window_bounds = array<i64: 33, 32, 2>}, {transform_indices = @transform_2, window_bounds = array<i64: 33, 32, 2>}, {transform_indices = @transform_3, window_bounds = array<i64: 33, 7, 2>}, {transform_indices = @transform_4, window_bounds = array<i64: 7, 2>}]} {
    %c32 = arith.constant 32 : index
    %c0 = arith.constant 0 : index
    %c0_0 = arith.constant 0 : index
    %0 = vector.load %arg2[%c32, %c0, %c0_0] : memref<33x32x2xf32, #tpu.memory_space<vmem>>, vector<1x32x2xf32>
    %1 = vector.shape_cast %0 : vector<1x32x2xf32> to vector<32x2xf32>
    %c0_1 = arith.constant 0 : index
    %c0_2 = arith.constant 0 : index
    %2 = vector.load %arg1[%c0_1, %c0_2] : memref<32x2xf32, #tpu.memory_space<vmem>>, vector<1x2xf32>
    %c0_3 = arith.constant 0 : index
    %c0_4 = arith.constant 0 : index
    %c0_5 = arith.constant 0 : index
    %3 = vector.load %arg2[%c0_3, %c0_4, %c0_5] : memref<33x32x2xf32, #tpu.memory_space<vmem>>, vector<1x32x2xf32>
    %4 = vector.shape_cast %3 : vector<1x32x2xf32> to vector<32x2xf32>
    %5 = vector.broadcast %2 : vector<1x2xf32> to vector<32x2xf32>
    %6 = arith.mulf %5, %4 : vector<32x2xf32>
    %7 = arith.addf %1, %6 : vector<32x2xf32>
    %c1 = arith.constant 1 : index
    %c0_6 = arith.constant 0 : index
    %8 = vector.load %arg1[%c1, %c0_6] : memref<32x2xf32, #tpu.memory_space<vmem>>, vector<1x2xf32>
    %c1_7 = arith.constant 1 : index
    %c0_8 = arith.constant 0 : index
    %c0_9 = arith.constant 0 : index
    %9 = vector.load %arg2[%c1_7, %c0_8, %c0_9] : memref<33x32x2xf32, #tpu.memory_space<vmem>>, vector<1x32x2xf32>
    %10 = vector.shape_cast %9 : vector<1x32x2xf32> to vector<32x2xf32>
    %11 = vector.broadcast %8 : vector<1x2xf32> to vector<32x2xf32>
    %12 = arith.mulf %11, %10 : vector<32x2xf32>
    %13 = arith.addf %7, %12 : vector<32x2xf32>
    %c2 = arith.constant 2 : index
    %c0_10 = arith.constant 0 : index
    %14 = vector.load %arg1[%c2, %c0_10] : memref<32x2xf32, #tpu.memory_space<vmem>>, vector<1x2xf32>
    %c2_11 = arith.constant 2 : index
    %c0_12 = arith.constant 0 : index
    %c0_13 = arith.constant 0 : index
    %15 = vector.load %arg2[%c2_11, %c0_12, %c0_13] : memref<33x32x2xf32, #tpu.memory_space<vmem>>, vector<1x32x2xf32>
    %16 = vector.shape_cast %15 : vector<1x32x2xf32> to vector<32x2xf32>
    %17 = vector.broadcast %14 : vector<1x2xf32> to vector<32x2xf32>
    %18 = arith.mulf %17, %16 : vector<32x2xf32>
    %19 = arith.addf %13, %18 : vector<32x2xf32>
    %c3 = arith.constant 3 : index
    %c0_14 = arith.constant 0 : index
    %20 = vector.load %arg1[%c3, %c0_14] : memref<32x2xf32, #tpu.memory_space<vmem>>, vector<1x2xf32>
    %c3_15 = arith.constant 3 : index
    %c0_16 = arith.constant 0 : index
    %c0_17 = arith.constant 0 : index
    %21 = vector.load %arg2[%c3_15, %c0_16, %c0_17] : memref<33x32x2xf32, #tpu.memory_space<vmem>>, vector<1x32x2xf32>
    %22 = vector.shape_cast %21 : vector<1x32x2xf32> to vector<32x2xf32>
    %23 = vector.broadcast %20 : vector<1x2xf32> to vector<32x2xf32>
    %24 = arith.mulf %23, %22 : vector<32x2xf32>
    %25 = arith.addf %19, %24 : vector<32x2xf32>
    %c4 = arith.constant 4 : index
    %c0_18 = arith.constant 0 : index
    %26 = vector.load %arg1[%c4, %c0_18] : memref<32x2xf32, #tpu.memory_space<vmem>>, vector<1x2xf32>
    %c4_19 = arith.constant 4 : index
    %c0_20 = arith.constant 0 : index
    %c0_21 = arith.constant 0 : index
    %27 = vector.load %arg2[%c4_19, %c0_20, %c0_21] : memref<33x32x2xf32, #tpu.memory_space<vmem>>, vector<1x32x2xf32>
    %28 = vector.shape_cast %27 : vector<1x32x2xf32> to vector<32x2xf32>
    %29 = vector.broadcast %26 : vector<1x2xf32> to vector<32x2xf32>
    %30 = arith.mulf %29, %28 : vector<32x2xf32>
    %31 = arith.addf %25, %30 : vector<32x2xf32>
    %c5 = arith.constant 5 : index
    %c0_22 = arith.constant 0 : index
    %32 = vector.load %arg1[%c5, %c0_22] : memref<32x2xf32, #tpu.memory_space<vmem>>, vector<1x2xf32>
    %c5_23 = arith.constant 5 : index
    %c0_24 = arith.constant 0 : index
    %c0_25 = arith.constant 0 : index
    %33 = vector.load %arg2[%c5_23, %c0_24, %c0_25] : memref<33x32x2xf32, #tpu.memory_space<vmem>>, vector<1x32x2xf32>
    %34 = vector.shape_cast %33 : vector<1x32x2xf32> to vector<32x2xf32>
    %35 = vector.broadcast %32 : vector<1x2xf32> to vector<32x2xf32>
    %36 = arith.mulf %35, %34 : vector<32x2xf32>
    %37 = arith.addf %31, %36 : vector<32x2xf32>
    %c6 = arith.constant 6 : index
    %c0_26 = arith.constant 0 : index
    %38 = vector.load %arg1[%c6, %c0_26] : memref<32x2xf32, #tpu.memory_space<vmem>>, vector<1x2xf32>
    %c6_27 = arith.constant 6 : index
    %c0_28 = arith.constant 0 : index
    %c0_29 = arith.constant 0 : index
    %39 = vector.load %arg2[%c6_27, %c0_28, %c0_29] : memref<33x32x2xf32, #tpu.memory_space<vmem>>, vector<1x32x2xf32>
    %40 = vector.shape_cast %39 : vector<1x32x2xf32> to vector<32x2xf32>
    %41 = vector.broadcast %38 : vector<1x2xf32> to vector<32x2xf32>
    %42 = arith.mulf %41, %40 : vector<32x2xf32>
    %43 = arith.addf %37, %42 : vector<32x2xf32>
    %c7 = arith.constant 7 : index
    %c0_30 = arith.constant 0 : index
    %44 = vector.load %arg1[%c7, %c0_30] : memref<32x2xf32, #tpu.memory_space<vmem>>, vector<1x2xf32>
    %c7_31 = arith.constant 7 : index
    %c0_32 = arith.constant 0 : index
    %c0_33 = arith.constant 0 : index
    %45 = vector.load %arg2[%c7_31, %c0_32, %c0_33] : memref<33x32x2xf32, #tpu.memory_space<vmem>>, vector<1x32x2xf32>
    %46 = vector.shape_cast %45 : vector<1x32x2xf32> to vector<32x2xf32>
    %47 = vector.broadcast %44 : vector<1x2xf32> to vector<32x2xf32>
    %48 = arith.mulf %47, %46 : vector<32x2xf32>
    %49 = arith.addf %43, %48 : vector<32x2xf32>
    %c8 = arith.constant 8 : index
    %c0_34 = arith.constant 0 : index
    %50 = vector.load %arg1[%c8, %c0_34] : memref<32x2xf32, #tpu.memory_space<vmem>>, vector<1x2xf32>
    %c8_35 = arith.constant 8 : index
    %c0_36 = arith.constant 0 : index
    %c0_37 = arith.constant 0 : index
    %51 = vector.load %arg2[%c8_35, %c0_36, %c0_37] : memref<33x32x2xf32, #tpu.memory_space<vmem>>, vector<1x32x2xf32>
    %52 = vector.shape_cast %51 : vector<1x32x2xf32> to vector<32x2xf32>
    %53 = vector.broadcast %50 : vector<1x2xf32> to vector<32x2xf32>
    %54 = arith.mulf %53, %52 : vector<32x2xf32>
    %55 = arith.addf %49, %54 : vector<32x2xf32>
    %c9 = arith.constant 9 : index
    %c0_38 = arith.constant 0 : index
    %56 = vector.load %arg1[%c9, %c0_38] : memref<32x2xf32, #tpu.memory_space<vmem>>, vector<1x2xf32>
    %c9_39 = arith.constant 9 : index
    %c0_40 = arith.constant 0 : index
    %c0_41 = arith.constant 0 : index
    %57 = vector.load %arg2[%c9_39, %c0_40, %c0_41] : memref<33x32x2xf32, #tpu.memory_space<vmem>>, vector<1x32x2xf32>
    %58 = vector.shape_cast %57 : vector<1x32x2xf32> to vector<32x2xf32>
    %59 = vector.broadcast %56 : vector<1x2xf32> to vector<32x2xf32>
    %60 = arith.mulf %59, %58 : vector<32x2xf32>
    %61 = arith.addf %55, %60 : vector<32x2xf32>
    %c10 = arith.constant 10 : index
    %c0_42 = arith.constant 0 : index
    %62 = vector.load %arg1[%c10, %c0_42] : memref<32x2xf32, #tpu.memory_space<vmem>>, vector<1x2xf32>
    %c10_43 = arith.constant 10 : index
    %c0_44 = arith.constant 0 : index
    %c0_45 = arith.constant 0 : index
    %63 = vector.load %arg2[%c10_43, %c0_44, %c0_45] : memref<33x32x2xf32, #tpu.memory_space<vmem>>, vector<1x32x2xf32>
    %64 = vector.shape_cast %63 : vector<1x32x2xf32> to vector<32x2xf32>
    %65 = vector.broadcast %62 : vector<1x2xf32> to vector<32x2xf32>
    %66 = arith.mulf %65, %64 : vector<32x2xf32>
    %67 = arith.addf %61, %66 : vector<32x2xf32>
    %c11 = arith.constant 11 : index
    %c0_46 = arith.constant 0 : index
    %68 = vector.load %arg1[%c11, %c0_46] : memref<32x2xf32, #tpu.memory_space<vmem>>, vector<1x2xf32>
    %c11_47 = arith.constant 11 : index
    %c0_48 = arith.constant 0 : index
    %c0_49 = arith.constant 0 : index
    %69 = vector.load %arg2[%c11_47, %c0_48, %c0_49] : memref<33x32x2xf32, #tpu.memory_space<vmem>>, vector<1x32x2xf32>
    %70 = vector.shape_cast %69 : vector<1x32x2xf32> to vector<32x2xf32>
    %71 = vector.broadcast %68 : vector<1x2xf32> to vector<32x2xf32>
    %72 = arith.mulf %71, %70 : vector<32x2xf32>
    %73 = arith.addf %67, %72 : vector<32x2xf32>
    %c12 = arith.constant 12 : index
    %c0_50 = arith.constant 0 : index
    %74 = vector.load %arg1[%c12, %c0_50] : memref<32x2xf32, #tpu.memory_space<vmem>>, vector<1x2xf32>
    %c12_51 = arith.constant 12 : index
    %c0_52 = arith.constant 0 : index
    %c0_53 = arith.constant 0 : index
    %75 = vector.load %arg2[%c12_51, %c0_52, %c0_53] : memref<33x32x2xf32, #tpu.memory_space<vmem>>, vector<1x32x2xf32>
    %76 = vector.shape_cast %75 : vector<1x32x2xf32> to vector<32x2xf32>
    %77 = vector.broadcast %74 : vector<1x2xf32> to vector<32x2xf32>
    %78 = arith.mulf %77, %76 : vector<32x2xf32>
    %79 = arith.addf %73, %78 : vector<32x2xf32>
    %c13 = arith.constant 13 : index
    %c0_54 = arith.constant 0 : index
    %80 = vector.load %arg1[%c13, %c0_54] : memref<32x2xf32, #tpu.memory_space<vmem>>, vector<1x2xf32>
    %c13_55 = arith.constant 13 : index
    %c0_56 = arith.constant 0 : index
    %c0_57 = arith.constant 0 : index
    %81 = vector.load %arg2[%c13_55, %c0_56, %c0_57] : memref<33x32x2xf32, #tpu.memory_space<vmem>>, vector<1x32x2xf32>
    %82 = vector.shape_cast %81 : vector<1x32x2xf32> to vector<32x2xf32>
    %83 = vector.broadcast %80 : vector<1x2xf32> to vector<32x2xf32>
    %84 = arith.mulf %83, %82 : vector<32x2xf32>
    %85 = arith.addf %79, %84 : vector<32x2xf32>
    %c14 = arith.constant 14 : index
    %c0_58 = arith.constant 0 : index
    %86 = vector.load %arg1[%c14, %c0_58] : memref<32x2xf32, #tpu.memory_space<vmem>>, vector<1x2xf32>
    %c14_59 = arith.constant 14 : index
    %c0_60 = arith.constant 0 : index
    %c0_61 = arith.constant 0 : index
    %87 = vector.load %arg2[%c14_59, %c0_60, %c0_61] : memref<33x32x2xf32, #tpu.memory_space<vmem>>, vector<1x32x2xf32>
    %88 = vector.shape_cast %87 : vector<1x32x2xf32> to vector<32x2xf32>
    %89 = vector.broadcast %86 : vector<1x2xf32> to vector<32x2xf32>
    %90 = arith.mulf %89, %88 : vector<32x2xf32>
    %91 = arith.addf %85, %90 : vector<32x2xf32>
    %c15 = arith.constant 15 : index
    %c0_62 = arith.constant 0 : index
    %92 = vector.load %arg1[%c15, %c0_62] : memref<32x2xf32, #tpu.memory_space<vmem>>, vector<1x2xf32>
    %c15_63 = arith.constant 15 : index
    %c0_64 = arith.constant 0 : index
    %c0_65 = arith.constant 0 : index
    %93 = vector.load %arg2[%c15_63, %c0_64, %c0_65] : memref<33x32x2xf32, #tpu.memory_space<vmem>>, vector<1x32x2xf32>
    %94 = vector.shape_cast %93 : vector<1x32x2xf32> to vector<32x2xf32>
    %95 = vector.broadcast %92 : vector<1x2xf32> to vector<32x2xf32>
    %96 = arith.mulf %95, %94 : vector<32x2xf32>
    %97 = arith.addf %91, %96 : vector<32x2xf32>
    %c16 = arith.constant 16 : index
    %c0_66 = arith.constant 0 : index
    %98 = vector.load %arg1[%c16, %c0_66] : memref<32x2xf32, #tpu.memory_space<vmem>>, vector<1x2xf32>
    %c16_67 = arith.constant 16 : index
    %c0_68 = arith.constant 0 : index
    %c0_69 = arith.constant 0 : index
    %99 = vector.load %arg2[%c16_67, %c0_68, %c0_69] : memref<33x32x2xf32, #tpu.memory_space<vmem>>, vector<1x32x2xf32>
    %100 = vector.shape_cast %99 : vector<1x32x2xf32> to vector<32x2xf32>
    %101 = vector.broadcast %98 : vector<1x2xf32> to vector<32x2xf32>
    %102 = arith.mulf %101, %100 : vector<32x2xf32>
    %103 = arith.addf %97, %102 : vector<32x2xf32>
    %c17 = arith.constant 17 : index
    %c0_70 = arith.constant 0 : index
    %104 = vector.load %arg1[%c17, %c0_70] : memref<32x2xf32, #tpu.memory_space<vmem>>, vector<1x2xf32>
    %c17_71 = arith.constant 17 : index
    %c0_72 = arith.constant 0 : index
    %c0_73 = arith.constant 0 : index
    %105 = vector.load %arg2[%c17_71, %c0_72, %c0_73] : memref<33x32x2xf32, #tpu.memory_space<vmem>>, vector<1x32x2xf32>
    %106 = vector.shape_cast %105 : vector<1x32x2xf32> to vector<32x2xf32>
    %107 = vector.broadcast %104 : vector<1x2xf32> to vector<32x2xf32>
    %108 = arith.mulf %107, %106 : vector<32x2xf32>
    %109 = arith.addf %103, %108 : vector<32x2xf32>
    %c18 = arith.constant 18 : index
    %c0_74 = arith.constant 0 : index
    %110 = vector.load %arg1[%c18, %c0_74] : memref<32x2xf32, #tpu.memory_space<vmem>>, vector<1x2xf32>
    %c18_75 = arith.constant 18 : index
    %c0_76 = arith.constant 0 : index
    %c0_77 = arith.constant 0 : index
    %111 = vector.load %arg2[%c18_75, %c0_76, %c0_77] : memref<33x32x2xf32, #tpu.memory_space<vmem>>, vector<1x32x2xf32>
    %112 = vector.shape_cast %111 : vector<1x32x2xf32> to vector<32x2xf32>
    %113 = vector.broadcast %110 : vector<1x2xf32> to vector<32x2xf32>
    %114 = arith.mulf %113, %112 : vector<32x2xf32>
    %115 = arith.addf %109, %114 : vector<32x2xf32>
    %c19 = arith.constant 19 : index
    %c0_78 = arith.constant 0 : index
    %116 = vector.load %arg1[%c19, %c0_78] : memref<32x2xf32, #tpu.memory_space<vmem>>, vector<1x2xf32>
    %c19_79 = arith.constant 19 : index
    %c0_80 = arith.constant 0 : index
    %c0_81 = arith.constant 0 : index
    %117 = vector.load %arg2[%c19_79, %c0_80, %c0_81] : memref<33x32x2xf32, #tpu.memory_space<vmem>>, vector<1x32x2xf32>
    %118 = vector.shape_cast %117 : vector<1x32x2xf32> to vector<32x2xf32>
    %119 = vector.broadcast %116 : vector<1x2xf32> to vector<32x2xf32>
    %120 = arith.mulf %119, %118 : vector<32x2xf32>
    %121 = arith.addf %115, %120 : vector<32x2xf32>
    %c20 = arith.constant 20 : index
    %c0_82 = arith.constant 0 : index
    %122 = vector.load %arg1[%c20, %c0_82] : memref<32x2xf32, #tpu.memory_space<vmem>>, vector<1x2xf32>
    %c20_83 = arith.constant 20 : index
    %c0_84 = arith.constant 0 : index
    %c0_85 = arith.constant 0 : index
    %123 = vector.load %arg2[%c20_83, %c0_84, %c0_85] : memref<33x32x2xf32, #tpu.memory_space<vmem>>, vector<1x32x2xf32>
    %124 = vector.shape_cast %123 : vector<1x32x2xf32> to vector<32x2xf32>
    %125 = vector.broadcast %122 : vector<1x2xf32> to vector<32x2xf32>
    %126 = arith.mulf %125, %124 : vector<32x2xf32>
    %127 = arith.addf %121, %126 : vector<32x2xf32>
    %c21 = arith.constant 21 : index
    %c0_86 = arith.constant 0 : index
    %128 = vector.load %arg1[%c21, %c0_86] : memref<32x2xf32, #tpu.memory_space<vmem>>, vector<1x2xf32>
    %c21_87 = arith.constant 21 : index
    %c0_88 = arith.constant 0 : index
    %c0_89 = arith.constant 0 : index
    %129 = vector.load %arg2[%c21_87, %c0_88, %c0_89] : memref<33x32x2xf32, #tpu.memory_space<vmem>>, vector<1x32x2xf32>
    %130 = vector.shape_cast %129 : vector<1x32x2xf32> to vector<32x2xf32>
    %131 = vector.broadcast %128 : vector<1x2xf32> to vector<32x2xf32>
    %132 = arith.mulf %131, %130 : vector<32x2xf32>
    %133 = arith.addf %127, %132 : vector<32x2xf32>
    %c22 = arith.constant 22 : index
    %c0_90 = arith.constant 0 : index
    %134 = vector.load %arg1[%c22, %c0_90] : memref<32x2xf32, #tpu.memory_space<vmem>>, vector<1x2xf32>
    %c22_91 = arith.constant 22 : index
    %c0_92 = arith.constant 0 : index
    %c0_93 = arith.constant 0 : index
    %135 = vector.load %arg2[%c22_91, %c0_92, %c0_93] : memref<33x32x2xf32, #tpu.memory_space<vmem>>, vector<1x32x2xf32>
    %136 = vector.shape_cast %135 : vector<1x32x2xf32> to vector<32x2xf32>
    %137 = vector.broadcast %134 : vector<1x2xf32> to vector<32x2xf32>
    %138 = arith.mulf %137, %136 : vector<32x2xf32>
    %139 = arith.addf %133, %138 : vector<32x2xf32>
    %c23 = arith.constant 23 : index
    %c0_94 = arith.constant 0 : index
    %140 = vector.load %arg1[%c23, %c0_94] : memref<32x2xf32, #tpu.memory_space<vmem>>, vector<1x2xf32>
    %c23_95 = arith.constant 23 : index
    %c0_96 = arith.constant 0 : index
    %c0_97 = arith.constant 0 : index
    %141 = vector.load %arg2[%c23_95, %c0_96, %c0_97] : memref<33x32x2xf32, #tpu.memory_space<vmem>>, vector<1x32x2xf32>
    %142 = vector.shape_cast %141 : vector<1x32x2xf32> to vector<32x2xf32>
    %143 = vector.broadcast %140 : vector<1x2xf32> to vector<32x2xf32>
    %144 = arith.mulf %143, %142 : vector<32x2xf32>
    %145 = arith.addf %139, %144 : vector<32x2xf32>
    %c24 = arith.constant 24 : index
    %c0_98 = arith.constant 0 : index
    %146 = vector.load %arg1[%c24, %c0_98] : memref<32x2xf32, #tpu.memory_space<vmem>>, vector<1x2xf32>
    %c24_99 = arith.constant 24 : index
    %c0_100 = arith.constant 0 : index
    %c0_101 = arith.constant 0 : index
    %147 = vector.load %arg2[%c24_99, %c0_100, %c0_101] : memref<33x32x2xf32, #tpu.memory_space<vmem>>, vector<1x32x2xf32>
    %148 = vector.shape_cast %147 : vector<1x32x2xf32> to vector<32x2xf32>
    %149 = vector.broadcast %146 : vector<1x2xf32> to vector<32x2xf32>
    %150 = arith.mulf %149, %148 : vector<32x2xf32>
    %151 = arith.addf %145, %150 : vector<32x2xf32>
    %c25 = arith.constant 25 : index
    %c0_102 = arith.constant 0 : index
    %152 = vector.load %arg1[%c25, %c0_102] : memref<32x2xf32, #tpu.memory_space<vmem>>, vector<1x2xf32>
    %c25_103 = arith.constant 25 : index
    %c0_104 = arith.constant 0 : index
    %c0_105 = arith.constant 0 : index
    %153 = vector.load %arg2[%c25_103, %c0_104, %c0_105] : memref<33x32x2xf32, #tpu.memory_space<vmem>>, vector<1x32x2xf32>
    %154 = vector.shape_cast %153 : vector<1x32x2xf32> to vector<32x2xf32>
    %155 = vector.broadcast %152 : vector<1x2xf32> to vector<32x2xf32>
    %156 = arith.mulf %155, %154 : vector<32x2xf32>
    %157 = arith.addf %151, %156 : vector<32x2xf32>
    %c26 = arith.constant 26 : index
    %c0_106 = arith.constant 0 : index
    %158 = vector.load %arg1[%c26, %c0_106] : memref<32x2xf32, #tpu.memory_space<vmem>>, vector<1x2xf32>
    %c26_107 = arith.constant 26 : index
    %c0_108 = arith.constant 0 : index
    %c0_109 = arith.constant 0 : index
    %159 = vector.load %arg2[%c26_107, %c0_108, %c0_109] : memref<33x32x2xf32, #tpu.memory_space<vmem>>, vector<1x32x2xf32>
    %160 = vector.shape_cast %159 : vector<1x32x2xf32> to vector<32x2xf32>
    %161 = vector.broadcast %158 : vector<1x2xf32> to vector<32x2xf32>
    %162 = arith.mulf %161, %160 : vector<32x2xf32>
    %163 = arith.addf %157, %162 : vector<32x2xf32>
    %c27 = arith.constant 27 : index
    %c0_110 = arith.constant 0 : index
    %164 = vector.load %arg1[%c27, %c0_110] : memref<32x2xf32, #tpu.memory_space<vmem>>, vector<1x2xf32>
    %c27_111 = arith.constant 27 : index
    %c0_112 = arith.constant 0 : index
    %c0_113 = arith.constant 0 : index
    %165 = vector.load %arg2[%c27_111, %c0_112, %c0_113] : memref<33x32x2xf32, #tpu.memory_space<vmem>>, vector<1x32x2xf32>
    %166 = vector.shape_cast %165 : vector<1x32x2xf32> to vector<32x2xf32>
    %167 = vector.broadcast %164 : vector<1x2xf32> to vector<32x2xf32>
    %168 = arith.mulf %167, %166 : vector<32x2xf32>
    %169 = arith.addf %163, %168 : vector<32x2xf32>
    %c28 = arith.constant 28 : index
    %c0_114 = arith.constant 0 : index
    %170 = vector.load %arg1[%c28, %c0_114] : memref<32x2xf32, #tpu.memory_space<vmem>>, vector<1x2xf32>
    %c28_115 = arith.constant 28 : index
    %c0_116 = arith.constant 0 : index
    %c0_117 = arith.constant 0 : index
    %171 = vector.load %arg2[%c28_115, %c0_116, %c0_117] : memref<33x32x2xf32, #tpu.memory_space<vmem>>, vector<1x32x2xf32>
    %172 = vector.shape_cast %171 : vector<1x32x2xf32> to vector<32x2xf32>
    %173 = vector.broadcast %170 : vector<1x2xf32> to vector<32x2xf32>
    %174 = arith.mulf %173, %172 : vector<32x2xf32>
    %175 = arith.addf %169, %174 : vector<32x2xf32>
    %c29 = arith.constant 29 : index
    %c0_118 = arith.constant 0 : index
    %176 = vector.load %arg1[%c29, %c0_118] : memref<32x2xf32, #tpu.memory_space<vmem>>, vector<1x2xf32>
    %c29_119 = arith.constant 29 : index
    %c0_120 = arith.constant 0 : index
    %c0_121 = arith.constant 0 : index
    %177 = vector.load %arg2[%c29_119, %c0_120, %c0_121] : memref<33x32x2xf32, #tpu.memory_space<vmem>>, vector<1x32x2xf32>
    %178 = vector.shape_cast %177 : vector<1x32x2xf32> to vector<32x2xf32>
    %179 = vector.broadcast %176 : vector<1x2xf32> to vector<32x2xf32>
    %180 = arith.mulf %179, %178 : vector<32x2xf32>
    %181 = arith.addf %175, %180 : vector<32x2xf32>
    %c30 = arith.constant 30 : index
    %c0_122 = arith.constant 0 : index
    %182 = vector.load %arg1[%c30, %c0_122] : memref<32x2xf32, #tpu.memory_space<vmem>>, vector<1x2xf32>
    %c30_123 = arith.constant 30 : index
    %c0_124 = arith.constant 0 : index
    %c0_125 = arith.constant 0 : index
    %183 = vector.load %arg2[%c30_123, %c0_124, %c0_125] : memref<33x32x2xf32, #tpu.memory_space<vmem>>, vector<1x32x2xf32>
    %184 = vector.shape_cast %183 : vector<1x32x2xf32> to vector<32x2xf32>
    %185 = vector.broadcast %182 : vector<1x2xf32> to vector<32x2xf32>
    %186 = arith.mulf %185, %184 : vector<32x2xf32>
    %187 = arith.addf %181, %186 : vector<32x2xf32>
    %c31 = arith.constant 31 : index
    %c0_126 = arith.constant 0 : index
    %188 = vector.load %arg1[%c31, %c0_126] : memref<32x2xf32, #tpu.memory_space<vmem>>, vector<1x2xf32>
    %c31_127 = arith.constant 31 : index
    %c0_128 = arith.constant 0 : index
    %c0_129 = arith.constant 0 : index
    %189 = vector.load %arg2[%c31_127, %c0_128, %c0_129] : memref<33x32x2xf32, #tpu.memory_space<vmem>>, vector<1x32x2xf32>
    %190 = vector.shape_cast %189 : vector<1x32x2xf32> to vector<32x2xf32>
    %191 = vector.broadcast %188 : vector<1x2xf32> to vector<32x2xf32>
    %192 = arith.mulf %191, %190 : vector<32x2xf32>
    %193 = arith.addf %187, %192 : vector<32x2xf32>
    %194 = arith.negf %193 : vector<32x2xf32>
    %195 = math.exp %194 : vector<32x2xf32>
    %cst = arith.constant 1.000000e+00 : f32
    %196 = vector.broadcast %cst : f32 to vector<32x2xf32>
    %197 = arith.addf %196, %195 : vector<32x2xf32>
    %198 = arith.divf %196, %197 : vector<32x2xf32>
    %199 = arith.mulf %193, %198 : vector<32x2xf32>
    %c0_130 = arith.constant 0 : index
    %c0_131 = arith.constant 0 : index
    %200 = vector.load %arg6[%c0_130, %c0_131] : memref<32x2xf32, #tpu.memory_space<vmem>>, vector<32x2xf32>
    tpu.vector_store %arg6[%c0_130, %c0_131], %199 {strides = array<i32>} : memref<32x2xf32, #tpu.memory_space<vmem>>, vector<32x2xf32>,
    %c32_132 = arith.constant 32 : index
    %c0_133 = arith.constant 0 : index
    %c0_134 = arith.constant 0 : index
    %201 = vector.load %arg3[%c32_132, %c0_133, %c0_134] : memref<33x32x2xf32, #tpu.memory_space<vmem>>, vector<1x32x2xf32>
    %202 = vector.shape_cast %201 : vector<1x32x2xf32> to vector<32x2xf32>
    %c0_135 = arith.constant 0 : index
    %c0_136 = arith.constant 0 : index
    %203 = vector.load %arg6[%c0_135, %c0_136] : memref<32x2xf32, #tpu.memory_space<vmem>>, vector<1x2xf32>
    %c0_137 = arith.constant 0 : index
    %c0_138 = arith.constant 0 : index
    %c0_139 = arith.constant 0 : index
    %204 = vector.load %arg3[%c0_137, %c0_138, %c0_139] : memref<33x32x2xf32, #tpu.memory_space<vmem>>, vector<1x32x2xf32>
    %205 = vector.shape_cast %204 : vector<1x32x2xf32> to vector<32x2xf32>
    %206 = vector.broadcast %203 : vector<1x2xf32> to vector<32x2xf32>
    %207 = arith.mulf %206, %205 : vector<32x2xf32>
    %208 = arith.addf %202, %207 : vector<32x2xf32>
    %c1_140 = arith.constant 1 : index
    %c0_141 = arith.constant 0 : index
    %209 = vector.load %arg6[%c1_140, %c0_141] : memref<32x2xf32, #tpu.memory_space<vmem>>, vector<1x2xf32>
    %c1_142 = arith.constant 1 : index
    %c0_143 = arith.constant 0 : index
    %c0_144 = arith.constant 0 : index
    %210 = vector.load %arg3[%c1_142, %c0_143, %c0_144] : memref<33x32x2xf32, #tpu.memory_space<vmem>>, vector<1x32x2xf32>
    %211 = vector.shape_cast %210 : vector<1x32x2xf32> to vector<32x2xf32>
    %212 = vector.broadcast %209 : vector<1x2xf32> to vector<32x2xf32>
    %213 = arith.mulf %212, %211 : vector<32x2xf32>
    %214 = arith.addf %208, %213 : vector<32x2xf32>
    %c2_145 = arith.constant 2 : index
    %c0_146 = arith.constant 0 : index
    %215 = vector.load %arg6[%c2_145, %c0_146] : memref<32x2xf32, #tpu.memory_space<vmem>>, vector<1x2xf32>
    %c2_147 = arith.constant 2 : index
    %c0_148 = arith.constant 0 : index
    %c0_149 = arith.constant 0 : index
    %216 = vector.load %arg3[%c2_147, %c0_148, %c0_149] : memref<33x32x2xf32, #tpu.memory_space<vmem>>, vector<1x32x2xf32>
    %217 = vector.shape_cast %216 : vector<1x32x2xf32> to vector<32x2xf32>
    %218 = vector.broadcast %215 : vector<1x2xf32> to vector<32x2xf32>
    %219 = arith.mulf %218, %217 : vector<32x2xf32>
    %220 = arith.addf %214, %219 : vector<32x2xf32>
    %c3_150 = arith.constant 3 : index
    %c0_151 = arith.constant 0 : index
    %221 = vector.load %arg6[%c3_150, %c0_151] : memref<32x2xf32, #tpu.memory_space<vmem>>, vector<1x2xf32>
    %c3_152 = arith.constant 3 : index
    %c0_153 = arith.constant 0 : index
    %c0_154 = arith.constant 0 : index
    %222 = vector.load %arg3[%c3_152, %c0_153, %c0_154] : memref<33x32x2xf32, #tpu.memory_space<vmem>>, vector<1x32x2xf32>
    %223 = vector.shape_cast %222 : vector<1x32x2xf32> to vector<32x2xf32>
    %224 = vector.broadcast %221 : vector<1x2xf32> to vector<32x2xf32>
    %225 = arith.mulf %224, %223 : vector<32x2xf32>
    %226 = arith.addf %220, %225 : vector<32x2xf32>
    %c4_155 = arith.constant 4 : index
    %c0_156 = arith.constant 0 : index
    %227 = vector.load %arg6[%c4_155, %c0_156] : memref<32x2xf32, #tpu.memory_space<vmem>>, vector<1x2xf32>
    %c4_157 = arith.constant 4 : index
    %c0_158 = arith.constant 0 : index
    %c0_159 = arith.constant 0 : index
    %228 = vector.load %arg3[%c4_157, %c0_158, %c0_159] : memref<33x32x2xf32, #tpu.memory_space<vmem>>, vector<1x32x2xf32>
    %229 = vector.shape_cast %228 : vector<1x32x2xf32> to vector<32x2xf32>
    %230 = vector.broadcast %227 : vector<1x2xf32> to vector<32x2xf32>
    %231 = arith.mulf %230, %229 : vector<32x2xf32>
    %232 = arith.addf %226, %231 : vector<32x2xf32>
    %c5_160 = arith.constant 5 : index
    %c0_161 = arith.constant 0 : index
    %233 = vector.load %arg6[%c5_160, %c0_161] : memref<32x2xf32, #tpu.memory_space<vmem>>, vector<1x2xf32>
    %c5_162 = arith.constant 5 : index
    %c0_163 = arith.constant 0 : index
    %c0_164 = arith.constant 0 : index
    %234 = vector.load %arg3[%c5_162, %c0_163, %c0_164] : memref<33x32x2xf32, #tpu.memory_space<vmem>>, vector<1x32x2xf32>
    %235 = vector.shape_cast %234 : vector<1x32x2xf32> to vector<32x2xf32>
    %236 = vector.broadcast %233 : vector<1x2xf32> to vector<32x2xf32>
    %237 = arith.mulf %236, %235 : vector<32x2xf32>
    %238 = arith.addf %232, %237 : vector<32x2xf32>
    %c6_165 = arith.constant 6 : index
    %c0_166 = arith.constant 0 : index
    %239 = vector.load %arg6[%c6_165, %c0_166] : memref<32x2xf32, #tpu.memory_space<vmem>>, vector<1x2xf32>
    %c6_167 = arith.constant 6 : index
    %c0_168 = arith.constant 0 : index
    %c0_169 = arith.constant 0 : index
    %240 = vector.load %arg3[%c6_167, %c0_168, %c0_169] : memref<33x32x2xf32, #tpu.memory_space<vmem>>, vector<1x32x2xf32>
    %241 = vector.shape_cast %240 : vector<1x32x2xf32> to vector<32x2xf32>
    %242 = vector.broadcast %239 : vector<1x2xf32> to vector<32x2xf32>
    %243 = arith.mulf %242, %241 : vector<32x2xf32>
    %244 = arith.addf %238, %243 : vector<32x2xf32>
    %c7_170 = arith.constant 7 : index
    %c0_171 = arith.constant 0 : index
    %245 = vector.load %arg6[%c7_170, %c0_171] : memref<32x2xf32, #tpu.memory_space<vmem>>, vector<1x2xf32>
    %c7_172 = arith.constant 7 : index
    %c0_173 = arith.constant 0 : index
    %c0_174 = arith.constant 0 : index
    %246 = vector.load %arg3[%c7_172, %c0_173, %c0_174] : memref<33x32x2xf32, #tpu.memory_space<vmem>>, vector<1x32x2xf32>
    %247 = vector.shape_cast %246 : vector<1x32x2xf32> to vector<32x2xf32>
    %248 = vector.broadcast %245 : vector<1x2xf32> to vector<32x2xf32>
    %249 = arith.mulf %248, %247 : vector<32x2xf32>
    %250 = arith.addf %244, %249 : vector<32x2xf32>
    %c8_175 = arith.constant 8 : index
    %c0_176 = arith.constant 0 : index
    %251 = vector.load %arg6[%c8_175, %c0_176] : memref<32x2xf32, #tpu.memory_space<vmem>>, vector<1x2xf32>
    %c8_177 = arith.constant 8 : index
    %c0_178 = arith.constant 0 : index
    %c0_179 = arith.constant 0 : index
    %252 = vector.load %arg3[%c8_177, %c0_178, %c0_179] : memref<33x32x2xf32, #tpu.memory_space<vmem>>, vector<1x32x2xf32>
    %253 = vector.shape_cast %252 : vector<1x32x2xf32> to vector<32x2xf32>
    %254 = vector.broadcast %251 : vector<1x2xf32> to vector<32x2xf32>
    %255 = arith.mulf %254, %253 : vector<32x2xf32>
    %256 = arith.addf %250, %255 : vector<32x2xf32>
    %c9_180 = arith.constant 9 : index
    %c0_181 = arith.constant 0 : index
    %257 = vector.load %arg6[%c9_180, %c0_181] : memref<32x2xf32, #tpu.memory_space<vmem>>, vector<1x2xf32>
    %c9_182 = arith.constant 9 : index
    %c0_183 = arith.constant 0 : index
    %c0_184 = arith.constant 0 : index
    %258 = vector.load %arg3[%c9_182, %c0_183, %c0_184] : memref<33x32x2xf32, #tpu.memory_space<vmem>>, vector<1x32x2xf32>
    %259 = vector.shape_cast %258 : vector<1x32x2xf32> to vector<32x2xf32>
    %260 = vector.broadcast %257 : vector<1x2xf32> to vector<32x2xf32>
    %261 = arith.mulf %260, %259 : vector<32x2xf32>
    %262 = arith.addf %256, %261 : vector<32x2xf32>
    %c10_185 = arith.constant 10 : index
    %c0_186 = arith.constant 0 : index
    %263 = vector.load %arg6[%c10_185, %c0_186] : memref<32x2xf32, #tpu.memory_space<vmem>>, vector<1x2xf32>
    %c10_187 = arith.constant 10 : index
    %c0_188 = arith.constant 0 : index
    %c0_189 = arith.constant 0 : index
    %264 = vector.load %arg3[%c10_187, %c0_188, %c0_189] : memref<33x32x2xf32, #tpu.memory_space<vmem>>, vector<1x32x2xf32>
    %265 = vector.shape_cast %264 : vector<1x32x2xf32> to vector<32x2xf32>
    %266 = vector.broadcast %263 : vector<1x2xf32> to vector<32x2xf32>
    %267 = arith.mulf %266, %265 : vector<32x2xf32>
    %268 = arith.addf %262, %267 : vector<32x2xf32>
    %c11_190 = arith.constant 11 : index
    %c0_191 = arith.constant 0 : index
    %269 = vector.load %arg6[%c11_190, %c0_191] : memref<32x2xf32, #tpu.memory_space<vmem>>, vector<1x2xf32>
    %c11_192 = arith.constant 11 : index
    %c0_193 = arith.constant 0 : index
    %c0_194 = arith.constant 0 : index
    %270 = vector.load %arg3[%c11_192, %c0_193, %c0_194] : memref<33x32x2xf32, #tpu.memory_space<vmem>>, vector<1x32x2xf32>
    %271 = vector.shape_cast %270 : vector<1x32x2xf32> to vector<32x2xf32>
    %272 = vector.broadcast %269 : vector<1x2xf32> to vector<32x2xf32>
    %273 = arith.mulf %272, %271 : vector<32x2xf32>
    %274 = arith.addf %268, %273 : vector<32x2xf32>
    %c12_195 = arith.constant 12 : index
    %c0_196 = arith.constant 0 : index
    %275 = vector.load %arg6[%c12_195, %c0_196] : memref<32x2xf32, #tpu.memory_space<vmem>>, vector<1x2xf32>
    %c12_197 = arith.constant 12 : index
    %c0_198 = arith.constant 0 : index
    %c0_199 = arith.constant 0 : index
    %276 = vector.load %arg3[%c12_197, %c0_198, %c0_199] : memref<33x32x2xf32, #tpu.memory_space<vmem>>, vector<1x32x2xf32>
    %277 = vector.shape_cast %276 : vector<1x32x2xf32> to vector<32x2xf32>
    %278 = vector.broadcast %275 : vector<1x2xf32> to vector<32x2xf32>
    %279 = arith.mulf %278, %277 : vector<32x2xf32>
    %280 = arith.addf %274, %279 : vector<32x2xf32>
    %c13_200 = arith.constant 13 : index
    %c0_201 = arith.constant 0 : index
    %281 = vector.load %arg6[%c13_200, %c0_201] : memref<32x2xf32, #tpu.memory_space<vmem>>, vector<1x2xf32>
    %c13_202 = arith.constant 13 : index
    %c0_203 = arith.constant 0 : index
    %c0_204 = arith.constant 0 : index
    %282 = vector.load %arg3[%c13_202, %c0_203, %c0_204] : memref<33x32x2xf32, #tpu.memory_space<vmem>>, vector<1x32x2xf32>
    %283 = vector.shape_cast %282 : vector<1x32x2xf32> to vector<32x2xf32>
    %284 = vector.broadcast %281 : vector<1x2xf32> to vector<32x2xf32>
    %285 = arith.mulf %284, %283 : vector<32x2xf32>
    %286 = arith.addf %280, %285 : vector<32x2xf32>
    %c14_205 = arith.constant 14 : index
    %c0_206 = arith.constant 0 : index
    %287 = vector.load %arg6[%c14_205, %c0_206] : memref<32x2xf32, #tpu.memory_space<vmem>>, vector<1x2xf32>
    %c14_207 = arith.constant 14 : index
    %c0_208 = arith.constant 0 : index
    %c0_209 = arith.constant 0 : index
    %288 = vector.load %arg3[%c14_207, %c0_208, %c0_209] : memref<33x32x2xf32, #tpu.memory_space<vmem>>, vector<1x32x2xf32>
    %289 = vector.shape_cast %288 : vector<1x32x2xf32> to vector<32x2xf32>
    %290 = vector.broadcast %287 : vector<1x2xf32> to vector<32x2xf32>
    %291 = arith.mulf %290, %289 : vector<32x2xf32>
    %292 = arith.addf %286, %291 : vector<32x2xf32>
    %c15_210 = arith.constant 15 : index
    %c0_211 = arith.constant 0 : index
    %293 = vector.load %arg6[%c15_210, %c0_211] : memref<32x2xf32, #tpu.memory_space<vmem>>, vector<1x2xf32>
    %c15_212 = arith.constant 15 : index
    %c0_213 = arith.constant 0 : index
    %c0_214 = arith.constant 0 : index
    %294 = vector.load %arg3[%c15_212, %c0_213, %c0_214] : memref<33x32x2xf32, #tpu.memory_space<vmem>>, vector<1x32x2xf32>
    %295 = vector.shape_cast %294 : vector<1x32x2xf32> to vector<32x2xf32>
    %296 = vector.broadcast %293 : vector<1x2xf32> to vector<32x2xf32>
    %297 = arith.mulf %296, %295 : vector<32x2xf32>
    %298 = arith.addf %292, %297 : vector<32x2xf32>
    %c16_215 = arith.constant 16 : index
    %c0_216 = arith.constant 0 : index
    %299 = vector.load %arg6[%c16_215, %c0_216] : memref<32x2xf32, #tpu.memory_space<vmem>>, vector<1x2xf32>
    %c16_217 = arith.constant 16 : index
    %c0_218 = arith.constant 0 : index
    %c0_219 = arith.constant 0 : index
    %300 = vector.load %arg3[%c16_217, %c0_218, %c0_219] : memref<33x32x2xf32, #tpu.memory_space<vmem>>, vector<1x32x2xf32>
    %301 = vector.shape_cast %300 : vector<1x32x2xf32> to vector<32x2xf32>
    %302 = vector.broadcast %299 : vector<1x2xf32> to vector<32x2xf32>
    %303 = arith.mulf %302, %301 : vector<32x2xf32>
    %304 = arith.addf %298, %303 : vector<32x2xf32>
    %c17_220 = arith.constant 17 : index
    %c0_221 = arith.constant 0 : index
    %305 = vector.load %arg6[%c17_220, %c0_221] : memref<32x2xf32, #tpu.memory_space<vmem>>, vector<1x2xf32>
    %c17_222 = arith.constant 17 : index
    %c0_223 = arith.constant 0 : index
    %c0_224 = arith.constant 0 : index
    %306 = vector.load %arg3[%c17_222, %c0_223, %c0_224] : memref<33x32x2xf32, #tpu.memory_space<vmem>>, vector<1x32x2xf32>
    %307 = vector.shape_cast %306 : vector<1x32x2xf32> to vector<32x2xf32>
    %308 = vector.broadcast %305 : vector<1x2xf32> to vector<32x2xf32>
    %309 = arith.mulf %308, %307 : vector<32x2xf32>
    %310 = arith.addf %304, %309 : vector<32x2xf32>
    %c18_225 = arith.constant 18 : index
    %c0_226 = arith.constant 0 : index
    %311 = vector.load %arg6[%c18_225, %c0_226] : memref<32x2xf32, #tpu.memory_space<vmem>>, vector<1x2xf32>
    %c18_227 = arith.constant 18 : index
    %c0_228 = arith.constant 0 : index
    %c0_229 = arith.constant 0 : index
    %312 = vector.load %arg3[%c18_227, %c0_228, %c0_229] : memref<33x32x2xf32, #tpu.memory_space<vmem>>, vector<1x32x2xf32>
    %313 = vector.shape_cast %312 : vector<1x32x2xf32> to vector<32x2xf32>
    %314 = vector.broadcast %311 : vector<1x2xf32> to vector<32x2xf32>
    %315 = arith.mulf %314, %313 : vector<32x2xf32>
    %316 = arith.addf %310, %315 : vector<32x2xf32>
    %c19_230 = arith.constant 19 : index
    %c0_231 = arith.constant 0 : index
    %317 = vector.load %arg6[%c19_230, %c0_231] : memref<32x2xf32, #tpu.memory_space<vmem>>, vector<1x2xf32>
    %c19_232 = arith.constant 19 : index
    %c0_233 = arith.constant 0 : index
    %c0_234 = arith.constant 0 : index
    %318 = vector.load %arg3[%c19_232, %c0_233, %c0_234] : memref<33x32x2xf32, #tpu.memory_space<vmem>>, vector<1x32x2xf32>
    %319 = vector.shape_cast %318 : vector<1x32x2xf32> to vector<32x2xf32>
    %320 = vector.broadcast %317 : vector<1x2xf32> to vector<32x2xf32>
    %321 = arith.mulf %320, %319 : vector<32x2xf32>
    %322 = arith.addf %316, %321 : vector<32x2xf32>
    %c20_235 = arith.constant 20 : index
    %c0_236 = arith.constant 0 : index
    %323 = vector.load %arg6[%c20_235, %c0_236] : memref<32x2xf32, #tpu.memory_space<vmem>>, vector<1x2xf32>
    %c20_237 = arith.constant 20 : index
    %c0_238 = arith.constant 0 : index
    %c0_239 = arith.constant 0 : index
    %324 = vector.load %arg3[%c20_237, %c0_238, %c0_239] : memref<33x32x2xf32, #tpu.memory_space<vmem>>, vector<1x32x2xf32>
    %325 = vector.shape_cast %324 : vector<1x32x2xf32> to vector<32x2xf32>
    %326 = vector.broadcast %323 : vector<1x2xf32> to vector<32x2xf32>
    %327 = arith.mulf %326, %325 : vector<32x2xf32>
    %328 = arith.addf %322, %327 : vector<32x2xf32>
    %c21_240 = arith.constant 21 : index
    %c0_241 = arith.constant 0 : index
    %329 = vector.load %arg6[%c21_240, %c0_241] : memref<32x2xf32, #tpu.memory_space<vmem>>, vector<1x2xf32>
    %c21_242 = arith.constant 21 : index
    %c0_243 = arith.constant 0 : index
    %c0_244 = arith.constant 0 : index
    %330 = vector.load %arg3[%c21_242, %c0_243, %c0_244] : memref<33x32x2xf32, #tpu.memory_space<vmem>>, vector<1x32x2xf32>
    %331 = vector.shape_cast %330 : vector<1x32x2xf32> to vector<32x2xf32>
    %332 = vector.broadcast %329 : vector<1x2xf32> to vector<32x2xf32>
    %333 = arith.mulf %332, %331 : vector<32x2xf32>
    %334 = arith.addf %328, %333 : vector<32x2xf32>
    %c22_245 = arith.constant 22 : index
    %c0_246 = arith.constant 0 : index
    %335 = vector.load %arg6[%c22_245, %c0_246] : memref<32x2xf32, #tpu.memory_space<vmem>>, vector<1x2xf32>
    %c22_247 = arith.constant 22 : index
    %c0_248 = arith.constant 0 : index
    %c0_249 = arith.constant 0 : index
    %336 = vector.load %arg3[%c22_247, %c0_248, %c0_249] : memref<33x32x2xf32, #tpu.memory_space<vmem>>, vector<1x32x2xf32>
    %337 = vector.shape_cast %336 : vector<1x32x2xf32> to vector<32x2xf32>
    %338 = vector.broadcast %335 : vector<1x2xf32> to vector<32x2xf32>
    %339 = arith.mulf %338, %337 : vector<32x2xf32>
    %340 = arith.addf %334, %339 : vector<32x2xf32>
    %c23_250 = arith.constant 23 : index
    %c0_251 = arith.constant 0 : index
    %341 = vector.load %arg6[%c23_250, %c0_251] : memref<32x2xf32, #tpu.memory_space<vmem>>, vector<1x2xf32>
    %c23_252 = arith.constant 23 : index
    %c0_253 = arith.constant 0 : index
    %c0_254 = arith.constant 0 : index
    %342 = vector.load %arg3[%c23_252, %c0_253, %c0_254] : memref<33x32x2xf32, #tpu.memory_space<vmem>>, vector<1x32x2xf32>
    %343 = vector.shape_cast %342 : vector<1x32x2xf32> to vector<32x2xf32>
    %344 = vector.broadcast %341 : vector<1x2xf32> to vector<32x2xf32>
    %345 = arith.mulf %344, %343 : vector<32x2xf32>
    %346 = arith.addf %340, %345 : vector<32x2xf32>
    %c24_255 = arith.constant 24 : index
    %c0_256 = arith.constant 0 : index
    %347 = vector.load %arg6[%c24_255, %c0_256] : memref<32x2xf32, #tpu.memory_space<vmem>>, vector<1x2xf32>
    %c24_257 = arith.constant 24 : index
    %c0_258 = arith.constant 0 : index
    %c0_259 = arith.constant 0 : index
    %348 = vector.load %arg3[%c24_257, %c0_258, %c0_259] : memref<33x32x2xf32, #tpu.memory_space<vmem>>, vector<1x32x2xf32>
    %349 = vector.shape_cast %348 : vector<1x32x2xf32> to vector<32x2xf32>
    %350 = vector.broadcast %347 : vector<1x2xf32> to vector<32x2xf32>
    %351 = arith.mulf %350, %349 : vector<32x2xf32>
    %352 = arith.addf %346, %351 : vector<32x2xf32>
    %c25_260 = arith.constant 25 : index
    %c0_261 = arith.constant 0 : index
    %353 = vector.load %arg6[%c25_260, %c0_261] : memref<32x2xf32, #tpu.memory_space<vmem>>, vector<1x2xf32>
    %c25_262 = arith.constant 25 : index
    %c0_263 = arith.constant 0 : index
    %c0_264 = arith.constant 0 : index
    %354 = vector.load %arg3[%c25_262, %c0_263, %c0_264] : memref<33x32x2xf32, #tpu.memory_space<vmem>>, vector<1x32x2xf32>
    %355 = vector.shape_cast %354 : vector<1x32x2xf32> to vector<32x2xf32>
    %356 = vector.broadcast %353 : vector<1x2xf32> to vector<32x2xf32>
    %357 = arith.mulf %356, %355 : vector<32x2xf32>
    %358 = arith.addf %352, %357 : vector<32x2xf32>
    %c26_265 = arith.constant 26 : index
    %c0_266 = arith.constant 0 : index
    %359 = vector.load %arg6[%c26_265, %c0_266] : memref<32x2xf32, #tpu.memory_space<vmem>>, vector<1x2xf32>
    %c26_267 = arith.constant 26 : index
    %c0_268 = arith.constant 0 : index
    %c0_269 = arith.constant 0 : index
    %360 = vector.load %arg3[%c26_267, %c0_268, %c0_269] : memref<33x32x2xf32, #tpu.memory_space<vmem>>, vector<1x32x2xf32>
    %361 = vector.shape_cast %360 : vector<1x32x2xf32> to vector<32x2xf32>
    %362 = vector.broadcast %359 : vector<1x2xf32> to vector<32x2xf32>
    %363 = arith.mulf %362, %361 : vector<32x2xf32>
    %364 = arith.addf %358, %363 : vector<32x2xf32>
    %c27_270 = arith.constant 27 : index
    %c0_271 = arith.constant 0 : index
    %365 = vector.load %arg6[%c27_270, %c0_271] : memref<32x2xf32, #tpu.memory_space<vmem>>, vector<1x2xf32>
    %c27_272 = arith.constant 27 : index
    %c0_273 = arith.constant 0 : index
    %c0_274 = arith.constant 0 : index
    %366 = vector.load %arg3[%c27_272, %c0_273, %c0_274] : memref<33x32x2xf32, #tpu.memory_space<vmem>>, vector<1x32x2xf32>
    %367 = vector.shape_cast %366 : vector<1x32x2xf32> to vector<32x2xf32>
    %368 = vector.broadcast %365 : vector<1x2xf32> to vector<32x2xf32>
    %369 = arith.mulf %368, %367 : vector<32x2xf32>
    %370 = arith.addf %364, %369 : vector<32x2xf32>
    %c28_275 = arith.constant 28 : index
    %c0_276 = arith.constant 0 : index
    %371 = vector.load %arg6[%c28_275, %c0_276] : memref<32x2xf32, #tpu.memory_space<vmem>>, vector<1x2xf32>
    %c28_277 = arith.constant 28 : index
    %c0_278 = arith.constant 0 : index
    %c0_279 = arith.constant 0 : index
    %372 = vector.load %arg3[%c28_277, %c0_278, %c0_279] : memref<33x32x2xf32, #tpu.memory_space<vmem>>, vector<1x32x2xf32>
    %373 = vector.shape_cast %372 : vector<1x32x2xf32> to vector<32x2xf32>
    %374 = vector.broadcast %371 : vector<1x2xf32> to vector<32x2xf32>
    %375 = arith.mulf %374, %373 : vector<32x2xf32>
    %376 = arith.addf %370, %375 : vector<32x2xf32>
    %c29_280 = arith.constant 29 : index
    %c0_281 = arith.constant 0 : index
    %377 = vector.load %arg6[%c29_280, %c0_281] : memref<32x2xf32, #tpu.memory_space<vmem>>, vector<1x2xf32>
    %c29_282 = arith.constant 29 : index
    %c0_283 = arith.constant 0 : index
    %c0_284 = arith.constant 0 : index
    %378 = vector.load %arg3[%c29_282, %c0_283, %c0_284] : memref<33x32x2xf32, #tpu.memory_space<vmem>>, vector<1x32x2xf32>
    %379 = vector.shape_cast %378 : vector<1x32x2xf32> to vector<32x2xf32>
    %380 = vector.broadcast %377 : vector<1x2xf32> to vector<32x2xf32>
    %381 = arith.mulf %380, %379 : vector<32x2xf32>
    %382 = arith.addf %376, %381 : vector<32x2xf32>
    %c30_285 = arith.constant 30 : index
    %c0_286 = arith.constant 0 : index
    %383 = vector.load %arg6[%c30_285, %c0_286] : memref<32x2xf32, #tpu.memory_space<vmem>>, vector<1x2xf32>
    %c30_287 = arith.constant 30 : index
    %c0_288 = arith.constant 0 : index
    %c0_289 = arith.constant 0 : index
    %384 = vector.load %arg3[%c30_287, %c0_288, %c0_289] : memref<33x32x2xf32, #tpu.memory_space<vmem>>, vector<1x32x2xf32>
    %385 = vector.shape_cast %384 : vector<1x32x2xf32> to vector<32x2xf32>
    %386 = vector.broadcast %383 : vector<1x2xf32> to vector<32x2xf32>
    %387 = arith.mulf %386, %385 : vector<32x2xf32>
    %388 = arith.addf %382, %387 : vector<32x2xf32>
    %c31_290 = arith.constant 31 : index
    %c0_291 = arith.constant 0 : index
    %389 = vector.load %arg6[%c31_290, %c0_291] : memref<32x2xf32, #tpu.memory_space<vmem>>, vector<1x2xf32>
    %c31_292 = arith.constant 31 : index
    %c0_293 = arith.constant 0 : index
    %c0_294 = arith.constant 0 : index
    %390 = vector.load %arg3[%c31_292, %c0_293, %c0_294] : memref<33x32x2xf32, #tpu.memory_space<vmem>>, vector<1x32x2xf32>
    %391 = vector.shape_cast %390 : vector<1x32x2xf32> to vector<32x2xf32>
    %392 = vector.broadcast %389 : vector<1x2xf32> to vector<32x2xf32>
    %393 = arith.mulf %392, %391 : vector<32x2xf32>
    %394 = arith.addf %388, %393 : vector<32x2xf32>
    %395 = arith.negf %394 : vector<32x2xf32>
    %396 = math.exp %395 : vector<32x2xf32>
    %cst_295 = arith.constant 1.000000e+00 : f32
    %397 = vector.broadcast %cst_295 : f32 to vector<32x2xf32>
    %398 = arith.addf %397, %396 : vector<32x2xf32>
    %399 = arith.divf %397, %398 : vector<32x2xf32>
    %400 = arith.mulf %394, %399 : vector<32x2xf32>
    %c0_296 = arith.constant 0 : index
    %c0_297 = arith.constant 0 : index
    %401 = vector.load %arg7[%c0_296, %c0_297] : memref<32x2xf32, #tpu.memory_space<vmem>>, vector<32x2xf32>
    tpu.vector_store %arg7[%c0_296, %c0_297], %400 {strides = array<i32>} : memref<32x2xf32, #tpu.memory_space<vmem>>, vector<32x2xf32>,
    %c32_298 = arith.constant 32 : index
    %c0_299 = arith.constant 0 : index
    %c0_300 = arith.constant 0 : index
    %402 = vector.load %arg4[%c32_298, %c0_299, %c0_300] : memref<33x7x2xf32, #tpu.memory_space<vmem>>, vector<1x7x2xf32>
    %403 = vector.shape_cast %402 : vector<1x7x2xf32> to vector<7x2xf32>
    %c0_301 = arith.constant 0 : index
    %c0_302 = arith.constant 0 : index
    %404 = vector.load %arg7[%c0_301, %c0_302] : memref<32x2xf32, #tpu.memory_space<vmem>>, vector<1x2xf32>
    %c0_303 = arith.constant 0 : index
    %c0_304 = arith.constant 0 : index
    %c0_305 = arith.constant 0 : index
    %405 = vector.load %arg4[%c0_303, %c0_304, %c0_305] : memref<33x7x2xf32, #tpu.memory_space<vmem>>, vector<1x7x2xf32>
    %406 = vector.shape_cast %405 : vector<1x7x2xf32> to vector<7x2xf32>
    %407 = vector.broadcast %404 : vector<1x2xf32> to vector<7x2xf32>
    %408 = arith.mulf %407, %406 : vector<7x2xf32>
    %409 = arith.addf %403, %408 : vector<7x2xf32>
    %c1_306 = arith.constant 1 : index
    %c0_307 = arith.constant 0 : index
    %410 = vector.load %arg7[%c1_306, %c0_307] : memref<32x2xf32, #tpu.memory_space<vmem>>, vector<1x2xf32>
    %c1_308 = arith.constant 1 : index
    %c0_309 = arith.constant 0 : index
    %c0_310 = arith.constant 0 : index
    %411 = vector.load %arg4[%c1_308, %c0_309, %c0_310] : memref<33x7x2xf32, #tpu.memory_space<vmem>>, vector<1x7x2xf32>
    %412 = vector.shape_cast %411 : vector<1x7x2xf32> to vector<7x2xf32>
    %413 = vector.broadcast %410 : vector<1x2xf32> to vector<7x2xf32>
    %414 = arith.mulf %413, %412 : vector<7x2xf32>
    %415 = arith.addf %409, %414 : vector<7x2xf32>
    %c2_311 = arith.constant 2 : index
    %c0_312 = arith.constant 0 : index
    %416 = vector.load %arg7[%c2_311, %c0_312] : memref<32x2xf32, #tpu.memory_space<vmem>>, vector<1x2xf32>
    %c2_313 = arith.constant 2 : index
    %c0_314 = arith.constant 0 : index
    %c0_315 = arith.constant 0 : index
    %417 = vector.load %arg4[%c2_313, %c0_314, %c0_315] : memref<33x7x2xf32, #tpu.memory_space<vmem>>, vector<1x7x2xf32>
    %418 = vector.shape_cast %417 : vector<1x7x2xf32> to vector<7x2xf32>
    %419 = vector.broadcast %416 : vector<1x2xf32> to vector<7x2xf32>
    %420 = arith.mulf %419, %418 : vector<7x2xf32>
    %421 = arith.addf %415, %420 : vector<7x2xf32>
    %c3_316 = arith.constant 3 : index
    %c0_317 = arith.constant 0 : index
    %422 = vector.load %arg7[%c3_316, %c0_317] : memref<32x2xf32, #tpu.memory_space<vmem>>, vector<1x2xf32>
    %c3_318 = arith.constant 3 : index
    %c0_319 = arith.constant 0 : index
    %c0_320 = arith.constant 0 : index
    %423 = vector.load %arg4[%c3_318, %c0_319, %c0_320] : memref<33x7x2xf32, #tpu.memory_space<vmem>>, vector<1x7x2xf32>
    %424 = vector.shape_cast %423 : vector<1x7x2xf32> to vector<7x2xf32>
    %425 = vector.broadcast %422 : vector<1x2xf32> to vector<7x2xf32>
    %426 = arith.mulf %425, %424 : vector<7x2xf32>
    %427 = arith.addf %421, %426 : vector<7x2xf32>
    %c4_321 = arith.constant 4 : index
    %c0_322 = arith.constant 0 : index
    %428 = vector.load %arg7[%c4_321, %c0_322] : memref<32x2xf32, #tpu.memory_space<vmem>>, vector<1x2xf32>
    %c4_323 = arith.constant 4 : index
    %c0_324 = arith.constant 0 : index
    %c0_325 = arith.constant 0 : index
    %429 = vector.load %arg4[%c4_323, %c0_324, %c0_325] : memref<33x7x2xf32, #tpu.memory_space<vmem>>, vector<1x7x2xf32>
    %430 = vector.shape_cast %429 : vector<1x7x2xf32> to vector<7x2xf32>
    %431 = vector.broadcast %428 : vector<1x2xf32> to vector<7x2xf32>
    %432 = arith.mulf %431, %430 : vector<7x2xf32>
    %433 = arith.addf %427, %432 : vector<7x2xf32>
    %c5_326 = arith.constant 5 : index
    %c0_327 = arith.constant 0 : index
    %434 = vector.load %arg7[%c5_326, %c0_327] : memref<32x2xf32, #tpu.memory_space<vmem>>, vector<1x2xf32>
    %c5_328 = arith.constant 5 : index
    %c0_329 = arith.constant 0 : index
    %c0_330 = arith.constant 0 : index
    %435 = vector.load %arg4[%c5_328, %c0_329, %c0_330] : memref<33x7x2xf32, #tpu.memory_space<vmem>>, vector<1x7x2xf32>
    %436 = vector.shape_cast %435 : vector<1x7x2xf32> to vector<7x2xf32>
    %437 = vector.broadcast %434 : vector<1x2xf32> to vector<7x2xf32>
    %438 = arith.mulf %437, %436 : vector<7x2xf32>
    %439 = arith.addf %433, %438 : vector<7x2xf32>
    %c6_331 = arith.constant 6 : index
    %c0_332 = arith.constant 0 : index
    %440 = vector.load %arg7[%c6_331, %c0_332] : memref<32x2xf32, #tpu.memory_space<vmem>>, vector<1x2xf32>
    %c6_333 = arith.constant 6 : index
    %c0_334 = arith.constant 0 : index
    %c0_335 = arith.constant 0 : index
    %441 = vector.load %arg4[%c6_333, %c0_334, %c0_335] : memref<33x7x2xf32, #tpu.memory_space<vmem>>, vector<1x7x2xf32>
    %442 = vector.shape_cast %441 : vector<1x7x2xf32> to vector<7x2xf32>
    %443 = vector.broadcast %440 : vector<1x2xf32> to vector<7x2xf32>
    %444 = arith.mulf %443, %442 : vector<7x2xf32>
    %445 = arith.addf %439, %444 : vector<7x2xf32>
    %c7_336 = arith.constant 7 : index
    %c0_337 = arith.constant 0 : index
    %446 = vector.load %arg7[%c7_336, %c0_337] : memref<32x2xf32, #tpu.memory_space<vmem>>, vector<1x2xf32>
    %c7_338 = arith.constant 7 : index
    %c0_339 = arith.constant 0 : index
    %c0_340 = arith.constant 0 : index
    %447 = vector.load %arg4[%c7_338, %c0_339, %c0_340] : memref<33x7x2xf32, #tpu.memory_space<vmem>>, vector<1x7x2xf32>
    %448 = vector.shape_cast %447 : vector<1x7x2xf32> to vector<7x2xf32>
    %449 = vector.broadcast %446 : vector<1x2xf32> to vector<7x2xf32>
    %450 = arith.mulf %449, %448 : vector<7x2xf32>
    %451 = arith.addf %445, %450 : vector<7x2xf32>
    %c8_341 = arith.constant 8 : index
    %c0_342 = arith.constant 0 : index
    %452 = vector.load %arg7[%c8_341, %c0_342] : memref<32x2xf32, #tpu.memory_space<vmem>>, vector<1x2xf32>
    %c8_343 = arith.constant 8 : index
    %c0_344 = arith.constant 0 : index
    %c0_345 = arith.constant 0 : index
    %453 = vector.load %arg4[%c8_343, %c0_344, %c0_345] : memref<33x7x2xf32, #tpu.memory_space<vmem>>, vector<1x7x2xf32>
    %454 = vector.shape_cast %453 : vector<1x7x2xf32> to vector<7x2xf32>
    %455 = vector.broadcast %452 : vector<1x2xf32> to vector<7x2xf32>
    %456 = arith.mulf %455, %454 : vector<7x2xf32>
    %457 = arith.addf %451, %456 : vector<7x2xf32>
    %c9_346 = arith.constant 9 : index
    %c0_347 = arith.constant 0 : index
    %458 = vector.load %arg7[%c9_346, %c0_347] : memref<32x2xf32, #tpu.memory_space<vmem>>, vector<1x2xf32>
    %c9_348 = arith.constant 9 : index
    %c0_349 = arith.constant 0 : index
    %c0_350 = arith.constant 0 : index
    %459 = vector.load %arg4[%c9_348, %c0_349, %c0_350] : memref<33x7x2xf32, #tpu.memory_space<vmem>>, vector<1x7x2xf32>
    %460 = vector.shape_cast %459 : vector<1x7x2xf32> to vector<7x2xf32>
    %461 = vector.broadcast %458 : vector<1x2xf32> to vector<7x2xf32>
    %462 = arith.mulf %461, %460 : vector<7x2xf32>
    %463 = arith.addf %457, %462 : vector<7x2xf32>
    %c10_351 = arith.constant 10 : index
    %c0_352 = arith.constant 0 : index
    %464 = vector.load %arg7[%c10_351, %c0_352] : memref<32x2xf32, #tpu.memory_space<vmem>>, vector<1x2xf32>
    %c10_353 = arith.constant 10 : index
    %c0_354 = arith.constant 0 : index
    %c0_355 = arith.constant 0 : index
    %465 = vector.load %arg4[%c10_353, %c0_354, %c0_355] : memref<33x7x2xf32, #tpu.memory_space<vmem>>, vector<1x7x2xf32>
    %466 = vector.shape_cast %465 : vector<1x7x2xf32> to vector<7x2xf32>
    %467 = vector.broadcast %464 : vector<1x2xf32> to vector<7x2xf32>
    %468 = arith.mulf %467, %466 : vector<7x2xf32>
    %469 = arith.addf %463, %468 : vector<7x2xf32>
    %c11_356 = arith.constant 11 : index
    %c0_357 = arith.constant 0 : index
    %470 = vector.load %arg7[%c11_356, %c0_357] : memref<32x2xf32, #tpu.memory_space<vmem>>, vector<1x2xf32>
    %c11_358 = arith.constant 11 : index
    %c0_359 = arith.constant 0 : index
    %c0_360 = arith.constant 0 : index
    %471 = vector.load %arg4[%c11_358, %c0_359, %c0_360] : memref<33x7x2xf32, #tpu.memory_space<vmem>>, vector<1x7x2xf32>
    %472 = vector.shape_cast %471 : vector<1x7x2xf32> to vector<7x2xf32>
    %473 = vector.broadcast %470 : vector<1x2xf32> to vector<7x2xf32>
    %474 = arith.mulf %473, %472 : vector<7x2xf32>
    %475 = arith.addf %469, %474 : vector<7x2xf32>
    %c12_361 = arith.constant 12 : index
    %c0_362 = arith.constant 0 : index
    %476 = vector.load %arg7[%c12_361, %c0_362] : memref<32x2xf32, #tpu.memory_space<vmem>>, vector<1x2xf32>
    %c12_363 = arith.constant 12 : index
    %c0_364 = arith.constant 0 : index
    %c0_365 = arith.constant 0 : index
    %477 = vector.load %arg4[%c12_363, %c0_364, %c0_365] : memref<33x7x2xf32, #tpu.memory_space<vmem>>, vector<1x7x2xf32>
    %478 = vector.shape_cast %477 : vector<1x7x2xf32> to vector<7x2xf32>
    %479 = vector.broadcast %476 : vector<1x2xf32> to vector<7x2xf32>
    %480 = arith.mulf %479, %478 : vector<7x2xf32>
    %481 = arith.addf %475, %480 : vector<7x2xf32>
    %c13_366 = arith.constant 13 : index
    %c0_367 = arith.constant 0 : index
    %482 = vector.load %arg7[%c13_366, %c0_367] : memref<32x2xf32, #tpu.memory_space<vmem>>, vector<1x2xf32>
    %c13_368 = arith.constant 13 : index
    %c0_369 = arith.constant 0 : index
    %c0_370 = arith.constant 0 : index
    %483 = vector.load %arg4[%c13_368, %c0_369, %c0_370] : memref<33x7x2xf32, #tpu.memory_space<vmem>>, vector<1x7x2xf32>
    %484 = vector.shape_cast %483 : vector<1x7x2xf32> to vector<7x2xf32>
    %485 = vector.broadcast %482 : vector<1x2xf32> to vector<7x2xf32>
    %486 = arith.mulf %485, %484 : vector<7x2xf32>
    %487 = arith.addf %481, %486 : vector<7x2xf32>
    %c14_371 = arith.constant 14 : index
    %c0_372 = arith.constant 0 : index
    %488 = vector.load %arg7[%c14_371, %c0_372] : memref<32x2xf32, #tpu.memory_space<vmem>>, vector<1x2xf32>
    %c14_373 = arith.constant 14 : index
    %c0_374 = arith.constant 0 : index
    %c0_375 = arith.constant 0 : index
    %489 = vector.load %arg4[%c14_373, %c0_374, %c0_375] : memref<33x7x2xf32, #tpu.memory_space<vmem>>, vector<1x7x2xf32>
    %490 = vector.shape_cast %489 : vector<1x7x2xf32> to vector<7x2xf32>
    %491 = vector.broadcast %488 : vector<1x2xf32> to vector<7x2xf32>
    %492 = arith.mulf %491, %490 : vector<7x2xf32>
    %493 = arith.addf %487, %492 : vector<7x2xf32>
    %c15_376 = arith.constant 15 : index
    %c0_377 = arith.constant 0 : index
    %494 = vector.load %arg7[%c15_376, %c0_377] : memref<32x2xf32, #tpu.memory_space<vmem>>, vector<1x2xf32>
    %c15_378 = arith.constant 15 : index
    %c0_379 = arith.constant 0 : index
    %c0_380 = arith.constant 0 : index
    %495 = vector.load %arg4[%c15_378, %c0_379, %c0_380] : memref<33x7x2xf32, #tpu.memory_space<vmem>>, vector<1x7x2xf32>
    %496 = vector.shape_cast %495 : vector<1x7x2xf32> to vector<7x2xf32>
    %497 = vector.broadcast %494 : vector<1x2xf32> to vector<7x2xf32>
    %498 = arith.mulf %497, %496 : vector<7x2xf32>
    %499 = arith.addf %493, %498 : vector<7x2xf32>
    %c16_381 = arith.constant 16 : index
    %c0_382 = arith.constant 0 : index
    %500 = vector.load %arg7[%c16_381, %c0_382] : memref<32x2xf32, #tpu.memory_space<vmem>>, vector<1x2xf32>
    %c16_383 = arith.constant 16 : index
    %c0_384 = arith.constant 0 : index
    %c0_385 = arith.constant 0 : index
    %501 = vector.load %arg4[%c16_383, %c0_384, %c0_385] : memref<33x7x2xf32, #tpu.memory_space<vmem>>, vector<1x7x2xf32>
    %502 = vector.shape_cast %501 : vector<1x7x2xf32> to vector<7x2xf32>
    %503 = vector.broadcast %500 : vector<1x2xf32> to vector<7x2xf32>
    %504 = arith.mulf %503, %502 : vector<7x2xf32>
    %505 = arith.addf %499, %504 : vector<7x2xf32>
    %c17_386 = arith.constant 17 : index
    %c0_387 = arith.constant 0 : index
    %506 = vector.load %arg7[%c17_386, %c0_387] : memref<32x2xf32, #tpu.memory_space<vmem>>, vector<1x2xf32>
    %c17_388 = arith.constant 17 : index
    %c0_389 = arith.constant 0 : index
    %c0_390 = arith.constant 0 : index
    %507 = vector.load %arg4[%c17_388, %c0_389, %c0_390] : memref<33x7x2xf32, #tpu.memory_space<vmem>>, vector<1x7x2xf32>
    %508 = vector.shape_cast %507 : vector<1x7x2xf32> to vector<7x2xf32>
    %509 = vector.broadcast %506 : vector<1x2xf32> to vector<7x2xf32>
    %510 = arith.mulf %509, %508 : vector<7x2xf32>
    %511 = arith.addf %505, %510 : vector<7x2xf32>
    %c18_391 = arith.constant 18 : index
    %c0_392 = arith.constant 0 : index
    %512 = vector.load %arg7[%c18_391, %c0_392] : memref<32x2xf32, #tpu.memory_space<vmem>>, vector<1x2xf32>
    %c18_393 = arith.constant 18 : index
    %c0_394 = arith.constant 0 : index
    %c0_395 = arith.constant 0 : index
    %513 = vector.load %arg4[%c18_393, %c0_394, %c0_395] : memref<33x7x2xf32, #tpu.memory_space<vmem>>, vector<1x7x2xf32>
    %514 = vector.shape_cast %513 : vector<1x7x2xf32> to vector<7x2xf32>
    %515 = vector.broadcast %512 : vector<1x2xf32> to vector<7x2xf32>
    %516 = arith.mulf %515, %514 : vector<7x2xf32>
    %517 = arith.addf %511, %516 : vector<7x2xf32>
    %c19_396 = arith.constant 19 : index
    %c0_397 = arith.constant 0 : index
    %518 = vector.load %arg7[%c19_396, %c0_397] : memref<32x2xf32, #tpu.memory_space<vmem>>, vector<1x2xf32>
    %c19_398 = arith.constant 19 : index
    %c0_399 = arith.constant 0 : index
    %c0_400 = arith.constant 0 : index
    %519 = vector.load %arg4[%c19_398, %c0_399, %c0_400] : memref<33x7x2xf32, #tpu.memory_space<vmem>>, vector<1x7x2xf32>
    %520 = vector.shape_cast %519 : vector<1x7x2xf32> to vector<7x2xf32>
    %521 = vector.broadcast %518 : vector<1x2xf32> to vector<7x2xf32>
    %522 = arith.mulf %521, %520 : vector<7x2xf32>
    %523 = arith.addf %517, %522 : vector<7x2xf32>
    %c20_401 = arith.constant 20 : index
    %c0_402 = arith.constant 0 : index
    %524 = vector.load %arg7[%c20_401, %c0_402] : memref<32x2xf32, #tpu.memory_space<vmem>>, vector<1x2xf32>
    %c20_403 = arith.constant 20 : index
    %c0_404 = arith.constant 0 : index
    %c0_405 = arith.constant 0 : index
    %525 = vector.load %arg4[%c20_403, %c0_404, %c0_405] : memref<33x7x2xf32, #tpu.memory_space<vmem>>, vector<1x7x2xf32>
    %526 = vector.shape_cast %525 : vector<1x7x2xf32> to vector<7x2xf32>
    %527 = vector.broadcast %524 : vector<1x2xf32> to vector<7x2xf32>
    %528 = arith.mulf %527, %526 : vector<7x2xf32>
    %529 = arith.addf %523, %528 : vector<7x2xf32>
    %c21_406 = arith.constant 21 : index
    %c0_407 = arith.constant 0 : index
    %530 = vector.load %arg7[%c21_406, %c0_407] : memref<32x2xf32, #tpu.memory_space<vmem>>, vector<1x2xf32>
    %c21_408 = arith.constant 21 : index
    %c0_409 = arith.constant 0 : index
    %c0_410 = arith.constant 0 : index
    %531 = vector.load %arg4[%c21_408, %c0_409, %c0_410] : memref<33x7x2xf32, #tpu.memory_space<vmem>>, vector<1x7x2xf32>
    %532 = vector.shape_cast %531 : vector<1x7x2xf32> to vector<7x2xf32>
    %533 = vector.broadcast %530 : vector<1x2xf32> to vector<7x2xf32>
    %534 = arith.mulf %533, %532 : vector<7x2xf32>
    %535 = arith.addf %529, %534 : vector<7x2xf32>
    %c22_411 = arith.constant 22 : index
    %c0_412 = arith.constant 0 : index
    %536 = vector.load %arg7[%c22_411, %c0_412] : memref<32x2xf32, #tpu.memory_space<vmem>>, vector<1x2xf32>
    %c22_413 = arith.constant 22 : index
    %c0_414 = arith.constant 0 : index
    %c0_415 = arith.constant 0 : index
    %537 = vector.load %arg4[%c22_413, %c0_414, %c0_415] : memref<33x7x2xf32, #tpu.memory_space<vmem>>, vector<1x7x2xf32>
    %538 = vector.shape_cast %537 : vector<1x7x2xf32> to vector<7x2xf32>
    %539 = vector.broadcast %536 : vector<1x2xf32> to vector<7x2xf32>
    %540 = arith.mulf %539, %538 : vector<7x2xf32>
    %541 = arith.addf %535, %540 : vector<7x2xf32>
    %c23_416 = arith.constant 23 : index
    %c0_417 = arith.constant 0 : index
    %542 = vector.load %arg7[%c23_416, %c0_417] : memref<32x2xf32, #tpu.memory_space<vmem>>, vector<1x2xf32>
    %c23_418 = arith.constant 23 : index
    %c0_419 = arith.constant 0 : index
    %c0_420 = arith.constant 0 : index
    %543 = vector.load %arg4[%c23_418, %c0_419, %c0_420] : memref<33x7x2xf32, #tpu.memory_space<vmem>>, vector<1x7x2xf32>
    %544 = vector.shape_cast %543 : vector<1x7x2xf32> to vector<7x2xf32>
    %545 = vector.broadcast %542 : vector<1x2xf32> to vector<7x2xf32>
    %546 = arith.mulf %545, %544 : vector<7x2xf32>
    %547 = arith.addf %541, %546 : vector<7x2xf32>
    %c24_421 = arith.constant 24 : index
    %c0_422 = arith.constant 0 : index
    %548 = vector.load %arg7[%c24_421, %c0_422] : memref<32x2xf32, #tpu.memory_space<vmem>>, vector<1x2xf32>
    %c24_423 = arith.constant 24 : index
    %c0_424 = arith.constant 0 : index
    %c0_425 = arith.constant 0 : index
    %549 = vector.load %arg4[%c24_423, %c0_424, %c0_425] : memref<33x7x2xf32, #tpu.memory_space<vmem>>, vector<1x7x2xf32>
    %550 = vector.shape_cast %549 : vector<1x7x2xf32> to vector<7x2xf32>
    %551 = vector.broadcast %548 : vector<1x2xf32> to vector<7x2xf32>
    %552 = arith.mulf %551, %550 : vector<7x2xf32>
    %553 = arith.addf %547, %552 : vector<7x2xf32>
    %c25_426 = arith.constant 25 : index
    %c0_427 = arith.constant 0 : index
    %554 = vector.load %arg7[%c25_426, %c0_427] : memref<32x2xf32, #tpu.memory_space<vmem>>, vector<1x2xf32>
    %c25_428 = arith.constant 25 : index
    %c0_429 = arith.constant 0 : index
    %c0_430 = arith.constant 0 : index
    %555 = vector.load %arg4[%c25_428, %c0_429, %c0_430] : memref<33x7x2xf32, #tpu.memory_space<vmem>>, vector<1x7x2xf32>
    %556 = vector.shape_cast %555 : vector<1x7x2xf32> to vector<7x2xf32>
    %557 = vector.broadcast %554 : vector<1x2xf32> to vector<7x2xf32>
    %558 = arith.mulf %557, %556 : vector<7x2xf32>
    %559 = arith.addf %553, %558 : vector<7x2xf32>
    %c26_431 = arith.constant 26 : index
    %c0_432 = arith.constant 0 : index
    %560 = vector.load %arg7[%c26_431, %c0_432] : memref<32x2xf32, #tpu.memory_space<vmem>>, vector<1x2xf32>
    %c26_433 = arith.constant 26 : index
    %c0_434 = arith.constant 0 : index
    %c0_435 = arith.constant 0 : index
    %561 = vector.load %arg4[%c26_433, %c0_434, %c0_435] : memref<33x7x2xf32, #tpu.memory_space<vmem>>, vector<1x7x2xf32>
    %562 = vector.shape_cast %561 : vector<1x7x2xf32> to vector<7x2xf32>
    %563 = vector.broadcast %560 : vector<1x2xf32> to vector<7x2xf32>
    %564 = arith.mulf %563, %562 : vector<7x2xf32>
    %565 = arith.addf %559, %564 : vector<7x2xf32>
    %c27_436 = arith.constant 27 : index
    %c0_437 = arith.constant 0 : index
    %566 = vector.load %arg7[%c27_436, %c0_437] : memref<32x2xf32, #tpu.memory_space<vmem>>, vector<1x2xf32>
    %c27_438 = arith.constant 27 : index
    %c0_439 = arith.constant 0 : index
    %c0_440 = arith.constant 0 : index
    %567 = vector.load %arg4[%c27_438, %c0_439, %c0_440] : memref<33x7x2xf32, #tpu.memory_space<vmem>>, vector<1x7x2xf32>
    %568 = vector.shape_cast %567 : vector<1x7x2xf32> to vector<7x2xf32>
    %569 = vector.broadcast %566 : vector<1x2xf32> to vector<7x2xf32>
    %570 = arith.mulf %569, %568 : vector<7x2xf32>
    %571 = arith.addf %565, %570 : vector<7x2xf32>
    %c28_441 = arith.constant 28 : index
    %c0_442 = arith.constant 0 : index
    %572 = vector.load %arg7[%c28_441, %c0_442] : memref<32x2xf32, #tpu.memory_space<vmem>>, vector<1x2xf32>
    %c28_443 = arith.constant 28 : index
    %c0_444 = arith.constant 0 : index
    %c0_445 = arith.constant 0 : index
    %573 = vector.load %arg4[%c28_443, %c0_444, %c0_445] : memref<33x7x2xf32, #tpu.memory_space<vmem>>, vector<1x7x2xf32>
    %574 = vector.shape_cast %573 : vector<1x7x2xf32> to vector<7x2xf32>
    %575 = vector.broadcast %572 : vector<1x2xf32> to vector<7x2xf32>
    %576 = arith.mulf %575, %574 : vector<7x2xf32>
    %577 = arith.addf %571, %576 : vector<7x2xf32>
    %c29_446 = arith.constant 29 : index
    %c0_447 = arith.constant 0 : index
    %578 = vector.load %arg7[%c29_446, %c0_447] : memref<32x2xf32, #tpu.memory_space<vmem>>, vector<1x2xf32>
    %c29_448 = arith.constant 29 : index
    %c0_449 = arith.constant 0 : index
    %c0_450 = arith.constant 0 : index
    %579 = vector.load %arg4[%c29_448, %c0_449, %c0_450] : memref<33x7x2xf32, #tpu.memory_space<vmem>>, vector<1x7x2xf32>
    %580 = vector.shape_cast %579 : vector<1x7x2xf32> to vector<7x2xf32>
    %581 = vector.broadcast %578 : vector<1x2xf32> to vector<7x2xf32>
    %582 = arith.mulf %581, %580 : vector<7x2xf32>
    %583 = arith.addf %577, %582 : vector<7x2xf32>
    %c30_451 = arith.constant 30 : index
    %c0_452 = arith.constant 0 : index
    %584 = vector.load %arg7[%c30_451, %c0_452] : memref<32x2xf32, #tpu.memory_space<vmem>>, vector<1x2xf32>
    %c30_453 = arith.constant 30 : index
    %c0_454 = arith.constant 0 : index
    %c0_455 = arith.constant 0 : index
    %585 = vector.load %arg4[%c30_453, %c0_454, %c0_455] : memref<33x7x2xf32, #tpu.memory_space<vmem>>, vector<1x7x2xf32>
    %586 = vector.shape_cast %585 : vector<1x7x2xf32> to vector<7x2xf32>
    %587 = vector.broadcast %584 : vector<1x2xf32> to vector<7x2xf32>
    %588 = arith.mulf %587, %586 : vector<7x2xf32>
    %589 = arith.addf %583, %588 : vector<7x2xf32>
    %c31_456 = arith.constant 31 : index
    %c0_457 = arith.constant 0 : index
    %590 = vector.load %arg7[%c31_456, %c0_457] : memref<32x2xf32, #tpu.memory_space<vmem>>, vector<1x2xf32>
    %c31_458 = arith.constant 31 : index
    %c0_459 = arith.constant 0 : index
    %c0_460 = arith.constant 0 : index
    %591 = vector.load %arg4[%c31_458, %c0_459, %c0_460] : memref<33x7x2xf32, #tpu.memory_space<vmem>>, vector<1x7x2xf32>
    %592 = vector.shape_cast %591 : vector<1x7x2xf32> to vector<7x2xf32>
    %593 = vector.broadcast %590 : vector<1x2xf32> to vector<7x2xf32>
    %594 = arith.mulf %593, %592 : vector<7x2xf32>
    %595 = arith.addf %589, %594 : vector<7x2xf32>
    %c0_461 = arith.constant 0 : index
    %c0_462 = arith.constant 0 : index
    %596 = vector.load %arg5[%c0_461, %c0_462] : memref<7x2xf32, #tpu.memory_space<vmem>>, vector<7x2xf32>
    tpu.vector_store %arg5[%c0_461, %c0_462], %595 {strides = array<i32>} : memref<7x2xf32, #tpu.memory_space<vmem>>, vector<7x2xf32>,
    return
  }
  func.func @transform_0(%arg0: i32) -> (i32, i32) {
    %c0_i32 = arith.constant 0 : i32
    %c0_i32_0 = arith.constant 0 : i32
    return %c0_i32, %arg0 : i32, i32
  }
  func.func @transform_1(%arg0: i32) -> (i32, i32, i32) {
    %c0_i32 = arith.constant 0 : i32
    %c0_i32_0 = arith.constant 0 : i32
    %c0_i32_1 = arith.constant 0 : i32
    return %c0_i32, %c0_i32_0, %arg0 : i32, i32, i32
  }
  func.func @transform_2(%arg0: i32) -> (i32, i32, i32) {
    %c0_i32 = arith.constant 0 : i32
    %c0_i32_0 = arith.constant 0 : i32
    %c0_i32_1 = arith.constant 0 : i32
    return %c0_i32, %c0_i32_0, %arg0 : i32, i32, i32
  }
  func.func @transform_3(%arg0: i32) -> (i32, i32, i32) {
    %c0_i32 = arith.constant 0 : i32
    %c0_i32_0 = arith.constant 0 : i32
    %c0_i32_1 = arith.constant 0 : i32
    return %c0_i32, %c0_i32_0, %arg0 : i32, i32, i32
  }
  func.func @transform_4(%arg0: i32) -> (i32, i32) {
    %c0_i32 = arith.constant 0 : i32
    %c0_i32_0 = arith.constant 0 : i32
    return %c0_i32, %arg0 : i32, i32
  }
}

</mosaic_0001>

<bundles_post_ra>
// kernel: tpu_custom_call.1
= control target key start
LH: loop header
LB: loop body
LE: loop exit
PB: predicated region body
PF: predicated region fallthrough
CT: control target
= control target key end

     0   :  { %vm581_vm13 = vcmask 15360   ;;  %s2876_s1 = inlined_call_operand.vmem [shape: f32[33,32,2], index: 1, kind: input, shape index: {}]   ;;  %s2877_s0 = inlined_call_operand.vmem [shape: f32[32,2], index: 0, kind: input, shape index: {}]   ;;  %s2878_s2 = inlined_call_operand.vmem [shape: f32[33,32,2], index: 2, kind: input, shape index: {}]   ;;  %s2879_s3 = inlined_call_operand.vmem [shape: f32[33,7,2], index: 3, kind: input, shape index: {}]   ;;  %s2880_s4 = inlined_call_operand.vmem [shape: f32[7,2], index: 4, kind: output, shape index: {}]  }
   0x1   :  { %v23_v0 = vld [vmem:[%s2876_s1] sm:$0xff]  ;;  %v1354_v2 = vld [vmem:[%s2876_s1 + $0x408] sm:$0xff]  ;;  %v1355_v3 = vld [vmem:[%s2876_s1 + $0x410] sm:$0xff] }
   0x2   :  { %v1353_v1 = vld [vmem:[%s2876_s1 + $0x400] sm:$0xff]  ;;  %v1356_v4 = vld [vmem:[%s2876_s1 + $0x418] sm:$0xff]  ;;  %v24_v5 = vld [vmem:[%s2876_s1 + $0x8] sm:$0xff] }
   0x3   :  { %v25_v6 = vld [vmem:[%s2876_s1 + $0x10] sm:$0xff]  ;;  %v26_v7 = vld [vmem:[%s2876_s1 + $0x18] sm:$0xff]  ;;  %v1649_v8 = vld [vmem:[%s2877_s0] ss:$0 sm:$0xff] }
   0x4   :  { %v1357_v9 = vld [vmem:[%s2876_s1 + $0x20] sm:$0xff]  ;;  %v1358_v10 = vld [vmem:[%s2876_s1 + $0x28] sm:$0xff]  ;;  %v1359_v11 = vld [vmem:[%s2876_s1 + $0x30] sm:$0xff]  ;;  %v28_v13 = vmul.f32 %v1649_v8, %v23_v0  ;;  %v29_v14 = vmul.f32 %v1649_v8, %v24_v5  ;;  %v30_v15 = vmul.f32 %v1649_v8, %v25_v6  ;;  %v31_v16 = vmul.f32 %v1649_v8, %v26_v7 }
   0x5   :  { %v1360_v12 = vld [vmem:[%s2876_s1 + $0x38] sm:$0xff]  ;;  %v1650_v17 = vld [vmem:[%s2877_s0 + $0x1] ss:$0 sm:$0xff]  ;;  %v1362_v19 = vld [vmem:[%s2876_s1 + $0x48] sm:$0xff] }
   0x6   :  { %v1361_v18 = vld [vmem:[%s2876_s1 + $0x40] sm:$0xff]  ;;  %v1363_v20 = vld [vmem:[%s2876_s1 + $0x50] sm:$0xff]  ;;  %v1364_v21 = vld [vmem:[%s2876_s1 + $0x58] sm:$0xff]  ;;  %v32_v22 = vadd.f32 %v1353_v1, %v28_v13  ;;  %v33_v23 = vadd.f32 %v1354_v2, %v29_v14  ;;  %v34_v24 = vadd.f32 %v1355_v3, %v30_v15  ;;  %v35_v25 = vadd.f32 %v1356_v4, %v31_v16 }
   0x7   :  { %v1651_v26 = vld [vmem:[%s2877_s0 + $0x2] ss:$0 sm:$0xff]  ;;  %v43_v28 = vmul.f32 %v1650_v17, %v1357_v9  ;;  %v44_v29 = vmul.f32 %v1650_v17, %v1358_v10  ;;  %v45_v30 = vmul.f32 %v1650_v17, %v1359_v11  ;;  %v46_v31 = vmul.f32 %v1650_v17, %v1360_v12  ;;  %v1366_v32 = vld [vmem:[%s2876_s1 + $0x68] sm:$0xff]  ;;  %v1367_v33 = vld [vmem:[%s2876_s1 + $0x70] sm:$0xff] }
   0x8   :  { %v1365_v27 = vld [vmem:[%s2876_s1 + $0x60] sm:$0xff]  ;;  %v1368_v34 = vld [vmem:[%s2876_s1 + $0x78] sm:$0xff]  ;;  %v58_v35 = vmul.f32 %v1651_v26, %v1361_v18  ;;  %v59_v36 = vmul.f32 %v1651_v26, %v1362_v19  ;;  %v60_v37 = vmul.f32 %v1651_v26, %v1363_v20  ;;  %v61_v38 = vmul.f32 %v1651_v26, %v1364_v21  ;;  %v1370_v45 = vld [vmem:[%s2876_s1 + $0x88] sm:$0xff] }
   0x9   :  { %v1652_v39 = vld [vmem:[%s2877_s0 + $0x3] ss:$0 sm:$0xff]  ;;  %v47_v41 = vadd.f32 %v43_v28, %v32_v22  ;;  %v48_v42 = vadd.f32 %v44_v29, %v33_v23  ;;  %v49_v43 = vadd.f32 %v45_v30, %v34_v24  ;;  %v50_v44 = vadd.f32 %v46_v31, %v35_v25  ;;  %v1371_v46 = vld [vmem:[%s2876_s1 + $0x90] sm:$0xff]  ;;  %v1372_v47 = vld [vmem:[%s2876_s1 + $0x98] sm:$0xff] }
   0xa   :  { %v1369_v40 = vld [vmem:[%s2876_s1 + $0x80] sm:$0xff]  ;;  %v73_v48 = vmul.f32 %v1652_v39, %v1365_v27  ;;  %v74_v49 = vmul.f32 %v1652_v39, %v1366_v32  ;;  %v75_v50 = vmul.f32 %v1652_v39, %v1367_v33  ;;  %v76_v51 = vmul.f32 %v1652_v39, %v1368_v34  ;;  %v1374_v58 = vld [vmem:[%s2876_s1 + $0xa8] sm:$0xff]  ;;  %v1375_v59 = vld [vmem:[%s2876_s1 + $0xb0] sm:$0xff] }
   0xb   :  { %v1653_v52 = vld [vmem:[%s2877_s0 + $0x4] ss:$0 sm:$0xff]  ;;  %v62_v54 = vadd.f32 %v58_v35, %v47_v41  ;;  %v63_v55 = vadd.f32 %v59_v36, %v48_v42  ;;  %v64_v56 = vadd.f32 %v60_v37, %v49_v43  ;;  %v65_v57 = vadd.f32 %v61_v38, %v50_v44  ;;  %v1376_v60 = vld [vmem:[%s2876_s1 + $0xb8] sm:$0xff]  ;;  %v1654_v1 = vld [vmem:[%s2877_s0 + $0x5] ss:$0 sm:$0xff] }
   0xc   :  { %v1373_v53 = vld [vmem:[%s2876_s1 + $0xa0] sm:$0xff]  ;;  %v88_v61 = vmul.f32 %v1653_v52, %v1369_v40  ;;  %v89_v62 = vmul.f32 %v1653_v52, %v1370_v45  ;;  %v90_v63 = vmul.f32 %v1653_v52, %v1371_v46  ;;  %v91_v0 = vmul.f32 %v1653_v52, %v1372_v47  ;;  %v1378_v7 = vld [vmem:[%s2876_s1 + $0xc8] sm:$0xff]  ;;  %v1379_v8 = vld [vmem:[%s2876_s1 + $0xd0] sm:$0xff] }
   0xd   :  { %v1377_v2 = vld [vmem:[%s2876_s1 + $0xc0] sm:$0xff]  ;;  %v77_v3 = vadd.f32 %v73_v48, %v62_v54  ;;  %v78_v4 = vadd.f32 %v74_v49, %v63_v55  ;;  %v79_v5 = vadd.f32 %v75_v50, %v64_v56  ;;  %v80_v6 = vadd.f32 %v76_v51, %v65_v57  ;;  %v1380_v9 = vld [vmem:[%s2876_s1 + $0xd8] sm:$0xff]  ;;  %v1382_v20 = vld [vmem:[%s2876_s1 + $0xe8] sm:$0xff] }
   0xe   :  { %v103_v10 = vmul.f32 %v1654_v1, %v1373_v53  ;;  %v104_v11 = vmul.f32 %v1654_v1, %v1374_v58  ;;  %v105_v12 = vmul.f32 %v1654_v1, %v1375_v59  ;;  %v106_v13 = vmul.f32 %v1654_v1, %v1376_v60  ;;  %v1655_v14 = vld [vmem:[%s2877_s0 + $0x6] ss:$0 sm:$0xff]  ;;  %v1383_v21 = vld [vmem:[%s2876_s1 + $0xf0] sm:$0xff]  ;;  %v1384_v22 = vld [vmem:[%s2876_s1 + $0xf8] sm:$0xff] }
   0xf   :  { %v1381_v15 = vld [vmem:[%s2876_s1 + $0xe0] sm:$0xff]  ;;  %v92_v16 = vadd.f32 %v88_v61, %v77_v3  ;;  %v93_v17 = vadd.f32 %v89_v62, %v78_v4  ;;  %v94_v18 = vadd.f32 %v90_v63, %v79_v5  ;;  %v95_v19 = vadd.f32 %v91_v0, %v80_v6  ;;  %v1386_v33 = vld [vmem:[%s2876_s1 + $0x108] sm:$0xff]  ;;  %v1387_v34 = vld [vmem:[%s2876_s1 + $0x110] sm:$0xff] }
  0x10   :  { %v118_v23 = vmul.f32 %v1655_v14, %v1377_v2  ;;  %v119_v24 = vmul.f32 %v1655_v14, %v1378_v7  ;;  %v120_v25 = vmul.f32 %v1655_v14, %v1379_v8  ;;  %v121_v26 = vmul.f32 %v1655_v14, %v1380_v9  ;;  %v1656_v27 = vld [vmem:[%s2877_s0 + $0x7] ss:$0 sm:$0xff]  ;;  %v1388_v35 = vld [vmem:[%s2876_s1 + $0x118] sm:$0xff]  ;;  %v1657_v40 = vld [vmem:[%s2877_s0 + $0x8] ss:$0 sm:$0xff] }
  0x11   :  { %v1385_v28 = vld [vmem:[%s2876_s1 + $0x100] sm:$0xff]  ;;  %v107_v29 = vadd.f32 %v103_v10, %v92_v16  ;;  %v108_v30 = vadd.f32 %v104_v11, %v93_v17  ;;  %v109_v31 = vadd.f32 %v105_v12, %v94_v18  ;;  %v110_v32 = vadd.f32 %v106_v13, %v95_v19  ;;  %v1390_v46 = vld [vmem:[%s2876_s1 + $0x128] sm:$0xff]  ;;  %v1391_v47 = vld [vmem:[%s2876_s1 + $0x130] sm:$0xff] }
  0x12   :  { %v133_v36 = vmul.f32 %v1656_v27, %v1381_v15  ;;  %v134_v37 = vmul.f32 %v1656_v27, %v1382_v20  ;;  %v135_v38 = vmul.f32 %v1656_v27, %v1383_v21  ;;  %v136_v39 = vmul.f32 %v1656_v27, %v1384_v22  ;;  %v1389_v41 = vld [vmem:[%s2876_s1 + $0x120] sm:$0xff]  ;;  %v1392_v48 = vld [vmem:[%s2876_s1 + $0x138] sm:$0xff]  ;;  %v1658_v53 = vld [vmem:[%s2877_s0 + $0x9] ss:$0 sm:$0xff] }
  0x13   :  { %v122_v42 = vadd.f32 %v118_v23, %v107_v29  ;;  %v123_v43 = vadd.f32 %v119_v24, %v108_v30  ;;  %v124_v44 = vadd.f32 %v120_v25, %v109_v31  ;;  %v125_v45 = vadd.f32 %v121_v26, %v110_v32  ;;  %v1393_v54 = vld [vmem:[%s2876_s1 + $0x140] sm:$0xff]  ;;  %v1394_v59 = vld [vmem:[%s2876_s1 + $0x148] sm:$0xff]  ;;  %v1395_v60 = vld [vmem:[%s2876_s1 + $0x150] sm:$0xff] }
  0x14   :  { %v148_v49 = vmul.f32 %v1657_v40, %v1385_v28  ;;  %v149_v50 = vmul.f32 %v1657_v40, %v1386_v33  ;;  %v150_v51 = vmul.f32 %v1657_v40, %v1387_v34  ;;  %v151_v52 = vmul.f32 %v1657_v40, %v1388_v35  ;;  %v1396_v61 = vld [vmem:[%s2876_s1 + $0x158] sm:$0xff]  ;;  %v1659_v2 = vld [vmem:[%s2877_s0 + $0xa] ss:$0 sm:$0xff]  ;;  %v1397_v3 = vld [vmem:[%s2876_s1 + $0x160] sm:$0xff] }
  0x15   :  { %v137_v55 = vadd.f32 %v133_v36, %v122_v42  ;;  %v138_v56 = vadd.f32 %v134_v37, %v123_v43  ;;  %v139_v57 = vadd.f32 %v135_v38, %v124_v44  ;;  %v140_v58 = vadd.f32 %v136_v39, %v125_v45  ;;  %v1398_v8 = vld [vmem:[%s2876_s1 + $0x168] sm:$0xff]  ;;  %v1399_v9 = vld [vmem:[%s2876_s1 + $0x170] sm:$0xff]  ;;  %v1400_v10 = vld [vmem:[%s2876_s1 + $0x178] sm:$0xff] }
  0x16   :  { %v163_v62 = vmul.f32 %v1658_v53, %v1389_v41  ;;  %v164_v63 = vmul.f32 %v1658_v53, %v1390_v46  ;;  %v165_v0 = vmul.f32 %v1658_v53, %v1391_v47  ;;  %v166_v1 = vmul.f32 %v1658_v53, %v1392_v48  ;;  %v1660_v15 = vld [vmem:[%s2877_s0 + $0xb] ss:$0 sm:$0xff]  ;;  %v1401_v16 = vld [vmem:[%s2876_s1 + $0x180] sm:$0xff]  ;;  %v1403_v22 = vld [vmem:[%s2876_s1 + $0x190] sm:$0xff] }
  0x17   :  { %v152_v4 = vadd.f32 %v148_v49, %v137_v55  ;;  %v153_v5 = vadd.f32 %v149_v50, %v138_v56  ;;  %v154_v6 = vadd.f32 %v150_v51, %v139_v57  ;;  %v155_v7 = vadd.f32 %v151_v52, %v140_v58  ;;  %v1402_v21 = vld [vmem:[%s2876_s1 + $0x188] sm:$0xff]  ;;  %v1404_v23 = vld [vmem:[%s2876_s1 + $0x198] sm:$0xff]  ;;  %v1405_v29 = vld [vmem:[%s2876_s1 + $0x1a0] sm:$0xff] }
  0x18   :  { %v178_v11 = vmul.f32 %v1659_v2, %v1393_v54  ;;  %v179_v12 = vmul.f32 %v1659_v2, %v1394_v59  ;;  %v180_v13 = vmul.f32 %v1659_v2, %v1395_v60  ;;  %v181_v14 = vmul.f32 %v1659_v2, %v1396_v61  ;;  %v1661_v28 = vld [vmem:[%s2877_s0 + $0xc] ss:$0 sm:$0xff]  ;;  %v1407_v35 = vld [vmem:[%s2876_s1 + $0x1b0] sm:$0xff]  ;;  %v1408_v36 = vld [vmem:[%s2876_s1 + $0x1b8] sm:$0xff] }
  0x19   :  { %v167_v17 = vadd.f32 %v163_v62, %v152_v4  ;;  %v168_v18 = vadd.f32 %v164_v63, %v153_v5  ;;  %v169_v19 = vadd.f32 %v165_v0, %v154_v6  ;;  %v170_v20 = vadd.f32 %v166_v1, %v155_v7  ;;  %v1406_v34 = vld [vmem:[%s2876_s1 + $0x1a8] sm:$0xff]  ;;  %v1409_v42 = vld [vmem:[%s2876_s1 + $0x1c0] sm:$0xff]  ;;  %v1411_v48 = vld [vmem:[%s2876_s1 + $0x1d0] sm:$0xff] }
  0x1a   :  { %v193_v24 = vmul.f32 %v1660_v15, %v1397_v3  ;;  %v194_v25 = vmul.f32 %v1660_v15, %v1398_v8  ;;  %v195_v26 = vmul.f32 %v1660_v15, %v1399_v9  ;;  %v196_v27 = vmul.f32 %v1660_v15, %v1400_v10  ;;  %v1662_v41 = vld [vmem:[%s2877_s0 + $0xd] ss:$0 sm:$0xff]  ;;  %v1412_v49 = vld [vmem:[%s2876_s1 + $0x1d8] sm:$0xff]  ;;  %v1663_v54 = vld [vmem:[%s2877_s0 + $0xe] ss:$0 sm:$0xff] }
  0x1b   :  { %v182_v30 = vadd.f32 %v178_v11, %v167_v17  ;;  %v183_v31 = vadd.f32 %v179_v12, %v168_v18  ;;  %v184_v32 = vadd.f32 %v180_v13, %v169_v19  ;;  %v185_v33 = vadd.f32 %v181_v14, %v170_v20  ;;  %v1410_v47 = vld [vmem:[%s2876_s1 + $0x1c8] sm:$0xff]  ;;  %v1413_v55 = vld [vmem:[%s2876_s1 + $0x1e0] sm:$0xff]  ;;  %v1415_v61 = vld [vmem:[%s2876_s1 + $0x1f0] sm:$0xff] }
  0x1c   :  { %v208_v37 = vmul.f32 %v1661_v28, %v1401_v16  ;;  %v209_v38 = vmul.f32 %v1661_v28, %v1402_v21  ;;  %v210_v39 = vmul.f32 %v1661_v28, %v1403_v22  ;;  %v211_v40 = vmul.f32 %v1661_v28, %v1404_v23  ;;  %v1414_v60 = vld [vmem:[%s2876_s1 + $0x1e8] sm:$0xff]  ;;  %v1416_v62 = vld [vmem:[%s2876_s1 + $0x1f8] sm:$0xff]  ;;  %v1417_v4 = vld [vmem:[%s2876_s1 + $0x200] sm:$0xff] }
  0x1d   :  { %v197_v43 = vadd.f32 %v193_v24, %v182_v30  ;;  %v198_v44 = vadd.f32 %v194_v25, %v183_v31  ;;  %v199_v45 = vadd.f32 %v195_v26, %v184_v32  ;;  %v200_v46 = vadd.f32 %v196_v27, %v185_v33  ;;  %v1664_v3 = vld [vmem:[%s2877_s0 + $0xf] ss:$0 sm:$0xff]  ;;  %v1419_v10 = vld [vmem:[%s2876_s1 + $0x210] sm:$0xff]  ;;  %v1420_v11 = vld [vmem:[%s2876_s1 + $0x218] sm:$0xff] }
  0x1e   :  { %v223_v50 = vmul.f32 %v1662_v41, %v1405_v29  ;;  %v224_v51 = vmul.f32 %v1662_v41, %v1406_v34  ;;  %v225_v52 = vmul.f32 %v1662_v41, %v1407_v35  ;;  %v226_v53 = vmul.f32 %v1662_v41, %v1408_v36  ;;  %v1418_v9 = vld [vmem:[%s2876_s1 + $0x208] sm:$0xff]  ;;  %v1665_v16 = vld [vmem:[%s2877_s0 + $0x10] ss:$0 sm:$0xff]  ;;  %v1421_v17 = vld [vmem:[%s2876_s1 + $0x220] sm:$0xff] }
  0x1f   :  { %v212_v56 = vadd.f32 %v208_v37, %v197_v43  ;;  %v213_v57 = vadd.f32 %v209_v38, %v198_v44  ;;  %v214_v58 = vadd.f32 %v210_v39, %v199_v45  ;;  %v215_v59 = vadd.f32 %v211_v40, %v200_v46  ;;  %v1422_v22 = vld [vmem:[%s2876_s1 + $0x228] sm:$0xff]  ;;  %v1423_v23 = vld [vmem:[%s2876_s1 + $0x230] sm:$0xff]  ;;  %v1424_v24 = vld [vmem:[%s2876_s1 + $0x238] sm:$0xff] }
  0x20   :  { %v238_v63 = vmul.f32 %v1663_v54, %v1409_v42  ;;  %v239_v0 = vmul.f32 %v1663_v54, %v1410_v47  ;;  %v240_v1 = vmul.f32 %v1663_v54, %v1411_v48  ;;  %v241_v2 = vmul.f32 %v1663_v54, %v1412_v49  ;;  %v1666_v29 = vld [vmem:[%s2877_s0 + $0x11] ss:$0 sm:$0xff]  ;;  %v1425_v30 = vld [vmem:[%s2876_s1 + $0x240] sm:$0xff]  ;;  %v1426_v35 = vld [vmem:[%s2876_s1 + $0x248] sm:$0xff] }
  0x21   :  { %v227_v5 = vadd.f32 %v223_v50, %v212_v56  ;;  %v228_v6 = vadd.f32 %v224_v51, %v213_v57  ;;  %v229_v7 = vadd.f32 %v225_v52, %v214_v58  ;;  %v230_v8 = vadd.f32 %v226_v53, %v215_v59  ;;  %v1427_v36 = vld [vmem:[%s2876_s1 + $0x250] sm:$0xff]  ;;  %v1428_v37 = vld [vmem:[%s2876_s1 + $0x258] sm:$0xff]  ;;  %v1429_v43 = vld [vmem:[%s2876_s1 + $0x260] sm:$0xff] }
  0x22   :  { %v253_v12 = vmul.f32 %v1664_v3, %v1413_v55  ;;  %v254_v13 = vmul.f32 %v1664_v3, %v1414_v60  ;;  %v255_v14 = vmul.f32 %v1664_v3, %v1415_v61  ;;  %v256_v15 = vmul.f32 %v1664_v3, %v1416_v62  ;;  %v1667_v42 = vld [vmem:[%s2877_s0 + $0x12] ss:$0 sm:$0xff]  ;;  %v1430_v48 = vld [vmem:[%s2876_s1 + $0x268] sm:$0xff]  ;;  %v1432_v50 = vld [vmem:[%s2876_s1 + $0x278] sm:$0xff] }
  0x23   :  { %v242_v18 = vadd.f32 %v238_v63, %v227_v5  ;;  %v243_v19 = vadd.f32 %v239_v0, %v228_v6  ;;  %v244_v20 = vadd.f32 %v240_v1, %v229_v7  ;;  %v245_v21 = vadd.f32 %v241_v2, %v230_v8  ;;  %v1431_v49 = vld [vmem:[%s2876_s1 + $0x270] sm:$0xff]  ;;  %v1433_v56 = vld [vmem:[%s2876_s1 + $0x280] sm:$0xff]  ;;  %v1434_v61 = vld [vmem:[%s2876_s1 + $0x288] sm:$0xff] }
  0x24   :  { %v268_v25 = vmul.f32 %v1665_v16, %v1417_v4  ;;  %v269_v26 = vmul.f32 %v1665_v16, %v1418_v9  ;;  %v270_v27 = vmul.f32 %v1665_v16, %v1419_v10  ;;  %v271_v28 = vmul.f32 %v1665_v16, %v1420_v11  ;;  %v1668_v55 = vld [vmem:[%s2877_s0 + $0x13] ss:$0 sm:$0xff]  ;;  %v1436_v63 = vld [vmem:[%s2876_s1 + $0x298] sm:$0xff]  ;;  %v1669_v4 = vld [vmem:[%s2877_s0 + $0x14] ss:$0 sm:$0xff] }
  0x25   :  { %v257_v31 = vadd.f32 %v253_v12, %v242_v18  ;;  %v258_v32 = vadd.f32 %v254_v13, %v243_v19  ;;  %v259_v33 = vadd.f32 %v255_v14, %v244_v20  ;;  %v260_v34 = vadd.f32 %v256_v15, %v245_v21  ;;  %v1435_v62 = vld [vmem:[%s2876_s1 + $0x290] sm:$0xff]  ;;  %v1437_v5 = vld [vmem:[%s2876_s1 + $0x2a0] sm:$0xff]  ;;  %v1438_v10 = vld [vmem:[%s2876_s1 + $0x2a8] sm:$0xff] }
  0x26   :  { %v283_v38 = vmul.f32 %v1666_v29, %v1421_v17  ;;  %v284_v39 = vmul.f32 %v1666_v29, %v1422_v22  ;;  %v285_v40 = vmul.f32 %v1666_v29, %v1423_v23  ;;  %v286_v41 = vmul.f32 %v1666_v29, %v1424_v24  ;;  %v1439_v11 = vld [vmem:[%s2876_s1 + $0x2b0] sm:$0xff]  ;;  %v1440_v12 = vld [vmem:[%s2876_s1 + $0x2b8] sm:$0xff]  ;;  %v1441_v18 = vld [vmem:[%s2876_s1 + $0x2c0] sm:$0xff] }
  0x27   :  { %v272_v44 = vadd.f32 %v268_v25, %v257_v31  ;;  %v273_v45 = vadd.f32 %v269_v26, %v258_v32  ;;  %v274_v46 = vadd.f32 %v270_v27, %v259_v33  ;;  %v275_v47 = vadd.f32 %v271_v28, %v260_v34  ;;  %v1670_v17 = vld [vmem:[%s2877_s0 + $0x15] ss:$0 sm:$0xff]  ;;  %v1442_v23 = vld [vmem:[%s2876_s1 + $0x2c8] sm:$0xff]  ;;  %v1444_v25 = vld [vmem:[%s2876_s1 + $0x2d8] sm:$0xff] }
  0x28   :  { %v298_v51 = vmul.f32 %v1667_v42, %v1425_v30  ;;  %v299_v52 = vmul.f32 %v1667_v42, %v1426_v35  ;;  %v300_v53 = vmul.f32 %v1667_v42, %v1427_v36  ;;  %v301_v54 = vmul.f32 %v1667_v42, %v1428_v37  ;;  %v1443_v24 = vld [vmem:[%s2876_s1 + $0x2d0] sm:$0xff]  ;;  %v1445_v31 = vld [vmem:[%s2876_s1 + $0x2e0] sm:$0xff]  ;;  %v1446_v36 = vld [vmem:[%s2876_s1 + $0x2e8] sm:$0xff] }
  0x29   :  { %v287_v57 = vadd.f32 %v283_v38, %v272_v44  ;;  %v288_v58 = vadd.f32 %v284_v39, %v273_v45  ;;  %v289_v59 = vadd.f32 %v285_v40, %v274_v46  ;;  %v290_v60 = vadd.f32 %v286_v41, %v275_v47  ;;  %v1671_v30 = vld [vmem:[%s2877_s0 + $0x16] ss:$0 sm:$0xff]  ;;  %v1448_v38 = vld [vmem:[%s2876_s1 + $0x2f8] sm:$0xff]  ;;  %v1449_v44 = vld [vmem:[%s2876_s1 + $0x300] sm:$0xff] }
  0x2a   :  { %v313_v0 = vmul.f32 %v1668_v55, %v1429_v43  ;;  %v314_v1 = vmul.f32 %v1668_v55, %v1430_v48  ;;  %v315_v2 = vmul.f32 %v1668_v55, %v1431_v49  ;;  %v316_v3 = vmul.f32 %v1668_v55, %v1432_v50  ;;  %v1447_v37 = vld [vmem:[%s2876_s1 + $0x2f0] sm:$0xff]  ;;  %v1450_v49 = vld [vmem:[%s2876_s1 + $0x308] sm:$0xff] }
  0x2b   :  { %v302_v6 = vadd.f32 %v298_v51, %v287_v57  ;;  %v303_v7 = vadd.f32 %v299_v52, %v288_v58  ;;  %v304_v8 = vadd.f32 %v300_v53, %v289_v59  ;;  %v305_v9 = vadd.f32 %v301_v54, %v290_v60  ;;  %v1672_v43 = vld [vmem:[%s2877_s0 + $0x17] ss:$0 sm:$0xff]  ;;  %v1452_v51 = vld [vmem:[%s2876_s1 + $0x318] sm:$0xff]  ;;  %v1453_v57 = vld [vmem:[%s2876_s1 + $0x320] sm:$0xff] }
  0x2c   :  { %v328_v13 = vmul.f32 %v1669_v4, %v1433_v56  ;;  %v329_v14 = vmul.f32 %v1669_v4, %v1434_v61  ;;  %v330_v15 = vmul.f32 %v1669_v4, %v1435_v62  ;;  %v331_v16 = vmul.f32 %v1669_v4, %v1436_v63  ;;  %v1451_v50 = vld [vmem:[%s2876_s1 + $0x310] sm:$0xff]  ;;  %v1673_v56 = vld [vmem:[%s2877_s0 + $0x18] ss:$0 sm:$0xff]  ;;  %v1454_v62 = vld [vmem:[%s2876_s1 + $0x328] sm:$0xff] }
  0x2d   :  { %v317_v19 = vadd.f32 %v313_v0, %v302_v6  ;;  %v318_v20 = vadd.f32 %v314_v1, %v303_v7  ;;  %v319_v21 = vadd.f32 %v315_v2, %v304_v8  ;;  %v320_v22 = vadd.f32 %v316_v3, %v305_v9  ;;  %v1455_v63 = vld [vmem:[%s2876_s1 + $0x330] sm:$0xff]  ;;  %v1456_v0 = vld [vmem:[%s2876_s1 + $0x338] sm:$0xff]  ;;  %v1457_v6 = vld [vmem:[%s2876_s1 + $0x340] sm:$0xff] }
  0x2e   :  { %v343_v26 = vmul.f32 %v1670_v17, %v1437_v5  ;;  %v344_v27 = vmul.f32 %v1670_v17, %v1438_v10  ;;  %v345_v28 = vmul.f32 %v1670_v17, %v1439_v11  ;;  %v346_v29 = vmul.f32 %v1670_v17, %v1440_v12  ;;  %v1674_v5 = vld [vmem:[%s2877_s0 + $0x19] ss:$0 sm:$0xff]  ;;  %v1458_v11 = vld [vmem:[%s2876_s1 + $0x348] sm:$0xff]  ;;  %v1459_v12 = vld [vmem:[%s2876_s1 + $0x350] sm:$0xff] }
  0x2f   :  { %v332_v32 = vadd.f32 %v328_v13, %v317_v19  ;;  %v333_v33 = vadd.f32 %v329_v14, %v318_v20  ;;  %v334_v34 = vadd.f32 %v330_v15, %v319_v21  ;;  %v335_v35 = vadd.f32 %v331_v16, %v320_v22  ;;  %v1460_v13 = vld [vmem:[%s2876_s1 + $0x358] sm:$0xff]  ;;  %v1461_v19 = vld [vmem:[%s2876_s1 + $0x360] sm:$0xff] }
  0x30   :  { %v358_v39 = vmul.f32 %v1671_v30, %v1441_v18  ;;  %v359_v40 = vmul.f32 %v1671_v30, %v1442_v23  ;;  %v360_v41 = vmul.f32 %v1671_v30, %v1443_v24  ;;  %v361_v42 = vmul.f32 %v1671_v30, %v1444_v25  ;;  %v1675_v18 = vld [vmem:[%s2877_s0 + $0x1a] ss:$0 sm:$0xff]  ;;  %v1462_v24 = vld [vmem:[%s2876_s1 + $0x368] sm:$0xff]  ;;  %v1463_v25 = vld [vmem:[%s2876_s1 + $0x370] sm:$0xff] }
  0x31   :  { %v347_v45 = vadd.f32 %v343_v26, %v332_v32  ;;  %v348_v46 = vadd.f32 %v344_v27, %v333_v33  ;;  %v349_v47 = vadd.f32 %v345_v28, %v334_v34  ;;  %v350_v48 = vadd.f32 %v346_v29, %v335_v35  ;;  %v1464_v26 = vld [vmem:[%s2876_s1 + $0x378] sm:$0xff]  ;;  %v1465_v32 = vld [vmem:[%s2876_s1 + $0x380] sm:$0xff] }
  0x32   :  { %v373_v52 = vmul.f32 %v1672_v43, %v1445_v31  ;;  %v374_v53 = vmul.f32 %v1672_v43, %v1446_v36  ;;  %v375_v54 = vmul.f32 %v1672_v43, %v1447_v37  ;;  %v376_v55 = vmul.f32 %v1672_v43, %v1448_v38  ;;  %v1676_v31 = vld [vmem:[%s2877_s0 + $0x1b] ss:$0 sm:$0xff]  ;;  %v1466_v37 = vld [vmem:[%s2876_s1 + $0x388] sm:$0xff]  ;;  %v1467_v38 = vld [vmem:[%s2876_s1 + $0x390] sm:$0xff] }
  0x33   :  { %v362_v58 = vadd.f32 %v358_v39, %v347_v45  ;;  %v363_v59 = vadd.f32 %v359_v40, %v348_v46  ;;  %v364_v60 = vadd.f32 %v360_v41, %v349_v47  ;;  %v365_v61 = vadd.f32 %v361_v42, %v350_v48  ;;  %v1468_v39 = vld [vmem:[%s2876_s1 + $0x398] sm:$0xff]  ;;  %v1469_v45 = vld [vmem:[%s2876_s1 + $0x3a0] sm:$0xff] }
  0x34   :  { %v388_v1 = vmul.f32 %v1673_v56, %v1449_v44  ;;  %v389_v2 = vmul.f32 %v1673_v56, %v1450_v49  ;;  %v390_v3 = vmul.f32 %v1673_v56, %v1451_v50  ;;  %v391_v4 = vmul.f32 %v1673_v56, %v1452_v51  ;;  %v1677_v44 = vld [vmem:[%s2877_s0 + $0x1c] ss:$0 sm:$0xff]  ;;  %v1470_v50 = vld [vmem:[%s2876_s1 + $0x3a8] sm:$0xff]  ;;  %v1471_v51 = vld [vmem:[%s2876_s1 + $0x3b0] sm:$0xff] }
  0x35   :  { %v377_v7 = vadd.f32 %v373_v52, %v362_v58  ;;  %v378_v8 = vadd.f32 %v374_v53, %v363_v59  ;;  %v379_v9 = vadd.f32 %v375_v54, %v364_v60  ;;  %v380_v10 = vadd.f32 %v376_v55, %v365_v61  ;;  %v1472_v52 = vld [vmem:[%s2876_s1 + $0x3b8] sm:$0xff]  ;;  %v1473_v58 = vld [vmem:[%s2876_s1 + $0x3c0] sm:$0xff] }
  0x36   :  { %v403_v14 = vmul.f32 %v1674_v5, %v1453_v57  ;;  %v404_v15 = vmul.f32 %v1674_v5, %v1454_v62  ;;  %v405_v16 = vmul.f32 %v1674_v5, %v1455_v63  ;;  %v406_v17 = vmul.f32 %v1674_v5, %v1456_v0  ;;  %v1678_v57 = vld [vmem:[%s2877_s0 + $0x1d] ss:$0 sm:$0xff]  ;;  %v1474_v63 = vld [vmem:[%s2876_s1 + $0x3c8] sm:$0xff]  ;;  %v1475_v0 = vld [vmem:[%s2876_s1 + $0x3d0] sm:$0xff] }
  0x37   :  { %v392_v20 = vadd.f32 %v388_v1, %v377_v7  ;;  %v393_v21 = vadd.f32 %v389_v2, %v378_v8  ;;  %v394_v22 = vadd.f32 %v390_v3, %v379_v9  ;;  %v395_v23 = vadd.f32 %v391_v4, %v380_v10  ;;  %v1476_v1 = vld [vmem:[%s2876_s1 + $0x3d8] sm:$0xff]  ;;  %v1477_v7 = vld [vmem:[%s2876_s1 + $0x3e0] sm:$0xff] }
  0x38   :  { %v418_v27 = vmul.f32 %v1675_v18, %v1457_v6  ;;  %v419_v28 = vmul.f32 %v1675_v18, %v1458_v11  ;;  %v420_v29 = vmul.f32 %v1675_v18, %v1459_v12  ;;  %v421_v30 = vmul.f32 %v1675_v18, %v1460_v13  ;;  %v1679_v6 = vld [vmem:[%s2877_s0 + $0x1e] ss:$0 sm:$0xff]  ;;  %v1478_v12 = vld [vmem:[%s2876_s1 + $0x3e8] sm:$0xff]  ;;  %v1479_v13 = vld [vmem:[%s2876_s1 + $0x3f0] sm:$0xff] }
  0x39   :  { %v407_v33 = vadd.f32 %v403_v14, %v392_v20  ;;  %v408_v34 = vadd.f32 %v404_v15, %v393_v21  ;;  %v409_v35 = vadd.f32 %v405_v16, %v394_v22  ;;  %v410_v36 = vadd.f32 %v406_v17, %v395_v23  ;;  %v1480_v14 = vld [vmem:[%s2876_s1 + $0x3f8] sm:$0xff] }
  0x3a   :  { %v433_v40 = vmul.f32 %v1676_v31, %v1461_v19  ;;  %v434_v41 = vmul.f32 %v1676_v31, %v1462_v24  ;;  %v435_v42 = vmul.f32 %v1676_v31, %v1463_v25  ;;  %v436_v43 = vmul.f32 %v1676_v31, %v1464_v26  ;;  %v1680_v19 = vld [vmem:[%s2877_s0 + $0x1f] ss:$0 sm:$0xff] }
  0x3b   :  { %v422_v46 = vadd.f32 %v418_v27, %v407_v33  ;;  %v423_v47 = vadd.f32 %v419_v28, %v408_v34  ;;  %v424_v48 = vadd.f32 %v420_v29, %v409_v35  ;;  %v425_v49 = vadd.f32 %v421_v30, %v410_v36 }
  0x3c   :  { %v448_v53 = vmul.f32 %v1677_v44, %v1465_v32  ;;  %v449_v54 = vmul.f32 %v1677_v44, %v1466_v37  ;;  %v450_v55 = vmul.f32 %v1677_v44, %v1467_v38  ;;  %v451_v56 = vmul.f32 %v1677_v44, %v1468_v39 }
  0x3d   :  { %v437_v59 = vadd.f32 %v433_v40, %v422_v46  ;;  %v438_v60 = vadd.f32 %v434_v41, %v423_v47  ;;  %v439_v61 = vadd.f32 %v435_v42, %v424_v48  ;;  %v440_v62 = vadd.f32 %v436_v43, %v425_v49 }
  0x3e   :  { %v463_v2 = vmul.f32 %v1678_v57, %v1469_v45  ;;  %v464_v3 = vmul.f32 %v1678_v57, %v1470_v50  ;;  %v465_v4 = vmul.f32 %v1678_v57, %v1471_v51  ;;  %v466_v5 = vmul.f32 %v1678_v57, %v1472_v52 }
  0x3f   :  { %v452_v8 = vadd.f32 %v448_v53, %v437_v59  ;;  %v453_v9 = vadd.f32 %v449_v54, %v438_v60  ;;  %v454_v10 = vadd.f32 %v450_v55, %v439_v61  ;;  %v455_v11 = vadd.f32 %v451_v56, %v440_v62 }
  0x40   :  { %v478_v15 = vmul.f32 %v1679_v6, %v1473_v58  ;;  %v479_v16 = vmul.f32 %v1679_v6, %v1474_v63  ;;  %v480_v17 = vmul.f32 %v1679_v6, %v1475_v0  ;;  %v481_v18 = vmul.f32 %v1679_v6, %v1476_v1 }
  0x41   :  { %v467_v20 = vadd.f32 %v463_v2, %v452_v8  ;;  %v468_v21 = vadd.f32 %v464_v3, %v453_v9  ;;  %v469_v22 = vadd.f32 %v465_v4, %v454_v10  ;;  %v470_v23 = vadd.f32 %v466_v5, %v455_v11  ;;  %v1502_v5 = vld [vmem:[%s2878_s2 + $0x88] sm:$0xff] }
  0x42   :  { %v493_v24 = vmul.f32 %v1680_v19, %v1477_v7  ;;  %v494_v25 = vmul.f32 %v1680_v19, %v1478_v12  ;;  %v495_v26 = vmul.f32 %v1680_v19, %v1479_v13  ;;  %v496_v27 = vmul.f32 %v1680_v19, %v1480_v14 }
  0x43   :  { %v482_v28 = vadd.f32 %v478_v15, %v467_v20  ;;  %v483_v29 = vadd.f32 %v479_v16, %v468_v21  ;;  %v484_v30 = vadd.f32 %v480_v17, %v469_v22  ;;  %v485_v31 = vadd.f32 %v481_v18, %v470_v23 }
  0x45   :  { %v2294_v32 = vadd.f32 %v493_v24, %v482_v28  ;;  %v2296_v33 = vadd.f32 %v494_v25, %v483_v29  ;;  %v2298_v34 = vadd.f32 %v495_v26, %v484_v30  ;;  %v2300_v35 = vadd.f32 %v496_v27, %v485_v31 }
  0x47   :  { %v1481_v36 = vmul.f32 -1.442695, %v2294_v32  ;;  %v1482_v37 = vmul.f32 -1.442695, %v2296_v33  ;;  %v1483_v38 = vmul.f32 -1.442695, %v2298_v34 }
  0x48   :  { %v1484_v39 = vmul.f32 -1.442695, %v2300_v35 }
  0x49   :  { %1745 = vpow2.f32 %v1481_v36  ;;  %v1489_v36 = vld [vmem:[%s2878_s2 + $0x20] sm:$0xff] }
  0x4a   :  { %1747 = vpow2.f32 %v1482_v37  ;;  %v1485_v37 = vld [vmem:[%s2878_s2 + $0x400] sm:$0xff] }
  0x4b   :  { %1749 = vpow2.f32 %v1483_v38  ;;  %v1486_v38 = vld [vmem:[%s2878_s2 + $0x408] sm:$0xff] }
  0x4c   :  { %1751 = vpow2.f32 %v1484_v39  ;;  %v1487_v39 = vld [vmem:[%s2878_s2 + $0x410] sm:$0xff] }
  0x4f   :  { %v1746_v40 = vpop.eup %1745 }
  0x50   :  { %v1748_v41 = vpop.eup %1747  ;;  %v513_v42 = vadd.f32 1.0, %v1746_v40  ;;  %v1488_v40 = vld [vmem:[%s2878_s2 + $0x418] sm:$0xff] }
  0x51   :  { %v1750_v43 = vpop.eup %1749  ;;  %v514_v44 = vadd.f32 1.0, %v1748_v41  ;;  %v1490_v41 = vld [vmem:[%s2878_s2 + $0x28] sm:$0xff] }
  0x52   :  { %v1752_v45 = vpop.eup %1751  ;;  %v515_v46 = vadd.f32 1.0, %v1750_v43  ;;  %1753 = vrcp.f32 %v513_v42  ;;  %v526_v48 = vand.u32 2147483647, %v513_v42  ;;  %v528_v49 = vand.u32 2147483648, %v513_v42  ;;  %v1492_v43 = vld [vmem:[%s2878_s2 + $0x38] sm:$0xff] }
  0x53   :  { %v516_v47 = vadd.f32 1.0, %v1752_v45  ;;  %1755 = vrcp.f32 %v514_v44  ;;  %v543_v51 = vand.u32 2147483648, %v514_v44  ;;  %vm522_vm0 = vweird.f32 %v513_v42  ;;  %v1493_v45 = vld [vmem:[%s2878_s2 + $0x40] sm:$0xff] }
  0x54   :  { %1757 = vrcp.f32 %v515_v46  ;;  %vm2306_vm1 = vcmp.eq.f32.partialorder %v526_v48, 8.507059e+37  ;;  %vm537_vm2 = vweird.f32 %v514_v44  ;;  %v529_v56 = vor.u32 1.1754944e-38, %v528_v49  ;;  %v1496_v48 = vld [vmem:[%s2878_s2 + $0x58] sm:$0xff] }
  0x55   :  { %1759 = vrcp.f32 %v516_v47  ;;  %v541_v58 = vand.u32 2147483647, %v514_v44  ;;  %vm552_vm3 = vweird.f32 %v515_v46  ;;  %v556_v61 = vand.u32 2147483647, %v515_v46 }
  0x56   :  { %v544_v0 = vor.u32 1.1754944e-38, %v543_v51  ;;  %v558_v1 = vand.u32 2147483648, %v515_v46  ;;  %vm567_vm8 = vweird.f32 %v516_v47  ;;  %v571_v7 = vand.u32 2147483647, %v516_v47 }
  0x57   :  { %v573_v8 = vand.u32 2147483648, %v516_v47  ;;  %vm542_vm11 = vcmp.eq.f32.partialorder %v541_v58, 8.507059e+37  ;;  %vm557_vm14 = vcmp.eq.f32.partialorder %v556_v61, 8.507059e+37 }
  0x58   :  { %v1754_v50 = vpop.eup %1753  ;;  %v559_v15 = vor.u32 1.1754944e-38, %v558_v1 }
  0x59   :  { %v1756_v52 = vpop.eup %1755  ;;  %v518_v53 = vmul.f32 %v1754_v50, %v513_v42  ;;  %vm523_vm4 = vweird.f32 %v1754_v50  ;;  %v574_v21 = vor.u32 1.1754944e-38, %v573_v8  ;;  %v1491_v42 = vld [vmem:[%s2878_s2 + $0x30] sm:$0xff] }
  0x5a   :  { %v1758_v55 = vpop.eup %1757  ;;  %v533_v57 = vmul.f32 %v1756_v52, %v514_v44  ;;  %vm538_vm5 = vweird.f32 %v1756_v52  ;;  %vm2311_vm7 = vmor %vm522_vm0, %vm523_vm4  ;;  %vm572_vm0 = vcmp.eq.f32.partialorder %v571_v7, 8.507059e+37 }
  0x5b   :  { %v519_v59 = vsub.f32 1.0, %v518_v53  ;;  %v548_v60 = vmul.f32 %v1758_v55, %v515_v46  ;;  %v1760_v62 = vpop.eup %1759  ;;  %vm553_vm6 = vweird.f32 %v1758_v55  ;;  %vm2316_vm9 = vmor %vm537_vm2, %vm538_vm5  ;;  %v1494_v46 = vld [vmem:[%s2878_s2 + $0x48] sm:$0xff] }
  0x5c   :  { %v534_v63 = vsub.f32 1.0, %v533_v57  ;;  %v563_v4 = vmul.f32 %v1760_v62, %v516_v47  ;;  %vm568_vm10 = vweird.f32 %v1760_v62  ;;  %vm2321_vm12 = vmor %vm552_vm3, %vm553_vm6  ;;  %v1495_v47 = vld [vmem:[%s2878_s2 + $0x50] sm:$0xff] }
  0x5d   :  { %v520_v2 = vmul.f32 %v1754_v50, %v519_v59  ;;  %v549_v3 = vsub.f32 1.0, %v548_v60  ;;  %vm569_vm15 = vmor %vm567_vm8, %vm568_vm10  ;;  %v1499_v57 = vld [vmem:[%s2878_s2 + $0x70] sm:$0xff] }
  0x5e   :  { %v535_v6 = vmul.f32 %v1756_v52, %v534_v63  ;;  %v564_v12 = vsub.f32 1.0, %v563_v4  ;;  %v1501_v4 = vld [vmem:[%s2878_s2 + $0x80] sm:$0xff] }
  0x5f   :  { %v521_v9 = vadd.f32 %v1754_v50, %v520_v2  ;;  %v550_v11 = vmul.f32 %v1758_v55, %v549_v3 }
  0x60   :  { %v536_v13 = vadd.f32 %v1756_v52, %v535_v6  ;;  %v565_v18 = vmul.f32 %v1760_v62, %v564_v12  ;;  %v1503_v6 = vld [vmem:[%s2878_s2 + $0x90] sm:$0xff] }
  0x61   :  { %v525_v16 = vsel %vm2311_vm7, %v1754_v50, %v521_v9  ;;  %v551_v17 = vadd.f32 %v1758_v55, %v550_v11  ;;  %v1504_v11 = vld [vmem:[%s2878_s2 + $0x98] sm:$0xff] }
  0x62   :  { %v530_v19 = vsel %vm2306_vm1, %v529_v56, %v525_v16  ;;  %v540_v20 = vsel %vm2316_vm9, %v1756_v52, %v536_v13  ;;  %v566_v24 = vadd.f32 %v1760_v62, %v565_v18  ;;  %v1498_v56 = vld [vmem:[%s2878_s2 + $0x68] sm:$0xff] }
  0x63   :  { %v545_v22 = vsel %vm542_vm11, %v544_v0, %v540_v20  ;;  %v555_v23 = vsel %vm2321_vm12, %v1758_v55, %v551_v17  ;;  %v577_v25 = vmul.f32 %v530_v19, %v2294_v32  ;;  %v592_v32 = vld [vmem:[%s2878_s2] sm:$0xff]  ;;  %v1506_v18 = vld [vmem:[%s2878_s2 + $0xa8] sm:$0xff]  ;;  %v1507_v19 = vld [vmem:[%s2878_s2 + $0xb0] sm:$0xff] }
  0x64   :  { %v560_v26 = vsel %vm557_vm14, %v559_v15, %v555_v23  ;;  %v578_v27 = vmul.f32 %v545_v22, %v2296_v33  ;;  %v570_v28 = vsel %vm569_vm15, %v1760_v62, %v566_v24  ;;  %v593_v33 = vld [vmem:[%s2878_s2 + $0x8] sm:$0xff]  ;;  %v1497_v55 = vld [vmem:[%s2878_s2 + $0x60] sm:$0xff]  ;;  %v1500_v62 = vld [vmem:[%s2878_s2 + $0x78] sm:$0xff] }
  0x65   :  { %v579_v29 = vmul.f32 %v560_v26, %v2298_v34  ;;  %582 = vst.msk [vmem:[#allocation2] sm:$0xff] %vm581_vm13, %v577_v25  ;;  %v575_v30 = vsel %vm572_vm0, %v574_v21, %v570_v28  ;;  %v594_v34 = vld [vmem:[%s2878_s2 + $0x10] sm:$0xff]  ;;  %v1505_v17 = vld [vmem:[%s2878_s2 + $0xa0] sm:$0xff]  ;;  %v1508_v24 = vld [vmem:[%s2878_s2 + $0xb8] sm:$0xff] }
  0x66   :  { %583 = vst.msk [vmem:[#allocation2 + $0x8] sm:$0xff] %vm581_vm13, %v578_v27  ;;  %v580_v31 = vmul.f32 %v575_v30, %v2300_v35  ;;  %v595_v35 = vld [vmem:[%s2878_s2 + $0x18] sm:$0xff]  ;;  %v1509_v30 = vld [vmem:[%s2878_s2 + $0xc0] sm:$0xff] }
  0x67   :  { %584 = vst.msk [vmem:[#allocation2 + $0x10] sm:$0xff] %vm581_vm13, %v579_v29 }
  0x68   :  { %585 = vst.msk [vmem:[#allocation2 + $0x18] sm:$0xff] %vm581_vm13, %v580_v31 }
  0x6c   :  { %v1681_v44 = vld [vmem:[#allocation2] ss:$0 sm:$0xff]  ;;  %v1682_v49 = vld [vmem:[#allocation2 + $0x1] ss:$0 sm:$0xff]  ;;  %v1683_v50 = vld [vmem:[#allocation2 + $0x2] ss:$0 sm:$0xff] }
  0x6d   :  { %v597_v51 = vmul.f32 %v1681_v44, %v592_v32  ;;  %v598_v52 = vmul.f32 %v1681_v44, %v593_v33  ;;  %v599_v53 = vmul.f32 %v1681_v44, %v594_v34  ;;  %v600_v54 = vmul.f32 %v1681_v44, %v595_v35  ;;  %v1684_v63 = vld [vmem:[#allocation2 + $0x3] ss:$0 sm:$0xff]  ;;  %v1685_v12 = vld [vmem:[#allocation2 + $0x4] ss:$0 sm:$0xff]  ;;  %v1686_v25 = vld [vmem:[#allocation2 + $0x5] ss:$0 sm:$0xff] }
  0x6e   :  { %v612_v58 = vmul.f32 %v1682_v49, %v1489_v36  ;;  %v613_v59 = vmul.f32 %v1682_v49, %v1490_v41  ;;  %v614_v60 = vmul.f32 %v1682_v49, %v1491_v42  ;;  %v615_v61 = vmul.f32 %v1682_v49, %v1492_v43  ;;  %v1510_v35 = vld [vmem:[%s2878_s2 + $0xc8] sm:$0xff]  ;;  %v1687_v36 = vld [vmem:[#allocation2 + $0x6] ss:$0 sm:$0xff]  ;;  %v1511_v41 = vld [vmem:[%s2878_s2 + $0xd0] sm:$0xff] }
  0x6f   :  { %v601_v0 = vadd.f32 %v1485_v37, %v597_v51  ;;  %v602_v1 = vadd.f32 %v1486_v38, %v598_v52  ;;  %v603_v2 = vadd.f32 %v1487_v39, %v599_v53  ;;  %v604_v3 = vadd.f32 %v1488_v40, %v600_v54  ;;  %v1512_v42 = vld [vmem:[%s2878_s2 + $0xd8] sm:$0xff]  ;;  %v1514_v53 = vld [vmem:[%s2878_s2 + $0xe8] sm:$0xff]  ;;  %v1515_v54 = vld [vmem:[%s2878_s2 + $0xf0] sm:$0xff] }
  0x70   :  { %v627_v7 = vmul.f32 %v1683_v50, %v1493_v45  ;;  %v628_v8 = vmul.f32 %v1683_v50, %v1494_v46  ;;  %v629_v9 = vmul.f32 %v1683_v50, %v1495_v47  ;;  %v630_v10 = vmul.f32 %v1683_v50, %v1496_v48  ;;  %v1513_v47 = vld [vmem:[%s2878_s2 + $0xe0] sm:$0xff] }
  0x71   :  { %v616_v13 = vadd.f32 %v612_v58, %v601_v0  ;;  %v617_v14 = vadd.f32 %v613_v59, %v602_v1  ;;  %v618_v15 = vadd.f32 %v614_v60, %v603_v2  ;;  %v619_v16 = vadd.f32 %v615_v61, %v604_v3  ;;  %v1688_v48 = vld [vmem:[#allocation2 + $0x7] ss:$0 sm:$0xff]  ;;  %v1689_v61 = vld [vmem:[#allocation2 + $0x8] ss:$0 sm:$0xff]  ;;  %v1519_v3 = vld [vmem:[%s2878_s2 + $0x110] sm:$0xff] }
  0x72   :  { %v642_v20 = vmul.f32 %v1684_v63, %v1497_v55  ;;  %v643_v21 = vmul.f32 %v1684_v63, %v1498_v56  ;;  %v644_v22 = vmul.f32 %v1684_v63, %v1499_v57  ;;  %v645_v23 = vmul.f32 %v1684_v63, %v1500_v62  ;;  %v1516_v55 = vld [vmem:[%s2878_s2 + $0xf8] sm:$0xff]  ;;  %v1517_v60 = vld [vmem:[%s2878_s2 + $0x100] sm:$0xff]  ;;  %v1518_v2 = vld [vmem:[%s2878_s2 + $0x108] sm:$0xff] }
  0x73   :  { %v631_v26 = vadd.f32 %v627_v7, %v616_v13  ;;  %v632_v27 = vadd.f32 %v628_v8, %v617_v14  ;;  %v633_v28 = vadd.f32 %v629_v9, %v618_v15  ;;  %v634_v29 = vadd.f32 %v630_v10, %v619_v16  ;;  %v1521_v9 = vld [vmem:[%s2878_s2 + $0x120] sm:$0xff]  ;;  %v1690_v10 = vld [vmem:[#allocation2 + $0x9] ss:$0 sm:$0xff]  ;;  %v1523_v16 = vld [vmem:[%s2878_s2 + $0x130] sm:$0xff] }
  0x74   :  { %v657_v31 = vmul.f32 %v1685_v12, %v1501_v4  ;;  %v658_v32 = vmul.f32 %v1685_v12, %v1502_v5  ;;  %v659_v33 = vmul.f32 %v1685_v12, %v1503_v6  ;;  %v660_v34 = vmul.f32 %v1685_v12, %v1504_v11  ;;  %v1520_v4 = vld [vmem:[%s2878_s2 + $0x118] sm:$0xff]  ;;  %v1522_v15 = vld [vmem:[%s2878_s2 + $0x128] sm:$0xff] }
  0x75   :  { %v646_v37 = vadd.f32 %v642_v20, %v631_v26  ;;  %v647_v38 = vadd.f32 %v643_v21, %v632_v27  ;;  %v648_v39 = vadd.f32 %v644_v22, %v633_v28  ;;  %v649_v40 = vadd.f32 %v645_v23, %v634_v29  ;;  %v1525_v22 = vld [vmem:[%s2878_s2 + $0x140] sm:$0xff]  ;;  %v1691_v23 = vld [vmem:[#allocation2 + $0xa] ss:$0 sm:$0xff]  ;;  %v1527_v29 = vld [vmem:[%s2878_s2 + $0x150] sm:$0xff] }
  0x76   :  { %v672_v43 = vmul.f32 %v1686_v25, %v1505_v17  ;;  %v673_v44 = vmul.f32 %v1686_v25, %v1506_v18  ;;  %v674_v45 = vmul.f32 %v1686_v25, %v1507_v19  ;;  %v675_v46 = vmul.f32 %v1686_v25, %v1508_v24  ;;  %v1524_v17 = vld [vmem:[%s2878_s2 + $0x138] sm:$0xff]  ;;  %v1526_v28 = vld [vmem:[%s2878_s2 + $0x148] sm:$0xff] }
  0x77   :  { %v661_v49 = vadd.f32 %v657_v31, %v646_v37  ;;  %v662_v50 = vadd.f32 %v658_v32, %v647_v38  ;;  %v663_v51 = vadd.f32 %v659_v33, %v648_v39  ;;  %v664_v52 = vadd.f32 %v660_v34, %v649_v40 }
  0x78   :  { %v687_v56 = vmul.f32 %v1687_v36, %v1509_v30  ;;  %v688_v57 = vmul.f32 %v1687_v36, %v1510_v35  ;;  %v689_v58 = vmul.f32 %v1687_v36, %v1511_v41  ;;  %v690_v59 = vmul.f32 %v1687_v36, %v1512_v42  ;;  %v1528_v30 = vld [vmem:[%s2878_s2 + $0x158] sm:$0xff]  ;;  %v1529_v35 = vld [vmem:[%s2878_s2 + $0x160] sm:$0xff]  ;;  %v1692_v36 = vld [vmem:[#allocation2 + $0xb] ss:$0 sm:$0xff] }
  0x79   :  { %v676_v62 = vadd.f32 %v672_v43, %v661_v49  ;;  %v677_v63 = vadd.f32 %v673_v44, %v662_v50  ;;  %v678_v0 = vadd.f32 %v674_v45, %v663_v51  ;;  %v679_v1 = vadd.f32 %v675_v46, %v664_v52  ;;  %v1530_v41 = vld [vmem:[%s2878_s2 + $0x168] sm:$0xff]  ;;  %v1531_v42 = vld [vmem:[%s2878_s2 + $0x170] sm:$0xff]  ;;  %v1532_v43 = vld [vmem:[%s2878_s2 + $0x178] sm:$0xff] }
  0x7a   :  { %v702_v5 = vmul.f32 %v1688_v48, %v1513_v47  ;;  %v703_v6 = vmul.f32 %v1688_v48, %v1514_v53  ;;  %v704_v7 = vmul.f32 %v1688_v48, %v1515_v54  ;;  %v705_v8 = vmul.f32 %v1688_v48, %v1516_v55  ;;  %v1533_v48 = vld [vmem:[%s2878_s2 + $0x180] sm:$0xff]  ;;  %v1693_v49 = vld [vmem:[#allocation2 + $0xc] ss:$0 sm:$0xff]  ;;  %v1535_v55 = vld [vmem:[%s2878_s2 + $0x190] sm:$0xff] }
  0x7b   :  { %v691_v11 = vadd.f32 %v687_v56, %v676_v62  ;;  %v692_v12 = vadd.f32 %v688_v57, %v677_v63  ;;  %v693_v13 = vadd.f32 %v689_v58, %v678_v0  ;;  %v694_v14 = vadd.f32 %v690_v59, %v679_v1  ;;  %v1534_v54 = vld [vmem:[%s2878_s2 + $0x188] sm:$0xff]  ;;  %v1536_v56 = vld [vmem:[%s2878_s2 + $0x198] sm:$0xff] }
  0x7c   :  { %v717_v18 = vmul.f32 %v1689_v61, %v1517_v60  ;;  %v718_v19 = vmul.f32 %v1689_v61, %v1518_v2  ;;  %v719_v20 = vmul.f32 %v1689_v61, %v1519_v3  ;;  %v720_v21 = vmul.f32 %v1689_v61, %v1520_v4  ;;  %v1537_v61 = vld [vmem:[%s2878_s2 + $0x1a0] sm:$0xff]  ;;  %v1694_v62 = vld [vmem:[#allocation2 + $0xd] ss:$0 sm:$0xff]  ;;  %v1539_v4 = vld [vmem:[%s2878_s2 + $0x1b0] sm:$0xff] }
  0x7d   :  { %v706_v24 = vadd.f32 %v702_v5, %v691_v11  ;;  %v707_v25 = vadd.f32 %v703_v6, %v692_v12  ;;  %v708_v26 = vadd.f32 %v704_v7, %v693_v13  ;;  %v709_v27 = vadd.f32 %v705_v8, %v694_v14  ;;  %v1538_v3 = vld [vmem:[%s2878_s2 + $0x1a8] sm:$0xff]  ;;  %v1540_v5 = vld [vmem:[%s2878_s2 + $0x1b8] sm:$0xff] }
  0x7e   :  { %v732_v31 = vmul.f32 %v1690_v10, %v1521_v9  ;;  %v733_v32 = vmul.f32 %v1690_v10, %v1522_v15  ;;  %v734_v33 = vmul.f32 %v1690_v10, %v1523_v16  ;;  %v735_v34 = vmul.f32 %v1690_v10, %v1524_v17  ;;  %v1541_v10 = vld [vmem:[%s2878_s2 + $0x1c0] sm:$0xff]  ;;  %v1695_v11 = vld [vmem:[#allocation2 + $0xe] ss:$0 sm:$0xff]  ;;  %v1543_v17 = vld [vmem:[%s2878_s2 + $0x1d0] sm:$0xff] }
  0x7f   :  { %v721_v37 = vadd.f32 %v717_v18, %v706_v24  ;;  %v722_v38 = vadd.f32 %v718_v19, %v707_v25  ;;  %v723_v39 = vadd.f32 %v719_v20, %v708_v26  ;;  %v724_v40 = vadd.f32 %v720_v21, %v709_v27  ;;  %v1542_v16 = vld [vmem:[%s2878_s2 + $0x1c8] sm:$0xff]  ;;  %v1544_v18 = vld [vmem:[%s2878_s2 + $0x1d8] sm:$0xff] }
  0x80   :  { %v747_v44 = vmul.f32 %v1691_v23, %v1525_v22  ;;  %v748_v45 = vmul.f32 %v1691_v23, %v1526_v28  ;;  %v749_v46 = vmul.f32 %v1691_v23, %v1527_v29  ;;  %v750_v47 = vmul.f32 %v1691_v23, %v1528_v30  ;;  %v1545_v23 = vld [vmem:[%s2878_s2 + $0x1e0] sm:$0xff]  ;;  %v1696_v24 = vld [vmem:[#allocation2 + $0xf] ss:$0 sm:$0xff]  ;;  %v1547_v30 = vld [vmem:[%s2878_s2 + $0x1f0] sm:$0xff] }
  0x81   :  { %v736_v50 = vadd.f32 %v732_v31, %v721_v37  ;;  %v737_v51 = vadd.f32 %v733_v32, %v722_v38  ;;  %v738_v52 = vadd.f32 %v734_v33, %v723_v39  ;;  %v739_v53 = vadd.f32 %v735_v34, %v724_v40  ;;  %v1546_v29 = vld [vmem:[%s2878_s2 + $0x1e8] sm:$0xff]  ;;  %v1548_v31 = vld [vmem:[%s2878_s2 + $0x1f8] sm:$0xff]  ;;  %v1697_v37 = vld [vmem:[#allocation2 + $0x10] ss:$0 sm:$0xff] }
  0x82   :  { %v762_v57 = vmul.f32 %v1692_v36, %v1529_v35  ;;  %v763_v58 = vmul.f32 %v1692_v36, %v1530_v41  ;;  %v764_v59 = vmul.f32 %v1692_v36, %v1531_v42  ;;  %v765_v60 = vmul.f32 %v1692_v36, %v1532_v43  ;;  %v1549_v36 = vld [vmem:[%s2878_s2 + $0x200] sm:$0xff]  ;;  %v1550_v42 = vld [vmem:[%s2878_s2 + $0x208] sm:$0xff]  ;;  %v1551_v43 = vld [vmem:[%s2878_s2 + $0x210] sm:$0xff] }
  0x83   :  { %v751_v63 = vadd.f32 %v747_v44, %v736_v50  ;;  %v752_v0 = vadd.f32 %v748_v45, %v737_v51  ;;  %v753_v1 = vadd.f32 %v749_v46, %v738_v52  ;;  %v754_v2 = vadd.f32 %v750_v47, %v739_v53  ;;  %v1552_v44 = vld [vmem:[%s2878_s2 + $0x218] sm:$0xff]  ;;  %v1698_v50 = vld [vmem:[#allocation2 + $0x11] ss:$0 sm:$0xff] }
  0x84   :  { %v777_v6 = vmul.f32 %v1693_v49, %v1533_v48  ;;  %v778_v7 = vmul.f32 %v1693_v49, %v1534_v54  ;;  %v779_v8 = vmul.f32 %v1693_v49, %v1535_v55  ;;  %v780_v9 = vmul.f32 %v1693_v49, %v1536_v56  ;;  %v1553_v49 = vld [vmem:[%s2878_s2 + $0x220] sm:$0xff]  ;;  %v1554_v55 = vld [vmem:[%s2878_s2 + $0x228] sm:$0xff]  ;;  %v1555_v56 = vld [vmem:[%s2878_s2 + $0x230] sm:$0xff] }
  0x85   :  { %v766_v12 = vadd.f32 %v762_v57, %v751_v63  ;;  %v767_v13 = vadd.f32 %v763_v58, %v752_v0  ;;  %v768_v14 = vadd.f32 %v764_v59, %v753_v1  ;;  %v769_v15 = vadd.f32 %v765_v60, %v754_v2  ;;  %v1556_v57 = vld [vmem:[%s2878_s2 + $0x238] sm:$0xff]  ;;  %v1699_v63 = vld [vmem:[#allocation2 + $0x12] ss:$0 sm:$0xff] }
  0x86   :  { %v792_v19 = vmul.f32 %v1694_v62, %v1537_v61  ;;  %v793_v20 = vmul.f32 %v1694_v62, %v1538_v3  ;;  %v794_v21 = vmul.f32 %v1694_v62, %v1539_v4  ;;  %v795_v22 = vmul.f32 %v1694_v62, %v1540_v5  ;;  %v1557_v62 = vld [vmem:[%s2878_s2 + $0x240] sm:$0xff]  ;;  %v1558_v4 = vld [vmem:[%s2878_s2 + $0x248] sm:$0xff]  ;;  %v1559_v5 = vld [vmem:[%s2878_s2 + $0x250] sm:$0xff] }
  0x87   :  { %v781_v25 = vadd.f32 %v777_v6, %v766_v12  ;;  %v782_v26 = vadd.f32 %v778_v7, %v767_v13  ;;  %v783_v27 = vadd.f32 %v779_v8, %v768_v14  ;;  %v784_v28 = vadd.f32 %v780_v9, %v769_v15  ;;  %v1560_v6 = vld [vmem:[%s2878_s2 + $0x258] sm:$0xff]  ;;  %v1700_v12 = vld [vmem:[#allocation2 + $0x13] ss:$0 sm:$0xff] }
  0x88   :  { %v807_v32 = vmul.f32 %v1695_v11, %v1541_v10  ;;  %v808_v33 = vmul.f32 %v1695_v11, %v1542_v16  ;;  %v809_v34 = vmul.f32 %v1695_v11, %v1543_v17  ;;  %v810_v35 = vmul.f32 %v1695_v11, %v1544_v18  ;;  %v1561_v11 = vld [vmem:[%s2878_s2 + $0x260] sm:$0xff]  ;;  %v1562_v17 = vld [vmem:[%s2878_s2 + $0x268] sm:$0xff]  ;;  %v1563_v18 = vld [vmem:[%s2878_s2 + $0x270] sm:$0xff] }
  0x89   :  { %v796_v38 = vadd.f32 %v792_v19, %v781_v25  ;;  %v797_v39 = vadd.f32 %v793_v20, %v782_v26  ;;  %v798_v40 = vadd.f32 %v794_v21, %v783_v27  ;;  %v799_v41 = vadd.f32 %v795_v22, %v784_v28  ;;  %v1564_v19 = vld [vmem:[%s2878_s2 + $0x278] sm:$0xff]  ;;  %v1701_v25 = vld [vmem:[#allocation2 + $0x14] ss:$0 sm:$0xff] }
  0x8a   :  { %v822_v45 = vmul.f32 %v1696_v24, %v1545_v23  ;;  %v823_v46 = vmul.f32 %v1696_v24, %v1546_v29  ;;  %v824_v47 = vmul.f32 %v1696_v24, %v1547_v30  ;;  %v825_v48 = vmul.f32 %v1696_v24, %v1548_v31  ;;  %v1565_v24 = vld [vmem:[%s2878_s2 + $0x280] sm:$0xff]  ;;  %v1566_v30 = vld [vmem:[%s2878_s2 + $0x288] sm:$0xff]  ;;  %v1567_v31 = vld [vmem:[%s2878_s2 + $0x290] sm:$0xff] }
  0x8b   :  { %v811_v51 = vadd.f32 %v807_v32, %v796_v38  ;;  %v812_v52 = vadd.f32 %v808_v33, %v797_v39  ;;  %v813_v53 = vadd.f32 %v809_v34, %v798_v40  ;;  %v814_v54 = vadd.f32 %v810_v35, %v799_v41  ;;  %v1568_v32 = vld [vmem:[%s2878_s2 + $0x298] sm:$0xff]  ;;  %v1702_v38 = vld [vmem:[#allocation2 + $0x15] ss:$0 sm:$0xff] }
  0x8c   :  { %v837_v58 = vmul.f32 %v1697_v37, %v1549_v36  ;;  %v838_v59 = vmul.f32 %v1697_v37, %v1550_v42  ;;  %v839_v60 = vmul.f32 %v1697_v37, %v1551_v43  ;;  %v840_v61 = vmul.f32 %v1697_v37, %v1552_v44  ;;  %v1569_v37 = vld [vmem:[%s2878_s2 + $0x2a0] sm:$0xff]  ;;  %v1570_v43 = vld [vmem:[%s2878_s2 + $0x2a8] sm:$0xff]  ;;  %v1571_v44 = vld [vmem:[%s2878_s2 + $0x2b0] sm:$0xff] }
  0x8d   :  { %v826_v0 = vadd.f32 %v822_v45, %v811_v51  ;;  %v827_v1 = vadd.f32 %v823_v46, %v812_v52  ;;  %v828_v2 = vadd.f32 %v824_v47, %v813_v53  ;;  %v829_v3 = vadd.f32 %v825_v48, %v814_v54  ;;  %v1572_v45 = vld [vmem:[%s2878_s2 + $0x2b8] sm:$0xff]  ;;  %v1703_v51 = vld [vmem:[#allocation2 + $0x16] ss:$0 sm:$0xff] }
  0x8e   :  { %v852_v7 = vmul.f32 %v1698_v50, %v1553_v49  ;;  %v853_v8 = vmul.f32 %v1698_v50, %v1554_v55  ;;  %v854_v9 = vmul.f32 %v1698_v50, %v1555_v56  ;;  %v855_v10 = vmul.f32 %v1698_v50, %v1556_v57  ;;  %v1573_v50 = vld [vmem:[%s2878_s2 + $0x2c0] sm:$0xff]  ;;  %v1574_v56 = vld [vmem:[%s2878_s2 + $0x2c8] sm:$0xff]  ;;  %v1575_v57 = vld [vmem:[%s2878_s2 + $0x2d0] sm:$0xff] }
  0x8f   :  { %v841_v13 = vadd.f32 %v837_v58, %v826_v0  ;;  %v842_v14 = vadd.f32 %v838_v59, %v827_v1  ;;  %v843_v15 = vadd.f32 %v839_v60, %v828_v2  ;;  %v844_v16 = vadd.f32 %v840_v61, %v829_v3  ;;  %v1576_v58 = vld [vmem:[%s2878_s2 + $0x2d8] sm:$0xff]  ;;  %v1704_v0 = vld [vmem:[#allocation2 + $0x17] ss:$0 sm:$0xff] }
  0x90   :  { %v867_v20 = vmul.f32 %v1699_v63, %v1557_v62  ;;  %v868_v21 = vmul.f32 %v1699_v63, %v1558_v4  ;;  %v869_v22 = vmul.f32 %v1699_v63, %v1559_v5  ;;  %v870_v23 = vmul.f32 %v1699_v63, %v1560_v6  ;;  %v1577_v63 = vld [vmem:[%s2878_s2 + $0x2e0] sm:$0xff]  ;;  %v1578_v5 = vld [vmem:[%s2878_s2 + $0x2e8] sm:$0xff]  ;;  %v1579_v6 = vld [vmem:[%s2878_s2 + $0x2f0] sm:$0xff] }
  0x91   :  { %v856_v26 = vadd.f32 %v852_v7, %v841_v13  ;;  %v857_v27 = vadd.f32 %v853_v8, %v842_v14  ;;  %v858_v28 = vadd.f32 %v854_v9, %v843_v15  ;;  %v859_v29 = vadd.f32 %v855_v10, %v844_v16  ;;  %v1580_v7 = vld [vmem:[%s2878_s2 + $0x2f8] sm:$0xff] }
  0x92   :  { %v882_v33 = vmul.f32 %v1700_v12, %v1561_v11  ;;  %v883_v34 = vmul.f32 %v1700_v12, %v1562_v17  ;;  %v884_v35 = vmul.f32 %v1700_v12, %v1563_v18  ;;  %v885_v36 = vmul.f32 %v1700_v12, %v1564_v19  ;;  %v1581_v12 = vld [vmem:[%s2878_s2 + $0x300] sm:$0xff]  ;;  %v1705_v13 = vld [vmem:[#allocation2 + $0x18] ss:$0 sm:$0xff]  ;;  %v1582_v18 = vld [vmem:[%s2878_s2 + $0x308] sm:$0xff] }
  0x93   :  { %v871_v39 = vadd.f32 %v867_v20, %v856_v26  ;;  %v872_v40 = vadd.f32 %v868_v21, %v857_v27  ;;  %v873_v41 = vadd.f32 %v869_v22, %v858_v28  ;;  %v874_v42 = vadd.f32 %v870_v23, %v859_v29  ;;  %v1583_v19 = vld [vmem:[%s2878_s2 + $0x310] sm:$0xff]  ;;  %v1584_v20 = vld [vmem:[%s2878_s2 + $0x318] sm:$0xff] }
  0x94   :  { %v897_v46 = vmul.f32 %v1701_v25, %v1565_v24  ;;  %v898_v47 = vmul.f32 %v1701_v25, %v1566_v30  ;;  %v899_v48 = vmul.f32 %v1701_v25, %v1567_v31  ;;  %v900_v49 = vmul.f32 %v1701_v25, %v1568_v32  ;;  %v1585_v25 = vld [vmem:[%s2878_s2 + $0x320] sm:$0xff]  ;;  %v1706_v26 = vld [vmem:[#allocation2 + $0x19] ss:$0 sm:$0xff]  ;;  %v1586_v31 = vld [vmem:[%s2878_s2 + $0x328] sm:$0xff] }
  0x95   :  { %v886_v52 = vadd.f32 %v882_v33, %v871_v39  ;;  %v887_v53 = vadd.f32 %v883_v34, %v872_v40  ;;  %v888_v54 = vadd.f32 %v884_v35, %v873_v41  ;;  %v889_v55 = vadd.f32 %v885_v36, %v874_v42  ;;  %v1587_v32 = vld [vmem:[%s2878_s2 + $0x330] sm:$0xff]  ;;  %v1588_v33 = vld [vmem:[%s2878_s2 + $0x338] sm:$0xff] }
  0x96   :  { %v912_v59 = vmul.f32 %v1702_v38, %v1569_v37  ;;  %v913_v60 = vmul.f32 %v1702_v38, %v1570_v43  ;;  %v914_v61 = vmul.f32 %v1702_v38, %v1571_v44  ;;  %v915_v62 = vmul.f32 %v1702_v38, %v1572_v45  ;;  %v1589_v38 = vld [vmem:[%s2878_s2 + $0x340] sm:$0xff]  ;;  %v1707_v39 = vld [vmem:[#allocation2 + $0x1a] ss:$0 sm:$0xff]  ;;  %v1590_v44 = vld [vmem:[%s2878_s2 + $0x348] sm:$0xff] }
  0x97   :  { %v901_v1 = vadd.f32 %v897_v46, %v886_v52  ;;  %v902_v2 = vadd.f32 %v898_v47, %v887_v53  ;;  %v903_v3 = vadd.f32 %v899_v48, %v888_v54  ;;  %v904_v4 = vadd.f32 %v900_v49, %v889_v55  ;;  %v1591_v45 = vld [vmem:[%s2878_s2 + $0x350] sm:$0xff]  ;;  %v1592_v46 = vld [vmem:[%s2878_s2 + $0x358] sm:$0xff] }
  0x98   :  { %v927_v8 = vmul.f32 %v1703_v51, %v1573_v50  ;;  %v928_v9 = vmul.f32 %v1703_v51, %v1574_v56  ;;  %v929_v10 = vmul.f32 %v1703_v51, %v1575_v57  ;;  %v930_v11 = vmul.f32 %v1703_v51, %v1576_v58  ;;  %v1593_v51 = vld [vmem:[%s2878_s2 + $0x360] sm:$0xff]  ;;  %v1708_v52 = vld [vmem:[#allocation2 + $0x1b] ss:$0 sm:$0xff]  ;;  %v1594_v57 = vld [vmem:[%s2878_s2 + $0x368] sm:$0xff] }
  0x99   :  { %v916_v14 = vadd.f32 %v912_v59, %v901_v1  ;;  %v917_v15 = vadd.f32 %v913_v60, %v902_v2  ;;  %v918_v16 = vadd.f32 %v914_v61, %v903_v3  ;;  %v919_v17 = vadd.f32 %v915_v62, %v904_v4  ;;  %v1595_v58 = vld [vmem:[%s2878_s2 + $0x370] sm:$0xff]  ;;  %v1596_v59 = vld [vmem:[%s2878_s2 + $0x378] sm:$0xff] }
  0x9a   :  { %v942_v21 = vmul.f32 %v1704_v0, %v1577_v63  ;;  %v943_v22 = vmul.f32 %v1704_v0, %v1578_v5  ;;  %v944_v23 = vmul.f32 %v1704_v0, %v1579_v6  ;;  %v945_v24 = vmul.f32 %v1704_v0, %v1580_v7  ;;  %v1597_v0 = vld [vmem:[%s2878_s2 + $0x380] sm:$0xff]  ;;  %v1709_v1 = vld [vmem:[#allocation2 + $0x1c] ss:$0 sm:$0xff]  ;;  %v1598_v6 = vld [vmem:[%s2878_s2 + $0x388] sm:$0xff] }
  0x9b   :  { %v931_v27 = vadd.f32 %v927_v8, %v916_v14  ;;  %v932_v28 = vadd.f32 %v928_v9, %v917_v15  ;;  %v933_v29 = vadd.f32 %v929_v10, %v918_v16  ;;  %v934_v30 = vadd.f32 %v930_v11, %v919_v17  ;;  %v1599_v7 = vld [vmem:[%s2878_s2 + $0x390] sm:$0xff]  ;;  %v1600_v8 = vld [vmem:[%s2878_s2 + $0x398] sm:$0xff] }
  0x9c   :  { %v957_v34 = vmul.f32 %v1705_v13, %v1581_v12  ;;  %v958_v35 = vmul.f32 %v1705_v13, %v1582_v18  ;;  %v959_v36 = vmul.f32 %v1705_v13, %v1583_v19  ;;  %v960_v37 = vmul.f32 %v1705_v13, %v1584_v20  ;;  %v1601_v13 = vld [vmem:[%s2878_s2 + $0x3a0] sm:$0xff]  ;;  %v1710_v14 = vld [vmem:[#allocation2 + $0x1d] ss:$0 sm:$0xff]  ;;  %v1602_v19 = vld [vmem:[%s2878_s2 + $0x3a8] sm:$0xff] }
  0x9d   :  { %v946_v40 = vadd.f32 %v942_v21, %v931_v27  ;;  %v947_v41 = vadd.f32 %v943_v22, %v932_v28  ;;  %v948_v42 = vadd.f32 %v944_v23, %v933_v29  ;;  %v949_v43 = vadd.f32 %v945_v24, %v934_v30  ;;  %v1603_v20 = vld [vmem:[%s2878_s2 + $0x3b0] sm:$0xff]  ;;  %v1604_v21 = vld [vmem:[%s2878_s2 + $0x3b8] sm:$0xff] }
  0x9e   :  { %v972_v47 = vmul.f32 %v1706_v26, %v1585_v25  ;;  %v973_v48 = vmul.f32 %v1706_v26, %v1586_v31  ;;  %v974_v49 = vmul.f32 %v1706_v26, %v1587_v32  ;;  %v975_v50 = vmul.f32 %v1706_v26, %v1588_v33  ;;  %v1605_v26 = vld [vmem:[%s2878_s2 + $0x3c0] sm:$0xff]  ;;  %v1711_v27 = vld [vmem:[#allocation2 + $0x1e] ss:$0 sm:$0xff]  ;;  %v1606_v32 = vld [vmem:[%s2878_s2 + $0x3c8] sm:$0xff] }
  0x9f   :  { %v961_v53 = vadd.f32 %v957_v34, %v946_v40  ;;  %v962_v54 = vadd.f32 %v958_v35, %v947_v41  ;;  %v963_v55 = vadd.f32 %v959_v36, %v948_v42  ;;  %v964_v56 = vadd.f32 %v960_v37, %v949_v43  ;;  %v1607_v33 = vld [vmem:[%s2878_s2 + $0x3d0] sm:$0xff]  ;;  %v1608_v34 = vld [vmem:[%s2878_s2 + $0x3d8] sm:$0xff] }
  0xa0   :  { %v987_v60 = vmul.f32 %v1707_v39, %v1589_v38  ;;  %v988_v61 = vmul.f32 %v1707_v39, %v1590_v44  ;;  %v989_v62 = vmul.f32 %v1707_v39, %v1591_v45  ;;  %v990_v63 = vmul.f32 %v1707_v39, %v1592_v46  ;;  %v1609_v39 = vld [vmem:[%s2878_s2 + $0x3e0] sm:$0xff]  ;;  %v1712_v40 = vld [vmem:[#allocation2 + $0x1f] ss:$0 sm:$0xff]  ;;  %v1610_v45 = vld [vmem:[%s2878_s2 + $0x3e8] sm:$0xff] }
  0xa1   :  { %v976_v2 = vadd.f32 %v972_v47, %v961_v53  ;;  %v977_v3 = vadd.f32 %v973_v48, %v962_v54  ;;  %v978_v4 = vadd.f32 %v974_v49, %v963_v55  ;;  %v979_v5 = vadd.f32 %v975_v50, %v964_v56  ;;  %v1611_v46 = vld [vmem:[%s2878_s2 + $0x3f0] sm:$0xff]  ;;  %v1612_v47 = vld [vmem:[%s2878_s2 + $0x3f8] sm:$0xff] }
  0xa2   :  { %v1002_v9 = vmul.f32 %v1708_v52, %v1593_v51  ;;  %v1003_v10 = vmul.f32 %v1708_v52, %v1594_v57  ;;  %v1004_v11 = vmul.f32 %v1708_v52, %v1595_v58  ;;  %v1005_v12 = vmul.f32 %v1708_v52, %v1596_v59 }
  0xa3   :  { %v991_v15 = vadd.f32 %v987_v60, %v976_v2  ;;  %v992_v16 = vadd.f32 %v988_v61, %v977_v3  ;;  %v993_v17 = vadd.f32 %v989_v62, %v978_v4  ;;  %v994_v18 = vadd.f32 %v990_v63, %v979_v5 }
  0xa4   :  { %v1017_v22 = vmul.f32 %v1709_v1, %v1597_v0  ;;  %v1018_v23 = vmul.f32 %v1709_v1, %v1598_v6  ;;  %v1019_v24 = vmul.f32 %v1709_v1, %v1599_v7  ;;  %v1020_v25 = vmul.f32 %v1709_v1, %v1600_v8 }
  0xa5   :  { %v1006_v28 = vadd.f32 %v1002_v9, %v991_v15  ;;  %v1007_v29 = vadd.f32 %v1003_v10, %v992_v16  ;;  %v1008_v30 = vadd.f32 %v1004_v11, %v993_v17  ;;  %v1009_v31 = vadd.f32 %v1005_v12, %v994_v18 }
  0xa6   :  { %v1032_v35 = vmul.f32 %v1710_v14, %v1601_v13  ;;  %v1033_v36 = vmul.f32 %v1710_v14, %v1602_v19  ;;  %v1034_v37 = vmul.f32 %v1710_v14, %v1603_v20  ;;  %v1035_v38 = vmul.f32 %v1710_v14, %v1604_v21 }
  0xa7   :  { %v1021_v41 = vadd.f32 %v1017_v22, %v1006_v28  ;;  %v1022_v42 = vadd.f32 %v1018_v23, %v1007_v29  ;;  %v1023_v43 = vadd.f32 %v1019_v24, %v1008_v30  ;;  %v1024_v44 = vadd.f32 %v1020_v25, %v1009_v31 }
  0xa8   :  { %v1047_v48 = vmul.f32 %v1711_v27, %v1605_v26  ;;  %v1048_v49 = vmul.f32 %v1711_v27, %v1606_v32  ;;  %v1049_v50 = vmul.f32 %v1711_v27, %v1607_v33  ;;  %v1050_v51 = vmul.f32 %v1711_v27, %v1608_v34 }
  0xa9   :  { %v1036_v52 = vadd.f32 %v1032_v35, %v1021_v41  ;;  %v1037_v53 = vadd.f32 %v1033_v36, %v1022_v42  ;;  %v1038_v54 = vadd.f32 %v1034_v37, %v1023_v43  ;;  %v1039_v55 = vadd.f32 %v1035_v38, %v1024_v44  ;;  %v1627_v37 = vld [vmem:[%s2879_s3 + $0x50] sm:$0x7f] }
  0xaa   :  { %v1062_v56 = vmul.f32 %v1712_v40, %v1609_v39  ;;  %v1063_v57 = vmul.f32 %v1712_v40, %v1610_v45  ;;  %v1064_v58 = vmul.f32 %v1712_v40, %v1611_v46  ;;  %v1065_v59 = vmul.f32 %v1712_v40, %v1612_v47 }
  0xab   :  { %v1051_v60 = vadd.f32 %v1047_v48, %v1036_v52  ;;  %v1052_v61 = vadd.f32 %v1048_v49, %v1037_v53  ;;  %v1053_v62 = vadd.f32 %v1049_v50, %v1038_v54  ;;  %v1054_v63 = vadd.f32 %v1050_v51, %v1039_v55 }
  0xad   :  { %v2738_v0 = vadd.f32 %v1062_v56, %v1051_v60  ;;  %v2740_v1 = vadd.f32 %v1063_v57, %v1052_v61  ;;  %v2742_v2 = vadd.f32 %v1064_v58, %v1053_v62  ;;  %v2744_v3 = vadd.f32 %v1065_v59, %v1054_v63  ;;  %v1617_v62 = vld [vmem:[%s2879_s3 + $0x100] sm:$0x7f] }
  0xae   :  { %v1157_v63 = vld [vmem:[%s2879_s3] sm:$0x7f] }
  0xaf   :  { %v1613_v4 = vmul.f32 -1.442695, %v2738_v0  ;;  %v1614_v5 = vmul.f32 -1.442695, %v2740_v1  ;;  %v1615_v6 = vmul.f32 -1.442695, %v2742_v2 }
  0xb0   :  { %v1616_v7 = vmul.f32 -1.442695, %v2744_v3 }
  0xb1   :  { %1761 = vpow2.f32 %v1613_v4 }
  0xb2   :  { %1763 = vpow2.f32 %v1614_v5  ;;  %v1619_v5 = vld [vmem:[%s2879_s3 + $0x10] sm:$0x7f] }
  0xb3   :  { %1765 = vpow2.f32 %v1615_v6 }
  0xb4   :  { %1767 = vpow2.f32 %v1616_v7 }
  0xb7   :  { %v1762_v8 = vpop.eup %1761 }
  0xb8   :  { %v1764_v9 = vpop.eup %1763  ;;  %v1082_v10 = vadd.f32 1.0, %v1762_v8 }
  0xb9   :  { %v1766_v11 = vpop.eup %1765  ;;  %v1083_v12 = vadd.f32 1.0, %v1764_v9  ;;  %v1620_v9 = vld [vmem:[%s2879_s3 + $0x18] sm:$0x7f] }
  0xba   :  { %v1768_v13 = vpop.eup %1767  ;;  %v1084_v14 = vadd.f32 1.0, %v1766_v11  ;;  %1769 = vrcp.f32 %v1082_v10  ;;  %v1095_v16 = vand.u32 2147483647, %v1082_v10  ;;  %v1097_v17 = vand.u32 2147483648, %v1082_v10 }
  0xbb   :  { %v1085_v15 = vadd.f32 1.0, %v1768_v13  ;;  %1771 = vrcp.f32 %v1083_v12  ;;  %vm1091_vm1 = vweird.f32 %v1082_v10  ;;  %vm1106_vm2 = vweird.f32 %v1083_v12  ;;  %v1621_v13 = vld [vmem:[%s2879_s3 + $0x20] sm:$0x7f] }
  0xbc   :  { %1773 = vrcp.f32 %v1084_v14  ;;  %v1110_v23 = vand.u32 2147483647, %v1083_v12  ;;  %v1112_v24 = vand.u32 2147483648, %v1083_v12  ;;  %vm2750_vm3 = vcmp.eq.f32.partialorder %v1095_v16, 8.507059e+37 }
  0xbd   :  { %1775 = vrcp.f32 %v1085_v15  ;;  %v1098_v27 = vor.u32 1.1754944e-38, %v1097_v17  ;;  %vm1121_vm4 = vweird.f32 %v1084_v14  ;;  %v1125_v31 = vand.u32 2147483647, %v1084_v14  ;;  %v1622_v17 = vld [vmem:[%s2879_s3 + $0x28] sm:$0x7f] }
  0xbe   :  { %v1127_v32 = vand.u32 2147483648, %v1084_v14  ;;  %vm2754_vm7 = vcmp.eq.f32.partialorder %v1110_v23, 8.507059e+37  ;;  %v1113_v38 = vor.u32 1.1754944e-38, %v1112_v24  ;;  %vm1136_vm10 = vweird.f32 %v1085_v15 }
  0xbf   :  { %v1140_v43 = vand.u32 2147483647, %v1085_v15  ;;  %v1142_v44 = vand.u32 2147483648, %v1085_v15  ;;  %vm1126_vm15 = vcmp.eq.f32.partialorder %v1125_v31, 8.507059e+37 }
  0xc0   :  { %v1770_v18 = vpop.eup %1769  ;;  %v1128_v50 = vor.u32 1.1754944e-38, %v1127_v32 }
  0xc1   :  { %v1772_v19 = vpop.eup %1771  ;;  %v1087_v20 = vmul.f32 %v1770_v18, %v1082_v10  ;;  %vm1092_vm5 = vweird.f32 %v1770_v18  ;;  %v1143_v56 = vor.u32 1.1754944e-38, %v1142_v44 }
  0xc2   :  { %v1774_v21 = vpop.eup %1773  ;;  %v1102_v22 = vmul.f32 %v1772_v19, %v1083_v12  ;;  %vm1107_vm6 = vweird.f32 %v1772_v19  ;;  %vm1093_vm9 = vmor %vm1091_vm1, %vm1092_vm5  ;;  %vm1141_vm1 = vcmp.eq.f32.partialorder %v1140_v43, 8.507059e+37 }
  0xc3   :  { %v1088_v25 = vsub.f32 1.0, %v1087_v20  ;;  %v1117_v28 = vmul.f32 %v1774_v21, %v1084_v14  ;;  %v1776_v29 = vpop.eup %1775  ;;  %vm1122_vm8 = vweird.f32 %v1774_v21  ;;  %vm1108_vm11 = vmor %vm1106_vm2, %vm1107_vm6 }
  0xc4   :  { %v1103_v30 = vsub.f32 1.0, %v1102_v22  ;;  %v1132_v35 = vmul.f32 %v1776_v29, %v1085_v15  ;;  %vm1137_vm12 = vweird.f32 %v1776_v29  ;;  %vm1123_vm14 = vmor %vm1121_vm4, %vm1122_vm8 }
  0xc5   :  { %v1089_v33 = vmul.f32 %v1770_v18, %v1088_v25  ;;  %v1118_v34 = vsub.f32 1.0, %v1117_v28  ;;  %vm1138_vm0 = vmor %vm1136_vm10, %vm1137_vm12  ;;  %v1624_v25 = vld [vmem:[%s2879_s3 + $0x38] sm:$0x7f] }
  0xc6   :  { %v1104_v36 = vmul.f32 %v1772_v19, %v1103_v30  ;;  %v1133_v41 = vsub.f32 1.0, %v1132_v35 }
  0xc7   :  { %v1090_v39 = vadd.f32 %v1770_v18, %v1089_v33  ;;  %v1119_v40 = vmul.f32 %v1774_v21, %v1118_v34  ;;  %v1626_v33 = vld [vmem:[%s2879_s3 + $0x48] sm:$0x7f] }
  0xc8   :  { %v1105_v42 = vadd.f32 %v1772_v19, %v1104_v36  ;;  %v1134_v47 = vmul.f32 %v1776_v29, %v1133_v41  ;;  %v1628_v41 = vld [vmem:[%s2879_s3 + $0x58] sm:$0x7f] }
  0xc9   :  { %v1094_v45 = vsel %vm1093_vm9, %v1770_v18, %v1090_v39  ;;  %v1120_v46 = vadd.f32 %v1774_v21, %v1119_v40 }
  0xca   :  { %v1099_v48 = vsel %vm2750_vm3, %v1098_v27, %v1094_v45  ;;  %v1109_v49 = vsel %vm1108_vm11, %v1772_v19, %v1105_v42  ;;  %v1135_v53 = vadd.f32 %v1776_v29, %v1134_v47  ;;  %v1629_v45 = vld [vmem:[%s2879_s3 + $0x60] sm:$0x7f] }
  0xcb   :  { %v1114_v51 = vsel %vm2754_vm7, %v1113_v38, %v1109_v49  ;;  %v1124_v52 = vsel %vm1123_vm14, %v1774_v21, %v1120_v46  ;;  %v1146_v54 = vmul.f32 %v1099_v48, %v2738_v0  ;;  %v1623_v21 = vld [vmem:[%s2879_s3 + $0x30] sm:$0x7f]  ;;  %v1630_v49 = vld [vmem:[%s2879_s3 + $0x68] sm:$0x7f] }
  0xcc   :  { %v1129_v55 = vsel %vm1126_vm15, %v1128_v50, %v1124_v52  ;;  %v1147_v57 = vmul.f32 %v1114_v51, %v2740_v1  ;;  %v1139_v58 = vsel %vm1138_vm0, %v1776_v29, %v1135_v53  ;;  %v1618_v1 = vld [vmem:[%s2879_s3 + $0x8] sm:$0x7f]  ;;  %v1625_v29 = vld [vmem:[%s2879_s3 + $0x40] sm:$0x7f]  ;;  %v1631_v53 = vld [vmem:[%s2879_s3 + $0x70] sm:$0x7f] }
  0xcd   :  { %v1148_v59 = vmul.f32 %v1129_v55, %v2742_v2  ;;  %1150 = vst.msk [vmem:[#allocation3] sm:$0xff] %vm581_vm13, %v1146_v54  ;;  %v1144_v60 = vsel %vm1141_vm1, %v1143_v56, %v1139_v58 }
  0xce   :  { %1151 = vst.msk [vmem:[#allocation3 + $0x8] sm:$0xff] %vm581_vm13, %v1147_v57  ;;  %v1149_v61 = vmul.f32 %v1144_v60, %v2744_v3  ;;  %v1632_v57 = vld [vmem:[%s2879_s3 + $0x78] sm:$0x7f] }
  0xcf   :  { %1152 = vst.msk [vmem:[#allocation3 + $0x10] sm:$0xff] %vm581_vm13, %v1148_v59 }
  0xd0   :  { %1153 = vst.msk [vmem:[#allocation3 + $0x18] sm:$0xff] %vm581_vm13, %v1149_v61  ;;  %v1633_v61 = vld [vmem:[%s2879_s3 + $0x80] sm:$0x7f]  ;;  %vm1347_vm13 = vcmask 14336  }
  0xd4   :  { %v1713_v0 = vld [vmem:[#allocation3] ss:$0 sm:$0xff]  ;;  %v1714_v2 = vld [vmem:[#allocation3 + $0x1] ss:$0 sm:$0xff]  ;;  %v1715_v3 = vld [vmem:[#allocation3 + $0x2] ss:$0 sm:$0xff] }
  0xd5   :  { %v1159_v4 = vmul.f32 %v1713_v0, %v1157_v63  ;;  %v1165_v7 = vmul.f32 %v1714_v2, %v1618_v1  ;;  %v1716_v8 = vld [vmem:[#allocation3 + $0x3] ss:$0 sm:$0xff]  ;;  %v1171_v11 = vmul.f32 %v1715_v3, %v1619_v5  ;;  %v1717_v12 = vld [vmem:[#allocation3 + $0x4] ss:$0 sm:$0xff]  ;;  %v1718_v16 = vld [vmem:[#allocation3 + $0x5] ss:$0 sm:$0xff] }
  0xd6   :  { %v1177_v15 = vmul.f32 %v1716_v8, %v1620_v9  ;;  %v1183_v19 = vmul.f32 %v1717_v12, %v1621_v13  ;;  %v1719_v20 = vld [vmem:[#allocation3 + $0x6] ss:$0 sm:$0xff]  ;;  %v1189_v23 = vmul.f32 %v1718_v16, %v1622_v17  ;;  %v1720_v24 = vld [vmem:[#allocation3 + $0x7] ss:$0 sm:$0xff]  ;;  %v1721_v28 = vld [vmem:[#allocation3 + $0x8] ss:$0 sm:$0xff] }
  0xd7   :  { %v1160_v6 = vadd.f32 %v1617_v62, %v1159_v4  ;;  %v1195_v27 = vmul.f32 %v1719_v20, %v1623_v21  ;;  %v1201_v31 = vmul.f32 %v1720_v24, %v1624_v25  ;;  %v1722_v32 = vld [vmem:[#allocation3 + $0x9] ss:$0 sm:$0xff]  ;;  %v1207_v35 = vmul.f32 %v1721_v28, %v1625_v29  ;;  %v1723_v36 = vld [vmem:[#allocation3 + $0xa] ss:$0 sm:$0xff]  ;;  %v1724_v40 = vld [vmem:[#allocation3 + $0xb] ss:$0 sm:$0xff] }
  0xd8   :  { %v1213_v39 = vmul.f32 %v1722_v32, %v1626_v33  ;;  %v1219_v43 = vmul.f32 %v1723_v36, %v1627_v37  ;;  %v1725_v44 = vld [vmem:[#allocation3 + $0xc] ss:$0 sm:$0xff]  ;;  %v1225_v47 = vmul.f32 %v1724_v40, %v1628_v41  ;;  %v1726_v48 = vld [vmem:[#allocation3 + $0xd] ss:$0 sm:$0xff]  ;;  %v1727_v52 = vld [vmem:[#allocation3 + $0xe] ss:$0 sm:$0xff] }
  0xd9   :  { %v1166_v10 = vadd.f32 %v1165_v7, %v1160_v6  ;;  %v1231_v51 = vmul.f32 %v1725_v44, %v1629_v45  ;;  %v1237_v55 = vmul.f32 %v1726_v48, %v1630_v49  ;;  %v1728_v56 = vld [vmem:[#allocation3 + $0xf] ss:$0 sm:$0xff]  ;;  %v1243_v59 = vmul.f32 %v1727_v52, %v1631_v53  ;;  %v1729_v60 = vld [vmem:[#allocation3 + $0x10] ss:$0 sm:$0xff]  ;;  %v1730_v0 = vld [vmem:[#allocation3 + $0x11] ss:$0 sm:$0xff] }
  0xda   :  { %v1249_v63 = vmul.f32 %v1728_v56, %v1632_v57  ;;  %v1634_v1 = vld [vmem:[%s2879_s3 + $0x88] sm:$0x7f]  ;;  %v1255_v4 = vmul.f32 %v1729_v60, %v1633_v61  ;;  %v1731_v3 = vld [vmem:[#allocation3 + $0x12] ss:$0 sm:$0xff]  ;;  %v1732_v8 = vld [vmem:[#allocation3 + $0x13] ss:$0 sm:$0xff] }
  0xdb   :  { %v1172_v14 = vadd.f32 %v1171_v11, %v1166_v10  ;;  %v1635_v5 = vld [vmem:[%s2879_s3 + $0x90] sm:$0x7f]  ;;  %v1261_v7 = vmul.f32 %v1730_v0, %v1634_v1  ;;  %v1636_v9 = vld [vmem:[%s2879_s3 + $0x98] sm:$0x7f]  ;;  %v1637_v13 = vld [vmem:[%s2879_s3 + $0xa0] sm:$0x7f] }
  0xdc   :  { %v1267_v11 = vmul.f32 %v1731_v3, %v1635_v5  ;;  %v1733_v12 = vld [vmem:[#allocation3 + $0x14] ss:$0 sm:$0xff]  ;;  %v1734_v16 = vld [vmem:[#allocation3 + $0x15] ss:$0 sm:$0xff]  ;;  %v1638_v17 = vld [vmem:[%s2879_s3 + $0xa8] sm:$0x7f] }
  0xdd   :  { %v1178_v18 = vadd.f32 %v1177_v15, %v1172_v14  ;;  %v1273_v15 = vmul.f32 %v1732_v8, %v1636_v9  ;;  %v1735_v20 = vld [vmem:[#allocation3 + $0x16] ss:$0 sm:$0xff]  ;;  %v1736_v24 = vld [vmem:[#allocation3 + $0x17] ss:$0 sm:$0xff]  ;;  %v1640_v25 = vld [vmem:[%s2879_s3 + $0xb8] sm:$0x7f] }
  0xde   :  { %v1639_v21 = vld [vmem:[%s2879_s3 + $0xb0] sm:$0x7f]  ;;  %v1737_v28 = vld [vmem:[#allocation3 + $0x18] ss:$0 sm:$0xff]  ;;  %v1641_v29 = vld [vmem:[%s2879_s3 + $0xc0] sm:$0x7f] }
  0xdf   :  { %v1184_v22 = vadd.f32 %v1183_v19, %v1178_v18  ;;  %v1279_v19 = vmul.f32 %v1733_v12, %v1637_v13  ;;  %v1738_v32 = vld [vmem:[#allocation3 + $0x19] ss:$0 sm:$0xff]  ;;  %v1642_v33 = vld [vmem:[%s2879_s3 + $0xc8] sm:$0x7f]  ;;  %v1739_v36 = vld [vmem:[#allocation3 + $0x1a] ss:$0 sm:$0xff] }
  0xe0   :  { %v1643_v37 = vld [vmem:[%s2879_s3 + $0xd0] sm:$0x7f]  ;;  %v1740_v40 = vld [vmem:[#allocation3 + $0x1b] ss:$0 sm:$0xff]  ;;  %v1741_v44 = vld [vmem:[#allocation3 + $0x1c] ss:$0 sm:$0xff] }
  0xe1   :  { %v1190_v26 = vadd.f32 %v1189_v23, %v1184_v22  ;;  %v1285_v23 = vmul.f32 %v1734_v16, %v1638_v17  ;;  %v1644_v41 = vld [vmem:[%s2879_s3 + $0xd8] sm:$0x7f]  ;;  %v1645_v45 = vld [vmem:[%s2879_s3 + $0xe0] sm:$0x7f]  ;;  %v1646_v49 = vld [vmem:[%s2879_s3 + $0xe8] sm:$0x7f] }
  0xe2   :  { %v1742_v48 = vld [vmem:[#allocation3 + $0x1d] ss:$0 sm:$0xff]  ;;  %v1743_v52 = vld [vmem:[#allocation3 + $0x1e] ss:$0 sm:$0xff]  ;;  %v1647_v53 = vld [vmem:[%s2879_s3 + $0xf0] sm:$0x7f] }
  0xe3   :  { %v1196_v30 = vadd.f32 %v1195_v27, %v1190_v26  ;;  %v1291_v27 = vmul.f32 %v1735_v20, %v1639_v21  ;;  %v1744_v56 = vld [vmem:[#allocation3 + $0x1f] ss:$0 sm:$0xff]  ;;  %v1648_v57 = vld [vmem:[%s2879_s3 + $0xf8] sm:$0x7f] }
  0xe4   :  { %v1345_v61 = vmul.f32 %v1744_v56, %v1648_v57 }
  0xe5   :  { %v1202_v34 = vadd.f32 %v1201_v31, %v1196_v30  ;;  %v1297_v31 = vmul.f32 %v1736_v24, %v1640_v25 }
  0xe7   :  { %v1208_v38 = vadd.f32 %v1207_v35, %v1202_v34  ;;  %v1303_v35 = vmul.f32 %v1737_v28, %v1641_v29 }
  0xe9   :  { %v1214_v42 = vadd.f32 %v1213_v39, %v1208_v38  ;;  %v1309_v39 = vmul.f32 %v1738_v32, %v1642_v33 }
  0xeb   :  { %v1220_v46 = vadd.f32 %v1219_v43, %v1214_v42  ;;  %v1315_v43 = vmul.f32 %v1739_v36, %v1643_v37 }
  0xed   :  { %v1226_v50 = vadd.f32 %v1225_v47, %v1220_v46  ;;  %v1321_v47 = vmul.f32 %v1740_v40, %v1644_v41 }
  0xef   :  { %v1232_v54 = vadd.f32 %v1231_v51, %v1226_v50  ;;  %v1327_v51 = vmul.f32 %v1741_v44, %v1645_v45 }
  0xf1   :  { %v1238_v58 = vadd.f32 %v1237_v55, %v1232_v54  ;;  %v1333_v55 = vmul.f32 %v1742_v48, %v1646_v49 }
  0xf3   :  { %v1244_v62 = vadd.f32 %v1243_v59, %v1238_v58  ;;  %v1339_v59 = vmul.f32 %v1743_v52, %v1647_v53 }
  0xf5   :  { %v1250_v2 = vadd.f32 %v1249_v63, %v1244_v62 }
  0xf7   :  { %v1256_v6 = vadd.f32 %v1255_v4, %v1250_v2 }
  0xf9   :  { %v1262_v10 = vadd.f32 %v1261_v7, %v1256_v6 }
  0xfb   :  { %v1268_v14 = vadd.f32 %v1267_v11, %v1262_v10 }
  0xfd   :  { %v1274_v18 = vadd.f32 %v1273_v15, %v1268_v14 }
  0xff   :  { %v1280_v22 = vadd.f32 %v1279_v19, %v1274_v18 }
 0x101   :  { %v1286_v26 = vadd.f32 %v1285_v23, %v1280_v22 }
 0x103   :  { %v1292_v30 = vadd.f32 %v1291_v27, %v1286_v26 }
 0x105   :  { %v1298_v34 = vadd.f32 %v1297_v31, %v1292_v30 }
 0x107   :  { %v1304_v38 = vadd.f32 %v1303_v35, %v1298_v34 }
 0x109   :  { %v1310_v42 = vadd.f32 %v1309_v39, %v1304_v38 }
 0x10b   :  { %v1316_v46 = vadd.f32 %v1315_v43, %v1310_v42 }
 0x10d   :  { %v1322_v50 = vadd.f32 %v1321_v47, %v1316_v46 }
 0x10f   :  { %v1328_v54 = vadd.f32 %v1327_v51, %v1322_v50 }
 0x111   :  { %v1334_v58 = vadd.f32 %v1333_v55, %v1328_v54 }
 0x113   :  { %v1340_v60 = vadd.f32 %v1339_v59, %v1334_v58 }
 0x115   :  { %v1346_v62 = vadd.f32 %v1345_v61, %v1340_v60 }
 0x117   :  { %1348 = vst.msk [vmem:[%s2880_s4] sm:$0x7f] %vm1347_vm13, %v1346_v62 }

</bundles_post_ra>
